<compile_context>
chip_gen: v7x
topology: tpu7x:2x2x1
jax: 0.10.0
libtpu: 0.0.40
codegen_flags: <defaults>
</compile_context>

<pallas_src>
import functools

import jax
import jax.numpy as jnp
from jax.experimental import pallas as pl
from jax.experimental.pallas import tpu as pltpu


# QuickGELU elementwise dtype: bf16 halves VPU/EUP element count on v6e/v7x.
# v5e has no bf16 VPU/EUP path — set False there to keep elementwise in f32.
_GELU_BF16 = True


# ----------------------------------------------------------------------------
# Helpers
# ----------------------------------------------------------------------------
def _layer_norm(v, g, b, eps=1e-5):
    # f32 math (keep normalization off the bf16 path).
    mu = jnp.mean(v, axis=-1, keepdims=True)
    var = jnp.mean(jnp.square(v - mu), axis=-1, keepdims=True)
    return (v - mu) * jax.lax.rsqrt(var + eps) * g + b


def _pick_batch_tile(B, S, row_cap=640):
    """Batch tile Bt (divisor of B).

    Preferences: (a) Bt*S rows fit a v7x-safe row cap (f32 activations +
    double-buffered bf16 layer weights stay well under 64 MiB at CLIP text
    sizes), (b) Bt is a multiple of 8 or equal to B so the (Bt,S)/(Bt,Dp)
    blocks keep (8,128)-friendly sublane dims, (c) B//Bt >= 2 when possible so
    the "parallel" batch axis can split across v7x's two TensorCores.
    """
    divs = [d for d in range(1, B + 1) if B % d == 0]
    cands = [d for d in divs if d * S <= row_cap and (d % 8 == 0 or d == B)]
    if not cands:
        cands = [d for d in divs if d * S <= row_cap] or [1]
    split = [d for d in cands if d < B]
    pool = split if split else cands
    return max(pool)


# ----------------------------------------------------------------------------
# Fused text-encoder kernel: grid = (batch_tiles, layers)
# ----------------------------------------------------------------------------
def _text_stack_kernel(x_ref, oh_ref,
                       ln1g, ln1b, wqkv, bqkv, wo, bo,
                       ln2g, ln2b, w1, b1, w2, b2,
                       lnfg, lnfb, proj,
                       feat_ref, x_scr,
                       *, num_heads, seq_len, bt):
    S = seq_len
    D = x_ref.shape[-1]
    H = num_heads
    Dh = D // H
    M = bt * S
    scale = Dh ** -0.5
    l = pl.program_id(1)

    # ---- layer 0: load prompts (pos already folded in) into the VMEM carry ----
    @pl.when(l == 0)
    def _init():
        # S is padded to a multiple of 8, so this reshape is a free view.
        x_scr[...] = x_ref[...].reshape(M, D)

    x = x_scr[...]                                     # (M, D) f32 residual stream

    # ---- attention branch (pre-LN); M = Bt*S rows feed the MXU ----
    xn = _layer_norm(x, ln1g[0], ln1b[0])
    qkv = jnp.dot(xn.astype(jnp.bfloat16), wqkv[0],
                  preferred_element_type=jnp.float32) + bqkv[0]

    def heads(t):                                      # (M, D) -> (Bt*H, S, Dh)
        t = t.reshape(bt, S, H, Dh)
        t = jnp.transpose(t, (0, 2, 1, 3))
        return t.reshape(bt * H, S, Dh)

    q = heads((qkv[:, :D] * scale).astype(jnp.bfloat16))   # scale applied once
    k = heads(qkv[:, D:2 * D].astype(jnp.bfloat16))
    v = heads(qkv[:, 2 * D:].astype(jnp.bfloat16))

    # causal additive mask built in-kernel (covers pad keys too: pads sit at
    # the highest positions, above every real query).
    ri = jax.lax.broadcasted_iota(jnp.int32, (S, S), 0)
    ci = jax.lax.broadcasted_iota(jnp.int32, (S, S), 1)
    neg = jnp.where(ci > ri, jnp.float32(-1e9), jnp.float32(0.0))

    # one batched score / PV einsum pair (single batch dim = Bt*H)
    s = jnp.einsum('bqd,bkd->bqk', q, k,
                   preferred_element_type=jnp.float32) + neg[None]
    s = s - jnp.max(s, axis=-1, keepdims=True)
    p = jnp.exp(s)
    p = p * pl.reciprocal(jnp.sum(p, axis=-1, keepdims=True), approx=True)
    ctx = jnp.einsum('bqk,bkd->bqd', p.astype(jnp.bfloat16), v,
                     preferred_element_type=jnp.float32)   # (Bt*H, S, Dh)
    attn = ctx.reshape(bt, H, S, Dh)
    attn = jnp.transpose(attn, (0, 2, 1, 3)).reshape(M, D)

    attn = jnp.dot(attn.astype(jnp.bfloat16), wo[0],
                   preferred_element_type=jnp.float32) + bo[0]
    x = x + attn

    # ---- MLP branch (QuickGELU) ----
    xn2 = _layer_norm(x, ln2g[0], ln2b[0])
    h = jnp.dot(xn2.astype(jnp.bfloat16), w1[0],
                preferred_element_type=jnp.float32) + b1[0]
    if _GELU_BF16:
        hb = h.astype(jnp.bfloat16)
        hb = hb * jax.nn.sigmoid(1.702 * hb)            # bf16 elementwise
    else:
        hb = (h * jax.nn.sigmoid(1.702 * h)).astype(jnp.bfloat16)
    h = jnp.dot(hb, w2[0], preferred_element_type=jnp.float32) + b2[0]
    x = x + h
    x_scr[...] = x

    # ---- last layer: ln_final + EOT gather + text projection, fused ----
    @pl.when(l == pl.num_programs(1) - 1)
    def _final():
        xb = x.reshape(bt, S, D)
        oh = oh_ref[...]                                 # (Bt, S) one-hot of EOT pos
        rows = jnp.sum(xb * oh[:, :, None], axis=1)      # gather-as-reduce in VMEM
        rn = _layer_norm(rows, lnfg[...], lnfb[...])
        feat_ref[...] = jnp.dot(rn.astype(jnp.bfloat16), proj[...],
                                preferred_element_type=jnp.float32
                                ).astype(feat_ref.dtype)


def text_encoder_forward(prompts, tokenized_prompts, params, num_heads):
    """Equivalent of TextEncoder.forward (batch-first; the permutes in the
    reference cancel out)."""
    B, S0, D = prompts.shape
    L = params["wqkv"].shape[0]
    Fh = params["w1"].shape[-1]
    Dp = params["proj"].shape[-1]

    # Fold the positional embedding outside the kernel (one cheap XLA add) and
    # pad S to a multiple of 8 so in-kernel reshapes/slices are free views.
    x = prompts + params["pos"][None, :S0].astype(prompts.dtype)
    S = ((S0 + 7) // 8) * 8
    if S != S0:
        x = jnp.pad(x, ((0, 0), (0, S - S0), (0, 0)))

    # EOT = position of the largest token id (CLIP convention); one-hot for the
    # in-VMEM gather-as-reduce on the last layer step (zero on pad columns).
    eot = jnp.argmax(tokenized_prompts, axis=-1)
    onehot = jax.nn.one_hot(eot, S, dtype=jnp.float32)

    Bt = _pick_batch_tile(B, S)
    n_bt = B // Bt

    # Explicit scoped-VMEM budget: double-buffered bf16 layer weights + f32
    # activations + prompt/one-hot/output slots, capped at v7x's 64 MiB.
    wbytes = (D * 3 * D + D * D + D * Fh + Fh * D) * 2 + (3 * D + Fh + 6 * D) * 4
    act_bytes = Bt * S * (D + 3 * D + Fh + D) * 4
    io_bytes = 2 * (Bt * S * D * 4 + Bt * S * 4 + Bt * Dp * 4)
    vmem_budget = int(2 * wbytes + act_bytes + io_bytes) + (4 << 20)
    vmem_budget = max(min(vmem_budget, 64 << 20), 8 << 20)

    xmap = lambda b, l: (b, 0, 0)
    ohmap = lambda b, l: (b, 0)
    wmap = lambda b, l: (l, 0, 0)      # per-layer stacked weights, pipelined over l
    cmap = lambda b, l: (0, 0)         # constants (final LN / projection)

    kernel = functools.partial(_text_stack_kernel, num_heads=num_heads,
                               seq_len=S, bt=Bt)

    feats = pl.pallas_call(
        kernel,
        out_shape=jax.ShapeDtypeStruct((B, Dp), jnp.float32),
        grid_spec=pltpu.PrefetchScalarGridSpec(
            num_scalar_prefetch=0,
            grid=(n_bt, L),
            in_specs=[
                pl.BlockSpec((Bt, S, D), xmap),          # prompts (+ pos)
                pl.BlockSpec((Bt, S), ohmap),            # EOT one-hot
                pl.BlockSpec((1, 1, D), wmap),           # ln1 gamma
                pl.BlockSpec((1, 1, D), wmap),           # ln1 beta
                pl.BlockSpec((1, D, 3 * D), wmap),       # qkv weight (bf16)
                pl.BlockSpec((1, 1, 3 * D), wmap),       # qkv bias
                pl.BlockSpec((1, D, D), wmap),           # out-proj weight (bf16)
                pl.BlockSpec((1, 1, D), wmap),           # out-proj bias
                pl.BlockSpec((1, 1, D), wmap),           # ln2 gamma
                pl.BlockSpec((1, 1, D), wmap),           # ln2 beta
                pl.BlockSpec((1, D, Fh), wmap),          # mlp fc1 weight (bf16)
                pl.BlockSpec((1, 1, Fh), wmap),          # mlp fc1 bias
                pl.BlockSpec((1, Fh, D), wmap),          # mlp fc2 weight (bf16)
                pl.BlockSpec((1, 1, D), wmap),           # mlp fc2 bias
                pl.BlockSpec((1, D), cmap),              # ln_final gamma
                pl.BlockSpec((1, D), cmap),              # ln_final beta
                pl.BlockSpec((D, Dp), cmap),             # text projection (bf16)
            ],
            out_specs=pl.BlockSpec((Bt, Dp), lambda b, l: (b, 0)),
            scratch_shapes=[pltpu.VMEM((Bt * S, D), jnp.float32)]),
        compiler_params=pltpu.CompilerParams(
            dimension_semantics=("parallel", "arbitrary"),
            vmem_limit_bytes=vmem_budget),
    )(x, onehot,
      params["ln1_g"], params["ln1_b"], params["wqkv"], params["bqkv"],
      params["wo"], params["bo"], params["ln2_g"], params["ln2_b"],
      params["w1"], params["b1"], params["w2"], params["b2"],
      params["lnf_g"], params["lnf_b"], params["proj"])
    return feats


# ----------------------------------------------------------------------------
# CLIP logit head: normalize features and compute logit_scale.exp() * img @ text.T
# ----------------------------------------------------------------------------
def _logits_kernel(img_ref, txt_ref, scale_ref, o_ref):
    img = img_ref[...]
    txt = txt_ref[...]
    # f32 normalization (matches x / x.norm(dim=-1, keepdim=True))
    img = img * jax.lax.rsqrt(jnp.sum(img * img, axis=-1, keepdims=True) + 1e-12)
    txt = txt * jax.lax.rsqrt(jnp.sum(txt * txt, axis=-1, keepdims=True) + 1e-12)
    sim = jax.lax.dot_general(img.astype(jnp.bfloat16), txt.astype(jnp.bfloat16),
                              (((1,), (1,)), ((), ())),
                              preferred_element_type=jnp.float32)
    o_ref[...] = sim * scale_ref[0, 0]


def clip_logits(image_features, text_features, logit_scale, *, tile=256):
    Bi, Dp = image_features.shape
    Nc = text_features.shape[0]
    tbi = Bi if Bi <= tile else tile
    tbc = Nc if Nc <= tile else tile
    # logit_scale is the log-scale parameter; exp() it once here (scalar XLA
    # op) and pass the exp'd scale through SMEM.
    scale = jnp.exp(logit_scale.astype(jnp.float32)).reshape(1, 1)
    return pl.pallas_call(
        _logits_kernel,
        out_shape=jax.ShapeDtypeStruct((Bi, Nc), jnp.float32),
        grid=(pl.cdiv(Bi, tbi), pl.cdiv(Nc, tbc)),
        in_specs=[pl.BlockSpec((tbi, Dp), lambda i, c: (i, 0)),
                  pl.BlockSpec((tbc, Dp), lambda i, c: (c, 0)),
                  pl.BlockSpec(memory_space=pltpu.MemorySpace.SMEM)],
        out_specs=pl.BlockSpec((tbi, tbc), lambda i, c: (i, c)),
        compiler_params=pltpu.CompilerParams(
            dimension_semantics=("parallel", "parallel")),
    )(image_features, text_features, scale)


# ----------------------------------------------------------------------------
# Deterministic synthetic parameters (stacked per-layer, bf16 weights)
# ----------------------------------------------------------------------------
def init_params(key, num_layers, S, D, Dp):
    Fh = 4 * D
    L = num_layers
    keys = iter(jax.random.split(key, 16))
    nrm = lambda shape, scale=0.02: (scale * jax.random.normal(next(keys), shape)
                                     ).astype(jnp.float32)
    bf16 = lambda a: a.astype(jnp.bfloat16)
    return dict(
        pos=nrm((S, D)),
        ln1_g=jnp.ones((L, 1, D), jnp.float32), ln1_b=jnp.zeros((L, 1, D), jnp.float32),
        wqkv=bf16(nrm((L, D, 3 * D))), bqkv=nrm((L, 1, 3 * D)),
        wo=bf16(nrm((L, D, D))), bo=nrm((L, 1, D)),
        ln2_g=jnp.ones((L, 1, D), jnp.float32), ln2_b=jnp.zeros((L, 1, D), jnp.float32),
        w1=bf16(nrm((L, D, Fh))), b1=nrm((L, 1, Fh)),
        w2=bf16(nrm((L, Fh, D))), b2=nrm((L, 1, D)),
        lnf_g=jnp.ones((1, D), jnp.float32), lnf_b=jnp.zeros((1, D), jnp.float32),
        proj=bf16(nrm((D, Dp))),
    )


# ----------------------------------------------------------------------------
# Main
# ----------------------------------------------------------------------------
if __name__ == "__main__":
    # toy shapes: n_cls prompts of length S, width D, H heads, L layers, Dp proj
    n_cls, n_ctx, S, D, H, L, Dp = 16, 2, 8, 32, 4, 2, 16
    B_img = 2

    key = jax.random.PRNGKey(0)
    k_param, k_ctx, k_pre, k_suf, k_tok, k_img = jax.random.split(key, 6)

    params = init_params(k_param, L, S, D, Dp)

    # --- VLPromptLearner: prompts = [prefix, learned ctx, suffix] (layout only) ---
    ctx = 0.02 * jax.random.normal(k_ctx, (n_ctx, D), jnp.float32)
    prefix = jax.random.normal(k_pre, (n_cls, 1, D), jnp.float32)
    suffix = jax.random.normal(k_suf, (n_cls, S - 1 - n_ctx, D), jnp.float32)
    prompts = jnp.concatenate(
        [prefix, jnp.broadcast_to(ctx[None], (n_cls, n_ctx, D)), suffix], axis=1)

    # tokenized prompts: random ids with the EOT token (largest id) at fixed spots
    tokenized = jax.random.randint(k_tok, (n_cls, S), 1, 50, dtype=jnp.int32)
    eot_positions = 3 + (jnp.arange(n_cls, dtype=jnp.int32) % (S - 4))
    tokenized = tokenized.at[jnp.arange(n_cls), eot_positions].set(1000)

    # --- TextEncoder (fused Pallas stack) ---
    text_features = text_encoder_forward(prompts, tokenized, params, H)
    assert text_features.shape == (n_cls, Dp), text_features.shape

    # TODO(synk): image_encoder (CLIP ViT visual tower) is not reimplemented;
    # synthetic image features stand in for clip_model.visual(image1).
    image_features = jax.random.normal(k_img, (B_img, Dp), jnp.float32)
    logit_scale = jnp.array(jnp.log(1.0 / 0.07), jnp.float32)

    # --- CustomCLIP eval head: normalize + logit_scale.exp() * img @ text.T ---
    logits = clip_logits(image_features, text_features, logit_scale)
    logits = jax.block_until_ready(logits)

    assert logits.shape == (B_img, n_cls), logits.shape
    assert bool(jnp.all(jnp.isfinite(logits)))
    assert bool(jnp.all(jnp.isfinite(text_features)))
    print("KERNEL_OK")
</pallas_src>

<mosaic_0001>
module attributes {stable_mosaic.version = 11 : i64} {
  func.func @_text_stack_kernel(%arg0: i32, %arg1: i32, %arg2: memref<8x8x32xf32, #tpu.memory_space<vmem>>, %arg3: memref<8x8xf32, #tpu.memory_space<vmem>>, %arg4: memref<1x1x32xf32, #tpu.memory_space<vmem>>, %arg5: memref<1x1x32xf32, #tpu.memory_space<vmem>>, %arg6: memref<1x32x96xbf16, #tpu.memory_space<vmem>>, %arg7: memref<1x1x96xf32, #tpu.memory_space<vmem>>, %arg8: memref<1x32x32xbf16, #tpu.memory_space<vmem>>, %arg9: memref<1x1x32xf32, #tpu.memory_space<vmem>>, %arg10: memref<1x1x32xf32, #tpu.memory_space<vmem>>, %arg11: memref<1x1x32xf32, #tpu.memory_space<vmem>>, %arg12: memref<1x32x128xbf16, #tpu.memory_space<vmem>>, %arg13: memref<1x1x128xf32, #tpu.memory_space<vmem>>, %arg14: memref<1x128x32xbf16, #tpu.memory_space<vmem>>, %arg15: memref<1x1x32xf32, #tpu.memory_space<vmem>>, %arg16: memref<1x32xf32, #tpu.memory_space<vmem>>, %arg17: memref<1x32xf32, #tpu.memory_space<vmem>>, %arg18: memref<32x16xbf16, #tpu.memory_space<vmem>>, %arg19: memref<8x16xf32, #tpu.memory_space<vmem>>, %arg20: memref<64x32xf32, #tpu.memory_space<vmem>>) attributes {dimension_semantics = [#tpu.dimension_semantics<parallel>, #tpu.dimension_semantics<arbitrary>], iteration_bounds = array<i64: 2, 2>, scalar_prefetch = 0 : i64, scratch_operands = 1 : i64, tpu.core_type = #tpu.core_type<tc>, window_params = [{transform_indices = @transform_0, window_bounds = array<i64: 8, 8, 32>}, {transform_indices = @transform_1, window_bounds = array<i64: 8, 8>}, {transform_indices = @transform_2, window_bounds = array<i64: 1, 1, 32>}, {transform_indices = @transform_3, window_bounds = array<i64: 1, 1, 32>}, {transform_indices = @transform_4, window_bounds = array<i64: 1, 32, 96>}, {transform_indices = @transform_5, window_bounds = array<i64: 1, 1, 96>}, {transform_indices = @transform_6, window_bounds = array<i64: 1, 32, 32>}, {transform_indices = @transform_7, window_bounds = array<i64: 1, 1, 32>}, {transform_indices = @transform_8, window_bounds = array<i64: 1, 1, 32>}, {transform_indices = @transform_9, window_bounds = array<i64: 1, 1, 32>}, {transform_indices = @transform_10, window_bounds = array<i64: 1, 32, 128>}, {transform_indices = @transform_11, window_bounds = array<i64: 1, 1, 128>}, {transform_indices = @transform_12, window_bounds = array<i64: 1, 128, 32>}, {transform_indices = @transform_13, window_bounds = array<i64: 1, 1, 32>}, {pipeline_mode = #tpu.pipeline_mode<synchronous>, transform_indices = @transform_14, window_bounds = array<i64: 1, 32>}, {pipeline_mode = #tpu.pipeline_mode<synchronous>, transform_indices = @transform_15, window_bounds = array<i64: 1, 32>}, {pipeline_mode = #tpu.pipeline_mode<synchronous>, transform_indices = @transform_16, window_bounds = array<i64: 32, 16>}, {transform_indices = @transform_17, window_bounds = array<i64: 8, 16>}]} {
    %c0_i32 = arith.constant 0 : i32
    %0 = arith.cmpi eq, %arg1, %c0_i32 : i32
    %1 = arith.extui %0 : i1 to i32
    %c0_i32_0 = arith.constant 0 : i32
    %2 = arith.cmpi ne, %1, %c0_i32_0 : i32
    scf.if %2 {
      %c0_63 = arith.constant 0 : index
      %c0_64 = arith.constant 0 : index
      %c0_65 = arith.constant 0 : index
      %144 = vector.load %arg2[%c0_63, %c0_64, %c0_65] : memref<8x8x32xf32, #tpu.memory_space<vmem>>, vector<8x8x32xf32>
      %145 = vector.shape_cast %144 : vector<8x8x32xf32> to vector<64x32xf32>
      %c0_66 = arith.constant 0 : index
      %c0_67 = arith.constant 0 : index
      %146 = vector.load %arg20[%c0_66, %c0_67] : memref<64x32xf32, #tpu.memory_space<vmem>>, vector<64x32xf32>
      tpu.vector_store %arg20[%c0_66, %c0_67], %145 {strides = array<i32>} : memref<64x32xf32, #tpu.memory_space<vmem>>, vector<64x32xf32>,
    } else {
    }
    %c0 = arith.constant 0 : index
    %c0_1 = arith.constant 0 : index
    %3 = vector.load %arg20[%c0, %c0_1] : memref<64x32xf32, #tpu.memory_space<vmem>>, vector<64x32xf32>
    %c0_2 = arith.constant 0 : index
    %c0_3 = arith.constant 0 : index
    %c0_4 = arith.constant 0 : index
    %4 = vector.load %arg4[%c0_2, %c0_3, %c0_4] : memref<1x1x32xf32, #tpu.memory_space<vmem>>, vector<1x1x32xf32>
    %5 = vector.shape_cast %4 : vector<1x1x32xf32> to vector<1x32xf32>
    %c0_5 = arith.constant 0 : index
    %c0_6 = arith.constant 0 : index
    %c0_7 = arith.constant 0 : index
    %6 = vector.load %arg5[%c0_5, %c0_6, %c0_7] : memref<1x1x32xf32, #tpu.memory_space<vmem>>, vector<1x1x32xf32>
    %7 = vector.shape_cast %6 : vector<1x1x32xf32> to vector<1x32xf32>
    %cst = arith.constant dense<0.000000e+00> : vector<64xf32>
    %8 = vector.multi_reduction <add>, %3, %cst [1] : vector<64x32xf32> to vector<64xf32>
    %9 = vector.shape_cast %8 : vector<64xf32> to vector<64x1xf32>
    %cst_8 = arith.constant 3.200000e+01 : f32
    %10 = vector.broadcast %cst_8 : f32 to vector<64x1xf32>
    %11 = arith.divf %9, %10 : vector<64x1xf32>
    %12 = vector.broadcast %11 : vector<64x1xf32> to vector<64x32xf32>
    %13 = arith.subf %3, %12 : vector<64x32xf32>
    %14 = arith.mulf %13, %13 : vector<64x32xf32>
    %cst_9 = arith.constant dense<0.000000e+00> : vector<64xf32>
    %15 = vector.multi_reduction <add>, %14, %cst_9 [1] : vector<64x32xf32> to vector<64xf32>
    %16 = vector.shape_cast %15 : vector<64xf32> to vector<64x1xf32>
    %cst_10 = arith.constant 3.200000e+01 : f32
    %17 = vector.broadcast %cst_10 : f32 to vector<64x1xf32>
    %18 = arith.divf %16, %17 : vector<64x1xf32>
    %19 = vector.broadcast %11 : vector<64x1xf32> to vector<64x32xf32>
    %20 = arith.subf %3, %19 : vector<64x32xf32>
    %cst_11 = arith.constant 9.99999974E-6 : f32
    %21 = vector.broadcast %cst_11 : f32 to vector<64x1xf32>
    %22 = arith.addf %18, %21 : vector<64x1xf32>
    %23 = math.rsqrt %22 : vector<64x1xf32>
    %24 = vector.broadcast %23 : vector<64x1xf32> to vector<64x32xf32>
    %25 = arith.mulf %20, %24 : vector<64x32xf32>
    %26 = vector.broadcast %5 : vector<1x32xf32> to vector<64x32xf32>
    %27 = arith.mulf %25, %26 : vector<64x32xf32>
    %28 = vector.broadcast %7 : vector<1x32xf32> to vector<64x32xf32>
    %29 = arith.addf %27, %28 : vector<64x32xf32>
    %30 = arith.truncf %29 : vector<64x32xf32> to vector<64x32xbf16>
    %c0_12 = arith.constant 0 : index
    %c0_13 = arith.constant 0 : index
    %c0_14 = arith.constant 0 : index
    %31 = vector.load %arg6[%c0_12, %c0_13, %c0_14] : memref<1x32x96xbf16, #tpu.memory_space<vmem>>, vector<1x32x96xbf16>
    %32 = vector.shape_cast %31 : vector<1x32x96xbf16> to vector<32x96xbf16>
    %cst_15 = arith.constant dense<0.000000e+00> : vector<64x96xf32>
    %33 = tpu.matmul %30, %32, %cst_15 {dimension_numbers = #tpu.dot_dimension_numbers<[1], [0], [0], [1], [0, 0, 1, 1], [], []>} : vector<64x32xbf16>, vector<32x96xbf16>, vector<64x96xf32> -> vector<64x96xf32>
    %c0_16 = arith.constant 0 : index
    %c0_17 = arith.constant 0 : index
    %c0_18 = arith.constant 0 : index
    %34 = vector.load %arg7[%c0_16, %c0_17, %c0_18] : memref<1x1x96xf32, #tpu.memory_space<vmem>>, vector<1x1x96xf32>
    %35 = vector.shape_cast %34 : vector<1x1x96xf32> to vector<1x96xf32>
    %36 = vector.broadcast %35 : vector<1x96xf32> to vector<64x96xf32>
    %37 = arith.addf %33, %36 : vector<64x96xf32>
    %38 = vector.extract_strided_slice %37 {offsets = [0, 0], sizes = [64, 32], strides = [1, 1]} : vector<64x96xf32> to vector<64x32xf32>
    %cst_19 = arith.constant 0.353553385 : f32
    %39 = vector.broadcast %cst_19 : f32 to vector<64x32xf32>
    %40 = arith.mulf %38, %39 : vector<64x32xf32>
    %41 = arith.truncf %40 : vector<64x32xf32> to vector<64x32xbf16>
    %42 = vector.shape_cast %41 : vector<64x32xbf16> to vector<8x8x4x8xbf16>
    %43 = tpu.transpose %42, [0, 2, 1, 3] : vector<8x8x4x8xbf16> -> vector<8x4x8x8xbf16>
    %44 = vector.shape_cast %43 : vector<8x4x8x8xbf16> to vector<32x8x8xbf16>
    %45 = vector.extract_strided_slice %37 {offsets = [0, 32], sizes = [64, 32], strides = [1, 1]} : vector<64x96xf32> to vector<64x32xf32>
    %46 = arith.truncf %45 : vector<64x32xf32> to vector<64x32xbf16>
    %47 = vector.shape_cast %46 : vector<64x32xbf16> to vector<8x8x4x8xbf16>
    %48 = tpu.transpose %47, [0, 2, 1, 3] : vector<8x8x4x8xbf16> -> vector<8x4x8x8xbf16>
    %49 = vector.shape_cast %48 : vector<8x4x8x8xbf16> to vector<32x8x8xbf16>
    %50 = vector.extract_strided_slice %37 {offsets = [0, 64], sizes = [64, 32], strides = [1, 1]} : vector<64x96xf32> to vector<64x32xf32>
    %51 = arith.truncf %50 : vector<64x32xf32> to vector<64x32xbf16>
    %52 = vector.shape_cast %51 : vector<64x32xbf16> to vector<8x8x4x8xbf16>
    %53 = tpu.transpose %52, [0, 2, 1, 3] : vector<8x8x4x8xbf16> -> vector<8x4x8x8xbf16>
    %54 = vector.shape_cast %53 : vector<8x4x8x8xbf16> to vector<32x8x8xbf16>
    %55 = tpu.iota {dimensions = array<i32: 0>} : vector<8x8xi32>
    %56 = tpu.iota {dimensions = array<i32: 1>} : vector<8x8xi32>
    %57 = arith.cmpi sgt, %56, %55 : vector<8x8xi32>
    %cst_20 = arith.constant -1.000000e+09 : f32
    %cst_21 = arith.constant 0.000000e+00 : f32
    %58 = vector.broadcast %cst_20 : f32 to vector<8x8xf32>
    %59 = vector.broadcast %cst_21 : f32 to vector<8x8xf32>
    %60 = arith.select %57, %58, %59 : vector<8x8xi1>, vector<8x8xf32>
    "tpu.trace_start"() <{level = 10 : i32, message = "bqd,bkd->bqk"}> : () -> ()
    %cst_22 = arith.constant dense<0.000000e+00> : vector<32x8x8xf32>
    %61 = tpu.matmul %44, %49, %cst_22 {dimension_numbers = #tpu.dot_dimension_numbers<[2], [2], [1], [1], [0, 0, 0, 1, 1, 1], [0], [0]>} : vector<32x8x8xbf16>, vector<32x8x8xbf16>, vector<32x8x8xf32> -> vector<32x8x8xf32>
    "tpu.trace_stop"() : () -> ()
    %62 = vector.shape_cast %60 : vector<8x8xf32> to vector<1x8x8xf32>
    %63 = vector.broadcast %62 : vector<1x8x8xf32> to vector<32x8x8xf32>
    %64 = arith.addf %61, %63 : vector<32x8x8xf32>
    %cst_23 = arith.constant dense<0xFF800000> : vector<32x8xf32>
    %65 = vector.multi_reduction <maximumf>, %64, %cst_23 [2] : vector<32x8x8xf32> to vector<32x8xf32>
    %66 = vector.shape_cast %65 : vector<32x8xf32> to vector<32x8x1xf32>
    %67 = vector.broadcast %66 : vector<32x8x1xf32> to vector<32x8x8xf32>
    %68 = arith.subf %64, %67 : vector<32x8x8xf32>
    %69 = math.exp %68 : vector<32x8x8xf32>
    %cst_24 = arith.constant dense<0.000000e+00> : vector<32x8xf32>
    %70 = vector.multi_reduction <add>, %69, %cst_24 [2] : vector<32x8x8xf32> to vector<32x8xf32>
    %71 = vector.shape_cast %70 : vector<32x8xf32> to vector<32x8x1xf32>
    %72 = tpu.reciprocal %71 {approx = true} : vector<32x8x1xf32> -> vector<32x8x1xf32>
    %73 = vector.broadcast %72 : vector<32x8x1xf32> to vector<32x8x8xf32>
    %74 = arith.mulf %69, %73 : vector<32x8x8xf32>
    %75 = arith.truncf %74 : vector<32x8x8xf32> to vector<32x8x8xbf16>
    "tpu.trace_start"() <{level = 10 : i32, message = "bqk,bkd->bqd"}> : () -> ()
    %cst_25 = arith.constant dense<0.000000e+00> : vector<32x8x8xf32>
    %76 = tpu.matmul %75, %54, %cst_25 {dimension_numbers = #tpu.dot_dimension_numbers<[2], [1], [1], [2], [0, 0, 0, 1, 1, 2], [0], [0]>} : vector<32x8x8xbf16>, vector<32x8x8xbf16>, vector<32x8x8xf32> -> vector<32x8x8xf32>
    "tpu.trace_stop"() : () -> ()
    %77 = vector.shape_cast %76 : vector<32x8x8xf32> to vector<8x4x8x8xf32>
    %78 = tpu.transpose %77, [0, 2, 1, 3] : vector<8x4x8x8xf32> -> vector<8x8x4x8xf32>
    %79 = vector.shape_cast %78 : vector<8x8x4x8xf32> to vector<64x32xf32>
    %80 = arith.truncf %79 : vector<64x32xf32> to vector<64x32xbf16>
    %c0_26 = arith.constant 0 : index
    %c0_27 = arith.constant 0 : index
    %c0_28 = arith.constant 0 : index
    %81 = vector.load %arg8[%c0_26, %c0_27, %c0_28] : memref<1x32x32xbf16, #tpu.memory_space<vmem>>, vector<1x32x32xbf16>
    %82 = vector.shape_cast %81 : vector<1x32x32xbf16> to vector<32x32xbf16>
    %cst_29 = arith.constant dense<0.000000e+00> : vector<64x32xf32>
    %83 = tpu.matmul %80, %82, %cst_29 {dimension_numbers = #tpu.dot_dimension_numbers<[1], [0], [0], [1], [0, 0, 1, 1], [], []>} : vector<64x32xbf16>, vector<32x32xbf16>, vector<64x32xf32> -> vector<64x32xf32>
    %c0_30 = arith.constant 0 : index
    %c0_31 = arith.constant 0 : index
    %c0_32 = arith.constant 0 : index
    %84 = vector.load %arg9[%c0_30, %c0_31, %c0_32] : memref<1x1x32xf32, #tpu.memory_space<vmem>>, vector<1x1x32xf32>
    %85 = vector.shape_cast %84 : vector<1x1x32xf32> to vector<1x32xf32>
    %86 = vector.broadcast %85 : vector<1x32xf32> to vector<64x32xf32>
    %87 = arith.addf %83, %86 : vector<64x32xf32>
    %88 = arith.addf %3, %87 : vector<64x32xf32>
    %c0_33 = arith.constant 0 : index
    %c0_34 = arith.constant 0 : index
    %c0_35 = arith.constant 0 : index
    %89 = vector.load %arg10[%c0_33, %c0_34, %c0_35] : memref<1x1x32xf32, #tpu.memory_space<vmem>>, vector<1x1x32xf32>
    %90 = vector.shape_cast %89 : vector<1x1x32xf32> to vector<1x32xf32>
    %c0_36 = arith.constant 0 : index
    %c0_37 = arith.constant 0 : index
    %c0_38 = arith.constant 0 : index
    %91 = vector.load %arg11[%c0_36, %c0_37, %c0_38] : memref<1x1x32xf32, #tpu.memory_space<vmem>>, vector<1x1x32xf32>
    %92 = vector.shape_cast %91 : vector<1x1x32xf32> to vector<1x32xf32>
    %cst_39 = arith.constant dense<0.000000e+00> : vector<64xf32>
    %93 = vector.multi_reduction <add>, %88, %cst_39 [1] : vector<64x32xf32> to vector<64xf32>
    %94 = vector.shape_cast %93 : vector<64xf32> to vector<64x1xf32>
    %cst_40 = arith.constant 3.200000e+01 : f32
    %95 = vector.broadcast %cst_40 : f32 to vector<64x1xf32>
    %96 = arith.divf %94, %95 : vector<64x1xf32>
    %97 = vector.broadcast %96 : vector<64x1xf32> to vector<64x32xf32>
    %98 = arith.subf %88, %97 : vector<64x32xf32>
    %99 = arith.mulf %98, %98 : vector<64x32xf32>
    %cst_41 = arith.constant dense<0.000000e+00> : vector<64xf32>
    %100 = vector.multi_reduction <add>, %99, %cst_41 [1] : vector<64x32xf32> to vector<64xf32>
    %101 = vector.shape_cast %100 : vector<64xf32> to vector<64x1xf32>
    %cst_42 = arith.constant 3.200000e+01 : f32
    %102 = vector.broadcast %cst_42 : f32 to vector<64x1xf32>
    %103 = arith.divf %101, %102 : vector<64x1xf32>
    %104 = vector.broadcast %96 : vector<64x1xf32> to vector<64x32xf32>
    %105 = arith.subf %88, %104 : vector<64x32xf32>
    %cst_43 = arith.constant 9.99999974E-6 : f32
    %106 = vector.broadcast %cst_43 : f32 to vector<64x1xf32>
    %107 = arith.addf %103, %106 : vector<64x1xf32>
    %108 = math.rsqrt %107 : vector<64x1xf32>
    %109 = vector.broadcast %108 : vector<64x1xf32> to vector<64x32xf32>
    %110 = arith.mulf %105, %109 : vector<64x32xf32>
    %111 = vector.broadcast %90 : vector<1x32xf32> to vector<64x32xf32>
    %112 = arith.mulf %110, %111 : vector<64x32xf32>
    %113 = vector.broadcast %92 : vector<1x32xf32> to vector<64x32xf32>
    %114 = arith.addf %112, %113 : vector<64x32xf32>
    %115 = arith.truncf %114 : vector<64x32xf32> to vector<64x32xbf16>
    %c0_44 = arith.constant 0 : index
    %c0_45 = arith.constant 0 : index
    %c0_46 = arith.constant 0 : index
    %116 = vector.load %arg12[%c0_44, %c0_45, %c0_46] : memref<1x32x128xbf16, #tpu.memory_space<vmem>>, vector<1x32x128xbf16>
    %117 = vector.shape_cast %116 : vector<1x32x128xbf16> to vector<32x128xbf16>
    %cst_47 = arith.constant dense<0.000000e+00> : vector<64x128xf32>
    %118 = tpu.matmul %115, %117, %cst_47 {dimension_numbers = #tpu.dot_dimension_numbers<[1], [0], [0], [1], [0, 0, 1, 1], [], []>} : vector<64x32xbf16>, vector<32x128xbf16>, vector<64x128xf32> -> vector<64x128xf32>
    %c0_48 = arith.constant 0 : index
    %c0_49 = arith.constant 0 : index
    %c0_50 = arith.constant 0 : index
    %119 = vector.load %arg13[%c0_48, %c0_49, %c0_50] : memref<1x1x128xf32, #tpu.memory_space<vmem>>, vector<1x1x128xf32>
    %120 = vector.shape_cast %119 : vector<1x1x128xf32> to vector<1x128xf32>
    %121 = vector.broadcast %120 : vector<1x128xf32> to vector<64x128xf32>
    %122 = arith.addf %118, %121 : vector<64x128xf32>
    %123 = arith.truncf %122 : vector<64x128xf32> to vector<64x128xbf16>
    %cst_51 = arith.constant 1.703130e+00 : bf16
    %124 = vector.broadcast %cst_51 : bf16 to vector<64x128xbf16>
    %125 = arith.mulf %124, %123 : vector<64x128xbf16>
    %126 = arith.negf %125 : vector<64x128xbf16>
    %127 = math.exp %126 : vector<64x128xbf16>
    %cst_52 = arith.constant 1.000000e+00 : bf16
    %128 = vector.broadcast %cst_52 : bf16 to vector<64x128xbf16>
    %129 = arith.addf %128, %127 : vector<64x128xbf16>
    %130 = arith.divf %128, %129 : vector<64x128xbf16>
    %131 = arith.mulf %123, %130 : vector<64x128xbf16>
    %c0_53 = arith.constant 0 : index
    %c0_54 = arith.constant 0 : index
    %c0_55 = arith.constant 0 : index
    %132 = vector.load %arg14[%c0_53, %c0_54, %c0_55] : memref<1x128x32xbf16, #tpu.memory_space<vmem>>, vector<1x128x32xbf16>
    %133 = vector.shape_cast %132 : vector<1x128x32xbf16> to vector<128x32xbf16>
    %cst_56 = arith.constant dense<0.000000e+00> : vector<64x32xf32>
    %134 = tpu.matmul %131, %133, %cst_56 {dimension_numbers = #tpu.dot_dimension_numbers<[1], [0], [0], [1], [0, 0, 1, 1], [], []>} : vector<64x128xbf16>, vector<128x32xbf16>, vector<64x32xf32> -> vector<64x32xf32>
    %c0_57 = arith.constant 0 : index
    %c0_58 = arith.constant 0 : index
    %c0_59 = arith.constant 0 : index
    %135 = vector.load %arg15[%c0_57, %c0_58, %c0_59] : memref<1x1x32xf32, #tpu.memory_space<vmem>>, vector<1x1x32xf32>
    %136 = vector.shape_cast %135 : vector<1x1x32xf32> to vector<1x32xf32>
    %137 = vector.broadcast %136 : vector<1x32xf32> to vector<64x32xf32>
    %138 = arith.addf %134, %137 : vector<64x32xf32>
    %139 = arith.addf %88, %138 : vector<64x32xf32>
    %c0_60 = arith.constant 0 : index
    %c0_61 = arith.constant 0 : index
    %140 = vector.load %arg20[%c0_60, %c0_61] : memref<64x32xf32, #tpu.memory_space<vmem>>, vector<64x32xf32>
    tpu.vector_store %arg20[%c0_60, %c0_61], %139 {strides = array<i32>} : memref<64x32xf32, #tpu.memory_space<vmem>>, vector<64x32xf32>,
    %c1_i32 = arith.constant 1 : i32
    %141 = arith.cmpi eq, %arg1, %c1_i32 : i32
    %142 = arith.extui %141 : i1 to i32
    %c0_i32_62 = arith.constant 0 : i32
    %143 = arith.cmpi ne, %142, %c0_i32_62 : i32
    scf.if %143 {
      %144 = vector.shape_cast %139 : vector<64x32xf32> to vector<8x8x32xf32>
      %c0_63 = arith.constant 0 : index
      %c0_64 = arith.constant 0 : index
      %145 = vector.load %arg3[%c0_63, %c0_64] : memref<8x8xf32, #tpu.memory_space<vmem>>, vector<8x8xf32>
      %146 = vector.shape_cast %145 : vector<8x8xf32> to vector<8x8x1xf32>
      %147 = vector.broadcast %146 : vector<8x8x1xf32> to vector<8x8x32xf32>
      %148 = arith.mulf %144, %147 : vector<8x8x32xf32>
      %cst_65 = arith.constant dense<0.000000e+00> : vector<8x32xf32>
      %149 = vector.multi_reduction <add>, %148, %cst_65 [1] : vector<8x8x32xf32> to vector<8x32xf32>
      %c0_66 = arith.constant 0 : index
      %c0_67 = arith.constant 0 : index
      %150 = vector.load %arg16[%c0_66, %c0_67] : memref<1x32xf32, #tpu.memory_space<vmem>>, vector<1x32xf32>
      %c0_68 = arith.constant 0 : index
      %c0_69 = arith.constant 0 : index
      %151 = vector.load %arg17[%c0_68, %c0_69] : memref<1x32xf32, #tpu.memory_space<vmem>>, vector<1x32xf32>
      %cst_70 = arith.constant dense<0.000000e+00> : vector<8xf32>
      %152 = vector.multi_reduction <add>, %149, %cst_70 [1] : vector<8x32xf32> to vector<8xf32>
      %153 = vector.shape_cast %152 : vector<8xf32> to vector<8x1xf32>
      %cst_71 = arith.constant 3.200000e+01 : f32
      %154 = vector.broadcast %cst_71 : f32 to vector<8x1xf32>
      %155 = arith.divf %153, %154 : vector<8x1xf32>
      %156 = vector.broadcast %155 : vector<8x1xf32> to vector<8x32xf32>
      %157 = arith.subf %149, %156 : vector<8x32xf32>
      %158 = arith.mulf %157, %157 : vector<8x32xf32>
      %cst_72 = arith.constant dense<0.000000e+00> : vector<8xf32>
      %159 = vector.multi_reduction <add>, %158, %cst_72 [1] : vector<8x32xf32> to vector<8xf32>
      %160 = vector.shape_cast %159 : vector<8xf32> to vector<8x1xf32>
      %cst_73 = arith.constant 3.200000e+01 : f32
      %161 = vector.broadcast %cst_73 : f32 to vector<8x1xf32>
      %162 = arith.divf %160, %161 : vector<8x1xf32>
      %163 = vector.broadcast %155 : vector<8x1xf32> to vector<8x32xf32>
      %164 = arith.subf %149, %163 : vector<8x32xf32>
      %cst_74 = arith.constant 9.99999974E-6 : f32
      %165 = vector.broadcast %cst_74 : f32 to vector<8x1xf32>
      %166 = arith.addf %162, %165 : vector<8x1xf32>
      %167 = math.rsqrt %166 : vector<8x1xf32>
      %168 = vector.broadcast %167 : vector<8x1xf32> to vector<8x32xf32>
      %169 = arith.mulf %164, %168 : vector<8x32xf32>
      %170 = vector.broadcast %150 : vector<1x32xf32> to vector<8x32xf32>
      %171 = arith.mulf %169, %170 : vector<8x32xf32>
      %172 = vector.broadcast %151 : vector<1x32xf32> to vector<8x32xf32>
      %173 = arith.addf %171, %172 : vector<8x32xf32>
      %174 = arith.truncf %173 : vector<8x32xf32> to vector<8x32xbf16>
      %c0_75 = arith.constant 0 : index
      %c0_76 = arith.constant 0 : index
      %175 = vector.load %arg18[%c0_75, %c0_76] : memref<32x16xbf16, #tpu.memory_space<vmem>>, vector<32x16xbf16>
      %cst_77 = arith.constant dense<0.000000e+00> : vector<8x16xf32>
      %176 = tpu.matmul %174, %175, %cst_77 {dimension_numbers = #tpu.dot_dimension_numbers<[1], [0], [0], [1], [0, 0, 1, 1], [], []>} : vector<8x32xbf16>, vector<32x16xbf16>, vector<8x16xf32> -> vector<8x16xf32>
      %c0_78 = arith.constant 0 : index
      %c0_79 = arith.constant 0 : index
      %177 = vector.load %arg19[%c0_78, %c0_79] : memref<8x16xf32, #tpu.memory_space<vmem>>, vector<8x16xf32>
      tpu.vector_store %arg19[%c0_78, %c0_79], %176 {strides = array<i32>} : memref<8x16xf32, #tpu.memory_space<vmem>>, vector<8x16xf32>,
    } else {
    }
    return
  }
  func.func @transform_0(%arg0: i32, %arg1: i32) -> (i32, i32, i32) {
    %c0_i32 = arith.constant 0 : i32
    %c0_i32_0 = arith.constant 0 : i32
    %c0_i32_1 = arith.constant 0 : i32
    return %arg0, %c0_i32, %c0_i32_0 : i32, i32, i32
  }
  func.func @transform_1(%arg0: i32, %arg1: i32) -> (i32, i32) {
    %c0_i32 = arith.constant 0 : i32
    %c0_i32_0 = arith.constant 0 : i32
    return %arg0, %c0_i32 : i32, i32
  }
  func.func @transform_2(%arg0: i32, %arg1: i32) -> (i32, i32, i32) {
    %c0_i32 = arith.constant 0 : i32
    %c0_i32_0 = arith.constant 0 : i32
    %c0_i32_1 = arith.constant 0 : i32
    return %arg1, %c0_i32, %c0_i32_0 : i32, i32, i32
  }
  func.func @transform_3(%arg0: i32, %arg1: i32) -> (i32, i32, i32) {
    %c0_i32 = arith.constant 0 : i32
    %c0_i32_0 = arith.constant 0 : i32
    %c0_i32_1 = arith.constant 0 : i32
    return %arg1, %c0_i32, %c0_i32_0 : i32, i32, i32
  }
  func.func @transform_4(%arg0: i32, %arg1: i32) -> (i32, i32, i32) {
    %c0_i32 = arith.constant 0 : i32
    %c0_i32_0 = arith.constant 0 : i32
    %c0_i32_1 = arith.constant 0 : i32
    return %arg1, %c0_i32, %c0_i32_0 : i32, i32, i32
  }
  func.func @transform_5(%arg0: i32, %arg1: i32) -> (i32, i32, i32) {
    %c0_i32 = arith.constant 0 : i32
    %c0_i32_0 = arith.constant 0 : i32
    %c0_i32_1 = arith.constant 0 : i32
    return %arg1, %c0_i32, %c0_i32_0 : i32, i32, i32
  }
  func.func @transform_6(%arg0: i32, %arg1: i32) -> (i32, i32, i32) {
    %c0_i32 = arith.constant 0 : i32
    %c0_i32_0 = arith.constant 0 : i32
    %c0_i32_1 = arith.constant 0 : i32
    return %arg1, %c0_i32, %c0_i32_0 : i32, i32, i32
  }
  func.func @transform_7(%arg0: i32, %arg1: i32) -> (i32, i32, i32) {
    %c0_i32 = arith.constant 0 : i32
    %c0_i32_0 = arith.constant 0 : i32
    %c0_i32_1 = arith.constant 0 : i32
    return %arg1, %c0_i32, %c0_i32_0 : i32, i32, i32
  }
  func.func @transform_8(%arg0: i32, %arg1: i32) -> (i32, i32, i32) {
    %c0_i32 = arith.constant 0 : i32
    %c0_i32_0 = arith.constant 0 : i32
    %c0_i32_1 = arith.constant 0 : i32
    return %arg1, %c0_i32, %c0_i32_0 : i32, i32, i32
  }
  func.func @transform_9(%arg0: i32, %arg1: i32) -> (i32, i32, i32) {
    %c0_i32 = arith.constant 0 : i32
    %c0_i32_0 = arith.constant 0 : i32
    %c0_i32_1 = arith.constant 0 : i32
    return %arg1, %c0_i32, %c0_i32_0 : i32, i32, i32
  }
  func.func @transform_10(%arg0: i32, %arg1: i32) -> (i32, i32, i32) {
    %c0_i32 = arith.constant 0 : i32
    %c0_i32_0 = arith.constant 0 : i32
    %c0_i32_1 = arith.constant 0 : i32
    return %arg1, %c0_i32, %c0_i32_0 : i32, i32, i32
  }
  func.func @transform_11(%arg0: i32, %arg1: i32) -> (i32, i32, i32) {
    %c0_i32 = arith.constant 0 : i32
    %c0_i32_0 = arith.constant 0 : i32
    %c0_i32_1 = arith.constant 0 : i32
    return %arg1, %c0_i32, %c0_i32_0 : i32, i32, i32
  }
  func.func @transform_12(%arg0: i32, %arg1: i32) -> (i32, i32, i32) {
    %c0_i32 = arith.constant 0 : i32
    %c0_i32_0 = arith.constant 0 : i32
    %c0_i32_1 = arith.constant 0 : i32
    return %arg1, %c0_i32, %c0_i32_0 : i32, i32, i32
  }
  func.func @transform_13(%arg0: i32, %arg1: i32) -> (i32, i32, i32) {
    %c0_i32 = arith.constant 0 : i32
    %c0_i32_0 = arith.constant 0 : i32
    %c0_i32_1 = arith.constant 0 : i32
    return %arg1, %c0_i32, %c0_i32_0 : i32, i32, i32
  }
  func.func @transform_14(%arg0: i32, %arg1: i32) -> (i32, i32) {
    %c0_i32 = arith.constant 0 : i32
    %c0_i32_0 = arith.constant 0 : i32
    %c0_i32_1 = arith.constant 0 : i32
    return %c0_i32, %c0_i32_0 : i32, i32
  }
  func.func @transform_15(%arg0: i32, %arg1: i32) -> (i32, i32) {
    %c0_i32 = arith.constant 0 : i32
    %c0_i32_0 = arith.constant 0 : i32
    %c0_i32_1 = arith.constant 0 : i32
    return %c0_i32, %c0_i32_0 : i32, i32
  }
  func.func @transform_16(%arg0: i32, %arg1: i32) -> (i32, i32) {
    %c0_i32 = arith.constant 0 : i32
    %c0_i32_0 = arith.constant 0 : i32
    %c0_i32_1 = arith.constant 0 : i32
    return %c0_i32, %c0_i32_0 : i32, i32
  }
  func.func @transform_17(%arg0: i32, %arg1: i32) -> (i32, i32) {
    %c0_i32 = arith.constant 0 : i32
    %c0_i32_0 = arith.constant 0 : i32
    return %arg0, %c0_i32 : i32, i32
  }
}

</mosaic_0001>

<bundles_post_ra>
// kernel: tpu_custom_call.1
= control target key start
LH: loop header
LB: loop body
LE: loop exit
PB: predicated region body
PF: predicated region fallthrough
CT: control target
= control target key end

     0   :  { %s14653_s0 = inlined_call_operand.vmem [shape: f32[16,8,32], index: 0, kind: input, shape index: {}]   ;;  %s14654_s1 = inlined_call_operand.vmem [shape: f32[16,8], index: 1, kind: input, shape index: {}]   ;;  %s14655_s2 = inlined_call_operand.vmem [shape: f32[2,1,32], index: 2, kind: input, shape index: {}]   ;;  %s14656_s3 = inlined_call_operand.hbm [shape: f32[2,1,32], index: 3, kind: input, shape index: {}]   ;;  %s14657_s4 = inlined_call_operand.vmem [shape: bf16[2,32,96], index: 4, kind: input, shape index: {}]   ;;  %s14658_s5 = inlined_call_operand.hbm [shape: f32[2,1,96], index: 5, kind: input, shape index: {}]   ;;  %s14659_s6 = inlined_call_operand.vmem [shape: bf16[2,32,32], index: 6, kind: input, shape index: {}]   ;;  %s14660_s7 = inlined_call_operand.hbm [shape: f32[2,1,32], index: 7, kind: input, shape index: {}]   ;;  %s14661_s8 = inlined_call_operand.vmem [shape: f32[2,1,32], index: 8, kind: input, shape index: {}]   ;;  %s14662_s9 = inlined_call_operand.vmem [shape: f32[2,1,32], index: 9, kind: input, shape index: {}]   ;;  %s14663_s10 = inlined_call_operand.hbm [shape: bf16[2,32,128], index: 10, kind: input, shape index: {}]   ;;  %s14664_s11 = inlined_call_operand.vmem [shape: f32[2,1,128], index: 11, kind: input, shape index: {}]   ;;  %s14665_s12 = inlined_call_operand.vmem [shape: bf16[2,128,32], index: 12, kind: input, shape index: {}]   ;;  %s14666_s13 = inlined_call_operand.vmem [shape: f32[2,1,32], index: 13, kind: input, shape index: {}]   ;;  %s14667_s14 = inlined_call_operand.vmem [shape: f32[1,32], index: 14, kind: input, shape index: {}]   ;;  %s14668_s15 = inlined_call_operand.vmem [shape: f32[1,32], index: 15, kind: input, shape index: {}]   ;;  %s14669_s16 = inlined_call_operand.vmem [shape: bf16[32,16], index: 16, kind: input, shape index: {}]   ;;  %s14670_s17 = inlined_call_operand.hbm [shape: f32[16,16], index: 17, kind: output, shape index: {}]  }
   0x1   :  { %14719 = sst [smem:[#allocation55_spill]] %s14653_s0 }
   0x2   :  { %14720 = sst [smem:[#allocation56_spill]] %s14654_s1 }
   0x3   :  { %14721 = sst [smem:[#allocation57_spill]] %s14656_s3 }
   0x4   :  { %14722 = sst [smem:[#allocation58_spill]] %s14657_s4 }
   0x5   :  { %14723 = sst [smem:[#allocation59_spill]] %s14658_s5 }
   0x6   :  { %14724 = sst [smem:[#allocation60_spill]] %s14659_s6 }
   0x7   :  { %14725 = sst [smem:[#allocation61_spill]] %s14660_s7 }
   0x8   :  { %14726 = sst [smem:[#allocation62_spill]] %s14661_s8 }
   0x9   :  { %14727 = sst [smem:[#allocation63_spill]] %s14662_s9 }
   0xa   :  { %14728 = sst [smem:[#allocation64_spill]] %s14663_s10 }
   0xb   :  { %14729 = sst [smem:[#allocation65_spill]] %s14664_s11 }
   0xc   :  { %14730 = sst [smem:[#allocation66_spill]] %s14665_s12 }
   0xd   :  { %14731 = sst [smem:[#allocation67_spill]] %s14666_s13 }
   0xe   :  { %14732 = sst [smem:[#allocation68_spill]] %s14667_s14 }
   0xf   :  { %14733 = sst [smem:[#allocation69_spill]] %s14668_s15 }
  0x10   :  { %14734 = sst [smem:[#allocation70_spill]] %s14669_s16 }
  0x11   :  { %14735 = sst [smem:[#allocation71_spill]] %s14670_s17 }
  0x12   :  { %22 = vsyncpa [#allocation4], 0 }
  0x13   :  { %24 = vsyncpa [#allocation4 + $0x1], 0 }
  0x14   :  { %25 = vsyncpa [#allocation7], 0 }
  0x15   :  { %27 = vsyncpa [#allocation7 + $0x1], 0 }
  0x16   :  { %28 = vsyncpa [#allocation10], 0 }
  0x17   :  { %30 = vsyncpa [#allocation10 + $0x1], 0 }
  0x18   :  { %31 = vsyncpa [#allocation5], 0 }
  0x19   :  { %33 = vsyncpa [#allocation5 + $0x1], 0  ;;  %s11812_s24 = smov 0   ;;  %s11814_s25 = smov 0  }
  0x1a   :  { %s11816_s26 = smov 0   ;;  %s11818_s27 = smov 0  }
  0x1b   :  { %s11820_s28 = smov 0   ;;  %s11822_s29 = smov 0  }
  0x1c   :  { %s11824_s0 = smov 0   ;;  %s11826_s30 = smov 0  }
  0x1d   :  { %s11828_s18 = smov 0   ;;  %s11830_s19 = smov 0  }
  0x1e   :  { %s11832_s1 = smov 0  }
  0x1f LB: > { %14736 = sst [smem:[#allocation16_spill]] %s11658_s24  ;;  %s11866_s20 = sadd.s32 4294967295, %s11698_s1   ;;  %s11698_s1 = sphi %s11832_s1, %s39_s1   ;;  %s11694_s19 = sphi %s11830_s19, %s14873_s19   ;;  %s11690_s18 = sphi %s11828_s18, %s14872_s18   ;;  %s11686_s30 = sphi %s11826_s30, %s14871_s30   ;;  %s11682_s0 = sphi %s11824_s0, %s14870_s0   ;;  %s11678_s29 = sphi %s11822_s29, %s14869_s29   ;;  %s11674_s28 = sphi %s11820_s28, %s14868_s28   ;;  %s11670_s27 = sphi %s11818_s27, %s14867_s27   ;;  %s11666_s26 = sphi %s11816_s26, %s14866_s26   ;;  %s11662_s25 = sphi %s11814_s25, %s14865_s25   ;;  %s11658_s24 = sphi %s11812_s24, %s14864_s24  }
  0x20   : > { %14737 = sst [smem:[#allocation17_spill]] %s11662_s25  ;;  %s10237_s21 = sadd.s32 4294967294, %s11698_s1  }
  0x21   : > { %14738 = sst [smem:[#allocation18_spill]] %s11666_s26  ;;  %s48_s22 = sadd.s32 1, %s11690_s18 }
  0x22   : > { %14739 = sst [smem:[#allocation19_spill]] %s11674_s28  ;;  %s51_s23 = sadd.s32 1, %s11694_s19 }
  0x23   : > { %14740 = sst [smem:[#allocation20_spill]] %s11678_s29  ;;  %p49_p0 = scmp.ge.s32.totalorder %s48_s22, 2 }
  0x24   : > { %14741 = sst [smem:[#allocation21_spill]] %s11686_s30  ;;  %s136_s17 = sadd.s32 1, %s11678_s29 }
  0x25   : > { %14742 = sst [smem:[#allocation22_spill]] %s11690_s18  ;;  %p143_p1 = scmp.ne.s32.totalorder %s11678_s29, %s11674_s28 }
  0x26   : > { %14743 = sst [smem:[#allocation23_spill]] %s11694_s19  ;;  %p144_p2 = scmp.eq.s32.totalorder %s11698_s1, 0 }
  0x27   : > { %14744 = sst [smem:[#allocation24_spill]] %s11698_s1  ;;  %s14875_s22 = smov (%p49_p0, %s48_s22), 0 }
  0x28   : > { %14745 = sst [smem:[#allocation25_spill]] %s14875_s22  ;;  %s14877_s23 = smov (!%p49_p0, %s51_s23), %s11694_s19 }
  0x29   : > { %s133_s15 = ssub.s32 %s11690_s18, %s14875_s22  ;;  %p11880_p3 = por %p144_p2, %p143_p1 }
  0x2a   : > { %p53_p4 = scmp.ge.s32.totalorder %s14877_s23, 2  ;;  %p134_p5 = scmp.eq.s32.totalorder %s133_s15, 0 }
  0x2b   : > { %p149_p6 = scmp.ne.s32.totalorder %s11674_s28, %s11670_s27  ;;  %p150_p7 = scmp.eq.s32.totalorder %s11866_s20, 0 }
  0x2c   : > { %s14879_s23 = smov (%p53_p4, %s14877_s23), 0  ;;  %s485_s12 = sadd.s32 1, %s11666_s26 }
  0x2d   : > { %14747 = sst [smem:[#allocation26_spill]] %s14879_s23  ;;  %p11891_p8 = por %p150_p7, %p149_p6 }
  0x2e   : > { %s11889_s16 = scalar_select %p134_p5, %s11678_s29, %s136_s17  }
  0x2f   : > { %s14749_s22 = scalar_select %p11891_p8, 1, 0 }
  0x30   : > { %14748 = sst [smem:[#allocation27_spill]] %s11889_s16  ;;  %s482_s13 = ssub.s32 %s11694_s19, %s14879_s23 }
  0x31   : > { %p483_p9 = scmp.eq.s32.totalorder %s482_s13, 0  ;;  %p495_p10 = scmp.ne.s32.totalorder %s11666_s26, %s11662_s25 }
  0x32   : > { %p496_p11 = scmp.eq.s32.totalorder %s11866_s20, 3  ;;  %p501_p13 = scmp.ne.s32.totalorder %s11662_s25, %s11658_s24 }
  0x33   : > { %s11902_s15 = scalar_select %p483_p9, %s11666_s26, %s485_s12  }
  0x34   : > { %p11904_p12 = por %p496_p11, %p495_p10  ;;  %p502_p0 = scmp.eq.s32.totalorder %s10237_s21, 3 }
  0x35   : > { %14750 = sst [smem:[#allocation28_spill]] %s11902_s15  ;;  %p11079_p1 = scmp.lt.s32.totalorder %s11698_s1, 4 }
  0x36   : > { %s14751_s27 = scalar_select %p11904_p12, 1, 0 }
  0x37   : > { %s11912_s17 = sand.u32 1, %s11678_s29   ;;  %p11914_p2 = por %p502_p0, %p501_p13 }
  0x38   : > { %14752 = sst [smem:[#allocation29_spill]] %s14751_s27  ;;  %s11919_s13 = sshll.u32 %s11690_s18, 4 }
  0x39   : > { %s14753_s23 = scalar_select %p11914_p2, 1, 0 }
  0x3a   : > { %p11923_p4 = pnand %p11079_p1, %p11880_p3  ;;  %s578_s19 = sand.u32 1, %s11698_s1  }
  0x3b   : > { %14754 = sst [smem:[#allocation30_spill]] %s14753_s23  ;;  %s14756_s5 = sld [smem:[#allocation59_spill]] }
  0x3c   : > { %s14755_s12 = scalar_select %p11923_p4, 1, 0 }
  0x3d   : > { %s581_s15 = scalar_lea.vmem [#allocation6], %s11912_s17  ;;  %s11939_s14 = scalar_lea.sflag [#allocation7], %s578_s19 }
  0x3e   : > { %s588_s26 = sshll.u32 %s581_s15, 4  ;;  %p11945_p7 = pneg %p11923_p4  ;;  %s11936_s26 = int_to_ptr.vmem [resolvable:$true] %s588_s26 }
  0x41   : > { %s11932_s29 = scalar_lea.hbm %s14756_s5, %s11919_s13  ;;  %s11453_s15 = scalar_lea.hbm %s14756_s5, 32 }
  0x42   : > { %s11448_s23 = scalar_lea.hbm %s11932_s29, 16  ;;  %p11454_p11 = scmp.lt.u32.totalorder %s11932_s29, %s14756_s5 }
  0x43   : > { %p11449_p6 = scmp.ne.s32.totalorder %s11932_s29, %s11448_s23  ;;  %p11455_p13 = scmp.lt.u32.totalorder %s11453_s15, %s11448_s23 }
  0x44   : > { %p11457_p1 = scmp.lt.u32.totalorder %s11448_s23, %s11932_s29 }
  0x45   : > { %p11451_p9 = pnand %p11945_p7, %p11449_p6  ;;  %p11456_p0 = por %p11455_p13, %p11454_p11 }
  0x47   : > { %p11452_p10 = pneg %p11451_p9  ;;  %p11458_p5 = por %p11457_p1, %p11456_p0 }
  0x49   : > { %p11459_p3 = pnand %p11458_p5, %p11452_p10 }
  0x4b   : > { %11462 = shalt.err (!%p11459_p3)
}
  0x4c   : > { %s11463_s19 = scalar_lea.vmem %s11936_s26, 16  ;;  %s11700_s16 = smov [#allocation6]  }
  0x4d   : > { %p11464_p6 = scmp.ne.s32.totalorder %s11936_s26, %s11463_s19  ;;  %s11468_s21 = sshll.u32 %s11700_s16, 4  ;;  %s11469_s21 = int_to_ptr.vmem [resolvable:$false] %s11468_s21 }
  0x4e   : > { %s11470_s11 = scalar_lea.vmem %s11469_s21, 32  ;;  %p11471_p12 = scmp.lt.s32.totalorder %s11936_s26, %s11469_s21 }
  0x4f   : > { %p11466_p9 = pnand %p11464_p6, %p11945_p7  ;;  %p11472_p8 = scmp.lt.s32.totalorder %s11470_s11, %s11463_s19 }
  0x51   : > { %p11467_p2 = pneg %p11466_p9  ;;  %p11473_p11 = por %p11472_p8, %p11471_p12 }
  0x53   : > { %p11474_p13 = pnand %p11473_p11, %p11467_p2 }
  0x55   : > { %11477 = shalt.err (!%p11474_p13)
}
  0x56   : > { %11068 = dma.hbm_to_vmem [thread:$0]  (!%p11923_p4), %s11932_s29, 16, %s11936_s26, %s11939_s14  }
  0x57   : > { %p14758_p5 = scmp.lt.s32.totalorder %s11698_s1, 5  ;;  %p14759_p3 = scmp.ge.s32.totalorder %s11698_s1, 1 }
  0x58   : > { %s14761_s3 = sld [smem:[#allocation57_spill]]  ;;  %s556_s16 = scalar_lea.vmem [#allocation3], %s11912_s17 }
  0x59   : > { %p11973_p10 = pnand %p14759_p3, %p14758_p5  ;;  %s563_s21 = sshll.u32 %s556_s16, 4  ;;  %s11984_s21 = int_to_ptr.vmem [resolvable:$true] %s563_s21 }
  0x5a   : > { %s14762_s7 = sld [smem:[#allocation61_spill]]  ;;  %s554_s5 = scalar_lea.sflag [#allocation4], %s11912_s17 }
  0x5b   : > { %s14760_s23 = scalar_select %p11973_p10, 1, 0 }
  0x5e   : > { %s11981_s19 = scalar_lea.hbm %s14761_s3, %s11919_s13  ;;  %s11483_s9 = scalar_lea.hbm %s14761_s3, 32 }
  0x5f   : > { %s11478_s1 = scalar_lea.hbm %s11981_s19, 16  ;;  %p11484_p0 = scmp.lt.u32.totalorder %s11981_s19, %s14761_s3 }
  0x60   : > { %s11990_s11 = scalar_lea.hbm %s14762_s7, %s11919_s13  ;;  %p11479_p8 = scmp.ne.s32.totalorder %s11981_s19, %s11478_s1 }
  0x61   : > { %p11485_p1 = scmp.lt.u32.totalorder %s11483_s9, %s11478_s1  ;;  %p11487_p9 = scmp.lt.u32.totalorder %s11478_s1, %s11981_s19 }
  0x62   : > { %p11481_p12 = pnand %p11479_p8, %p11945_p7 }
  0x63   : > { %p11486_p6 = por %p11485_p1, %p11484_p0 }
  0x64   : > { %p11482_p2 = pneg %p11481_p12 }
  0x65   : > { %p11488_p11 = por %p11487_p9, %p11486_p6 }
  0x67   : > { %p11489_p13 = pnand %p11488_p11, %p11482_p2 }
  0x69   : > { %11492 = shalt.err (!%p11489_p13)
}
  0x6a   : > { %s11493_s13 = scalar_lea.vmem %s11984_s21, 16  ;;  %s11701_s16 = smov [#allocation3]  }
  0x6b   : > { %p11494_p5 = scmp.ne.s32.totalorder %s11984_s21, %s11493_s13  ;;  %s11498_s26 = sshll.u32 %s11701_s16, 4  ;;  %s11499_s26 = int_to_ptr.vmem [resolvable:$false] %s11498_s26 }
  0x6c   : > { %s11500_s6 = scalar_lea.vmem %s11499_s26, 32  ;;  %p11501_p12 = scmp.lt.s32.totalorder %s11984_s21, %s11499_s26 }
  0x6d   : > { %p11496_p3 = pnand %p11494_p5, %p11945_p7  ;;  %p11502_p10 = scmp.lt.s32.totalorder %s11500_s6, %s11493_s13 }
  0x6f   : > { %p11497_p8 = pneg %p11496_p3  ;;  %p11503_p0 = por %p11502_p10, %p11501_p12 }
  0x71   : > { %p11504_p1 = pnand %p11503_p0, %p11497_p8 }
  0x73   : > { %11507 = shalt.err (!%p11504_p1)
}
  0x74   : > { %11065 = dma.hbm_to_vmem [thread:$0]  (!%p11923_p4), %s11981_s19, 16, %s11984_s21, %s554_s5  }
  0x75   : > { %s606_s8 = scalar_lea.vmem [#allocation8], %s11912_s17  ;;  %s10243_s1 = sshll.u32 %s11912_s17, 4 }
  0x76   : > { %s613_s9 = sshll.u32 %s606_s8, 4  ;;  %s11508_s29 = scalar_lea.hbm %s11990_s11, 16  ;;  %s614_s9 = int_to_ptr.vmem [resolvable:$true] %s613_s9 }
  0x77   : > { %p11509_p10 = scmp.ne.s32.totalorder %s11990_s11, %s11508_s29  ;;  %s11513_s13 = scalar_lea.hbm %s14762_s7, 32 }
  0x78   : > { %p11514_p9 = scmp.lt.u32.totalorder %s11990_s11, %s14762_s7  ;;  %p11515_p11 = scmp.lt.u32.totalorder %s11513_s13, %s11508_s29 }
  0x79   : > { %p11511_p2 = pnand %p11509_p10, %p11945_p7  ;;  %p11517_p5 = scmp.lt.u32.totalorder %s11508_s29, %s11990_s11 }
  0x7a   : > { %p11516_p13 = por %p11515_p11, %p11514_p9 }
  0x7b   : > { %p11512_p6 = pneg %p11511_p2 }
  0x7c   : > { %p11518_p3 = por %p11517_p5, %p11516_p13 }
  0x7e   : > { %p11519_p8 = pnand %p11518_p3, %p11512_p6 }
  0x80   : > { %11522 = shalt.err (!%p11519_p8)
}
  0x81   : > { %s11523_s5 = scalar_lea.vmem %s614_s9, 16  ;;  %s11702_s19 = smov [#allocation8]  }
  0x82   : > { %p11524_p12 = scmp.ne.s32.totalorder %s614_s9, %s11523_s5  ;;  %s11528_s21 = sshll.u32 %s11702_s19, 4  ;;  %s11529_s21 = int_to_ptr.vmem [resolvable:$false] %s11528_s21 }
  0x83   : > { %s11530_s6 = scalar_lea.vmem %s11529_s21, 32  ;;  %p11531_p10 = scmp.lt.s32.totalorder %s614_s9, %s11529_s21 }
  0x84   : > { %p11526_p0 = pnand %p11524_p12, %p11945_p7  ;;  %p11532_p2 = scmp.lt.s32.totalorder %s11530_s6, %s11523_s5 }
  0x86   : > { %p11527_p1 = pneg %p11526_p0  ;;  %p11533_p4 = por %p11532_p2, %p11531_p10 }
  0x88   : > { %p11534_p9 = pnand %p11533_p4, %p11527_p1 }
  0x8a   : > { %11537 = shalt.err (!%p11534_p9)
}
  0x8b   : > { %p14763_p11 = scmp.ne.s32.totalorder %s14755_s12, 0  ;;  %s10435_s8 = sshll.u32 %s11690_s18, 8 }
  0x8c   : > { %s14764_s10 = sld [smem:[#allocation64_spill]]  ;;  %s636_s13 = scalar_lea.vmem [#allocation9], %s10243_s1 }
  0x8d   : > { %11071 = dma.hbm_to_vmem [thread:$0]  (!%p14763_p11), %s11990_s11, 16, %s614_s9, %s11939_s14  }
  0x8e   : > { %s643_s16 = sshll.u32 %s636_s13, 4  ;;  %s633_s26 = scalar_lea.sflag [#allocation10], %s11912_s17  ;;  %s12042_s16 = int_to_ptr.vmem [resolvable:$true] %s643_s16 }
  0x92   : > { %s12038_s15 = scalar_lea.hbm %s14764_s10, %s10435_s8  ;;  %s11543_s9 = scalar_lea.hbm %s14764_s10, 512 }
  0x93   : > { %s11538_s5 = scalar_lea.hbm %s12038_s15, 256  ;;  %p11544_p5 = scmp.lt.u32.totalorder %s12038_s15, %s14764_s10 }
  0x94   : > { %p11539_p4 = scmp.ne.s32.totalorder %s12038_s15, %s11538_s5  ;;  %p11545_p3 = scmp.lt.u32.totalorder %s11543_s9, %s11538_s5 }
  0x95   : > { %p11547_p12 = scmp.lt.u32.totalorder %s11538_s5, %s12038_s15 }
  0x96   : > { %p11541_p6 = pnand %p11539_p4, %p11945_p7  ;;  %p11546_p8 = por %p11545_p3, %p11544_p5 }
  0x98   : > { %p11542_p13 = pneg %p11541_p6  ;;  %p11548_p0 = por %p11547_p12, %p11546_p8 }
  0x9a   : > { %p11549_p1 = pnand %p11548_p0, %p11542_p13 }
  0x9c   : > { %11552 = shalt.err (!%p11549_p1)
}
  0x9d   : > { %s11553_s1 = scalar_lea.vmem %s12042_s16, 256  ;;  %s11703_s6 = smov [#allocation9]  }
  0x9e   : > { %p11554_p10 = scmp.ne.s32.totalorder %s12042_s16, %s11553_s1  ;;  %s11558_s8 = sshll.u32 %s11703_s6, 4  ;;  %s11559_s8 = int_to_ptr.vmem [resolvable:$false] %s11558_s8 }
  0x9f   : > { %s11560_s29 = scalar_lea.vmem %s11559_s8, 512  ;;  %p11561_p4 = scmp.lt.s32.totalorder %s12042_s16, %s11559_s8 }
  0xa0   : > { %p11556_p2 = pnand %p11554_p10, %p11945_p7  ;;  %p11562_p6 = scmp.lt.s32.totalorder %s11560_s29, %s11553_s1 }
  0xa2   : > { %p11557_p9 = pneg %p11556_p2  ;;  %p11563_p5 = por %p11562_p6, %p11561_p4 }
  0xa4   : > { %p11564_p3 = pnand %p11563_p5, %p11557_p9 }
  0xa6   : > { %11567 = shalt.err (!%p11564_p3)
}
  0xa7   : > { %s11704_s27 = smov 64   ;;  %s11705_s13 = smov 4  }
  0xa8   : > { %11074 = dma.hbm_to_vmem [thread:$0]  (!%p14763_p11), %s12038_s15, 256, %s12042_s16, %s633_s26, %s11704_s27, %s11704_s27, %s11705_s13  }
  0xa9   : > { %p14765_p7 = scmp.ne.s32.totalorder %s14760_s23, 0 }
  0xab   : > { %675 = sbr.rel (%p14765_p7) target bundleno = 3936 (0xf60), region = 88 }
  0xb2   : > { %s12071_s24 = sand.u32 1, %s11674_s28   ;;  %p14766_p13 = scmp.ne.s32.totalorder %s14749_s22, 0 }
  0xb3   : > { %s678_s5 = scalar_lea.sflag [#allocation4], %s12071_s24 }
  0xb4   : > { %11641 = dma.done.wait (%p14766_p13), %s678_s5, 16  }
  0xb5   : > { %11643 = vsyncadd (%p14766_p13), %s678_s5, 4294967280  ;;  %s685_s17 = sand.u32 1, %s11866_s20  }
  0xb6   : > { %s686_s12 = scalar_lea.sflag [#allocation7], %s685_s17 }
  0xb7   : > { %11645 = dma.done.wait (%p14766_p13), %s686_s12, 32  }
  0xb8   : > { %11647 = vsyncadd (%p14766_p13), %s686_s12, 4294967264  ;;  %s10247_s15 = sshll.u32 %s12071_s24, 4  ;;  %s702_s26 = scalar_lea.sflag [#allocation10], %s12071_s24 }
  0xb9   : > { %s12088_s11 = scalar_lea.vmem [#allocation9], %s10247_s15 }
  0xba   : > { %11649 = dma.done.wait (%p14766_p13), %s702_s26, 256  }
  0xbb   : > { %11651 = vsyncadd (%p14766_p13), %s702_s26, 4294967040  ;;  %s14688_s20 = sand.u32 1, %s11662_s25   ;;  %s10249_s9 = sshll.u32 %s11686_s30, 3 }
  0xbc   : > { %s12098_s19 = sshll.u32 %s14688_s20, 3  ;;  %p808_p11 = scmp.lt.s32.totalorder %s10249_s9, 15 }
  0xbd   : > { %p813_p8 = scmp.lt.s32.totalorder %s11686_s30, 1  ;;  %p817_p12 = scmp.lt.s32.totalorder %s11682_s0, 1 }
  0xbe   : > { %s14881_s9 = smov (!%p808_p11, %s10249_s9), 15  ;;  %s14767_s8 = sld [smem:[#allocation55_spill]] }
  0xbf   : > { %s814_s21 = scalar_select %p813_p8, %s11686_s30, 1 }
  0xc0   : > { %s10250_s1 = sshll.u32 %s14881_s9, 3  ;;  %s14768_s17 = sld [smem:[#allocation56_spill]] }
  0xc1   : > { %s10251_s27 = sshll.u32 %s814_s21, 3  ;;  %s14769_s4 = sld [smem:[#allocation58_spill]] }
  0xc2   : > { %s12114_s15 = scalar_select %p817_p12, %s11682_s0, 1 }
  0xc3   : > { %s14770_s13 = sld [smem:[#allocation60_spill]]  ;;  %s14771_s26 = sld [smem:[#allocation62_spill]] }
  0xc4   : > { %s12106_s29 = scalar_lea.vmem %s14767_s8, %s10250_s1  ;;  %s10436_s1 = sshll.u32 %s12114_s15, 4 }
  0xc5   : > { %s14772_s3 = sld [smem:[#allocation63_spill]]  ;;  %s14773_s18 = sld [smem:[#allocation65_spill]] }
  0xc6   : > { %s12111_s12 = scalar_lea.vmem %s14768_s17, %s10251_s27  ;;  %s10438_s21 = sshll.u32 %s12114_s15, 6 }
  0xc7   : > { %s12124_s6 = scalar_lea.vmem %s14769_s4, %s10436_s1  ;;  %s14774_s25 = sld [smem:[#allocation66_spill]] }
  0xc8   : > { %s14775_s27 = sld [smem:[#allocation67_spill]]  ;;  %s806_s17 = scalar_lea.vmem [#allocation11], %s12098_s19 }
  0xc9   : > { %s12129_s5 = scalar_lea.vmem %s14770_s13, %s10436_s1  ;;  %s832_s16 = scalar_lea.vmem %s14771_s26, %s12114_s15 }
  0xca   : > { %p10258_p0 = scmp.ne.s32.totalorder %s11682_s0, 0 }
  0xcb   : > { %s835_s7 = scalar_lea.vmem %s14772_s3, %s12114_s15  ;;  %s838_s28 = scalar_lea.vmem %s14773_s18, %s12114_s15  ;;  %v854_v0 = vld [vmem:[%s12106_s29] sm:$0xff] (!%p10258_p0)  ;;  %vm862_vm0 = vcmask (!%p10258_p0), 261120   ;;  %v855_v1 = vld [vmem:[%s12106_s29 + $0x8] sm:$0xff] (!%p10258_p0)  ;;  %v856_v2 = vld [vmem:[%s12106_s29 + $0x10] sm:$0xff] (!%p10258_p0) }
  0xcc   : > { %853 = sbr.rel (%p10258_p0) target bundleno = 211 (0xd3), region = 108  ;;  %863 = vst.msk [vmem:[#allocation2] sm:$0xff] (!%p10258_p0), %vm862_vm0, %v854_v0  ;;  %864 = vst.msk [vmem:[#allocation2 + $0x8] sm:$0xff] (!%p10258_p0), %vm862_vm0, %v855_v1  ;;  %v857_v3 = vld [vmem:[%s12106_s29 + $0x18] sm:$0xff] (!%p10258_p0)  ;;  %v858_v4 = vld [vmem:[%s12106_s29 + $0x20] sm:$0xff] (!%p10258_p0) }
  0xcd   : > { %s12147_s30 = scalar_lea.vmem %s14774_s25, %s10438_s21  ;;  %865 = vst.msk [vmem:[#allocation2 + $0x10] sm:$0xff] (!%p10258_p0), %vm862_vm0, %v856_v2  ;;  %v859_v5 = vld [vmem:[%s12106_s29 + $0x28] sm:$0xff] (!%p10258_p0)  ;;  %866 = vst.msk [vmem:[#allocation2 + $0x18] sm:$0xff] (!%p10258_p0), %vm862_vm0, %v857_v3  ;;  %v860_v6 = vld [vmem:[%s12106_s29 + $0x30] sm:$0xff] (!%p10258_p0) }
  0xce   : > { %s846_s13 = scalar_lea.vmem %s14775_s27, %s12114_s15  ;;  %867 = vst.msk [vmem:[#allocation2 + $0x20] sm:$0xff] (!%p10258_p0), %vm862_vm0, %v858_v4  ;;  %868 = vst.msk [vmem:[#allocation2 + $0x28] sm:$0xff] (!%p10258_p0), %vm862_vm0, %v859_v5  ;;  %v861_v7 = vld [vmem:[%s12106_s29 + $0x38] sm:$0xff] (!%p10258_p0) }
  0xcf   : > { %869 = vst.msk [vmem:[#allocation2 + $0x30] sm:$0xff] (!%p10258_p0), %vm862_vm0, %v860_v6  ;;  %870 = vst.msk [vmem:[#allocation2 + $0x38] sm:$0xff] (!%p10258_p0), %vm862_vm0, %v861_v7 }
  0xd3 PF: > { %v871_v8 = vld [vmem:[#allocation2] sm:$0xff]  ;;  %vm881_vm1 = vcmask 261120   ;;  %v872_v10 = vld [vmem:[#allocation2 + $0x8] sm:$0xff]  ;;  %s14776_s10 = scalar_lea.vmem %s14655_s2, %s12114_s15  ;;  %s14777_s25 = scalar_lea.vmem [#allocation3], %s12071_s24  ;;  %vm11711_vm2 = vmmov 0   ;;  %vm4531_vm3 = vcmask 64512  }
  0xd4   : > { %v873_v9 = vld [vmem:[#allocation2 + $0x10] sm:$0xff]  ;;  %v882_v11 = vsel %vm881_vm1, %v871_v8, 0.0  ;;  %v874_v13 = vld [vmem:[#allocation2 + $0x18] sm:$0xff]  ;;  %v885_v16 = vsel %vm881_vm1, %v872_v10, 0.0  ;;  %v11246_v0 = vld [vmem:[%s12124_s6] sm:$0xff]   ;;  %s14778_s18 = scalar_lea.vmem [#allocation6], %s12071_s24 }
  0xd5   : > { %v888_v12 = vsel %vm881_vm1, %v873_v9, 0.0  ;;  %v875_v14 = vld [vmem:[#allocation2 + $0x20] sm:$0xff]  ;;  %v876_v15 = vld [vmem:[#allocation2 + $0x28] sm:$0xff]  ;;  %883 = vadd.xlane.f32.xlu0 %v882_v11  ;;  %v891_v17 = vsel %vm881_vm1, %v874_v13, 0.0  ;;  %10600 = vmatprep.subr.bf16.mxu1 %v11246_v0  ;;  %s11706_s14 = smov 112   ;;  %s11707_s23 = smov 120  }
  0xd6   : > { %889 = vadd.xlane.f32.xlu1 %v888_v12  ;;  %v894_v18 = vsel %vm881_vm1, %v875_v14, 0.0  ;;  %v897_v19 = vsel %vm881_vm1, %v876_v15, 0.0  ;;  %v877_v20 = vld [vmem:[#allocation2 + $0x30] sm:$0xff]  ;;  %v878_v21 = vld [vmem:[#allocation2 + $0x38] sm:$0xff]  ;;  %v11247_v1 = vld [vmem:[%s12124_s6 + $0x8] sm:$0xff]   ;;  %10601 = vmatpush3.bf16.msra.mxu1 %v11246_v0  ;;  %s11708_s29 = smov 104  }
  0xd7   : > { %v900_v22 = vsel %vm881_vm1, %v877_v20, 0.0  ;;  %v903_v23 = vsel %vm881_vm1, %v878_v21, 0.0  ;;  %10602 = vmatprep.subr.bf16.mxu1 %v11247_v1  ;;  %s11709_s9 = smov 96   ;;  %s11715_s6 = smov 64   ;;  %vm6391_vm5 = vcmask 1043456   ;;  %vm9053_vm6 = vcmask 130048  }
  0xd8   : > { %s11716_s20 = smov 16   ;;  %s11717_s26 = smov 8   ;;  %vm9062_vm7 = vcmask 195584  }
  0xd9   : > { %886 = vadd.xlane.f32.xlu0 %v885_v16  ;;  %s11718_s21 = smov 24   ;;  %p10425_p1 = scmp.ne.s32.totalorder %s11682_s0, 1 }
  0xda   : > { %892 = vadd.xlane.f32.xlu1 %v891_v17  ;;  %10603 = vmatpush3.bf16.msra.mxu1 %v11247_v1  ;;  %vm9748_vm8 = vcmask (!%p10425_p1), 1041409   ;;  %vm9750_vm9 = vcmask (!%p10425_p1), 1042434   ;;  %vm9752_vm10 = vcmask (!%p10425_p1), 1043459   ;;  %vm9754_vm11 = vcmask (!%p10425_p1), 1044484   ;;  %s14851_s15 = sld [smem:[#allocation70_spill]] (!%p10425_p1) }
  0xdb   : > { %vm9756_vm12 = vcmask (!%p10425_p1), 1045509   ;;  %vm9758_vm13 = vcmask (!%p10425_p1), 1046534   ;;  %vm9760_vm14 = vcmask (!%p10425_p1), 1047559   ;;  %vm11720_vm15 = vmmov (!%p10425_p1), 0  }
  0xdd   : > { %895 = vadd.xlane.f32.xlu0 %v894_v18 }
  0xde   : > { %898 = vadd.xlane.f32.xlu1 %v897_v19 }
  0xe1   : > { %901 = vadd.xlane.f32.xlu0 %v900_v22 }
  0xe2   : > { %904 = vadd.xlane.f32.xlu1 %v903_v23 }
 0x162   : > { %v884_v24 = vpop.xlane.xlu0 %883 }
 0x163   : > { %v890_v25 = vpop.xlane.xlu1 %889  ;;  %v907_v26 = vmul.f32 0.03125, %v884_v24 }
 0x164   : > { %v909_v27 = vmul.f32 0.03125, %v890_v25 }
 0x165   : > { %v12171_v28 = vsub.f32 %v871_v8, %v907_v26 }
 0x166   : > { %v12173_v29 = vsub.f32 %v873_v9, %v909_v27  ;;  %v887_v30 = vpop.xlane.xlu0 %886  ;;  %v10259_v27 = vld [vmem:[%s14776_s10] ss:$0 sm:$0xff] }
 0x167   : > { %v893_v31 = vpop.xlane.xlu1 %892  ;;  %v908_v32 = vmul.f32 0.03125, %v887_v30  ;;  %v923_v34 = vmul.f32 %v12171_v28, %v12171_v28 }
 0x168   : > { %v910_v33 = vmul.f32 0.03125, %v893_v31  ;;  %v925_v35 = vmul.f32 %v12173_v29, %v12173_v29 }
 0x169   : > { %v12179_v36 = vsub.f32 %v872_v10, %v908_v32  ;;  %v931_v38 = vsel %vm881_vm1, %v923_v34, 0.0 }
 0x16a   : > { %v12181_v37 = vsub.f32 %v874_v13, %v910_v33  ;;  %932 = vadd.xlane.f32.xlu0 %v931_v38  ;;  %v896_v39 = vpop.xlane.xlu0 %895  ;;  %v937_v41 = vsel %vm881_vm1, %v925_v35, 0.0  ;;  %v10260_v35 = vld [vmem:[%s14777_s25] ss:$0 sm:$0xff] }
 0x16b   : > { %v899_v40 = vpop.xlane.xlu1 %898  ;;  %v911_v42 = vmul.f32 0.03125, %v896_v39  ;;  %v924_v44 = vmul.f32 %v12179_v36, %v12179_v36 }
 0x16c   : > { %v912_v43 = vmul.f32 0.03125, %v899_v40  ;;  %v926_v45 = vmul.f32 %v12181_v37, %v12181_v37 }
 0x16d   : > { %v12189_v46 = vsub.f32 %v875_v14, %v911_v42  ;;  %v934_v48 = vsel %vm881_vm1, %v924_v44, 0.0 }
 0x16e   : > { %v12191_v47 = vsub.f32 %v876_v15, %v912_v43  ;;  %938 = vadd.xlane.f32.xlu0 %v937_v41  ;;  %935 = vadd.xlane.f32.xlu1 %v934_v48  ;;  %v902_v49 = vpop.xlane.xlu0 %901  ;;  %v940_v51 = vsel %vm881_vm1, %v926_v45, 0.0 }
 0x16f   : > { %v905_v50 = vpop.xlane.xlu1 %904  ;;  %v913_v52 = vmul.f32 0.03125, %v902_v49  ;;  %v927_v54 = vmul.f32 %v12189_v46, %v12189_v46 }
 0x170   : > { %v914_v53 = vmul.f32 0.03125, %v905_v50  ;;  %v928_v55 = vmul.f32 %v12191_v47, %v12191_v47 }
 0x171   : > { %v12199_v56 = vsub.f32 %v877_v20, %v913_v52  ;;  %v943_v58 = vsel %vm881_vm1, %v927_v54, 0.0 }
 0x172   : > { %v12201_v57 = vsub.f32 %v878_v21, %v914_v53  ;;  %941 = vadd.xlane.f32.xlu1 %v940_v51  ;;  %944 = vadd.xlane.f32.xlu0 %v943_v58  ;;  %v946_v59 = vsel %vm881_vm1, %v928_v55, 0.0 }
 0x173   : > { %v929_v60 = vmul.f32 %v12199_v56, %v12199_v56 }
 0x174   : > { %v930_v61 = vmul.f32 %v12201_v57, %v12201_v57 }
 0x175   : > { %v949_v62 = vsel %vm881_vm1, %v929_v60, 0.0 }
 0x176   : > { %947 = vadd.xlane.f32.xlu1 %v946_v59  ;;  %950 = vadd.xlane.f32.xlu0 %v949_v62  ;;  %v952_v63 = vsel %vm881_vm1, %v930_v61, 0.0 }
 0x17a   : > { %953 = vadd.xlane.f32.xlu1 %v952_v63 }
 0x1f7   : > { %v933_v2 = vpop.xlane.xlu0 %932 }
 0x1f8   : > { %v955_v3 = vmul.f32 0.03125, %v933_v2 }
 0x1fa   : > { %v963_v4 = vadd.f32 1e-05, %v955_v3 }
 0x1fb   : > { %v936_v5 = vpop.xlane.xlu1 %935  ;;  %v939_v6 = vpop.xlane.xlu0 %938 }
 0x1fc   : > { %11260 = vrsqrt.f32 %v963_v4  ;;  %v956_v7 = vmul.f32 0.03125, %v936_v5  ;;  %v957_v8 = vmul.f32 0.03125, %v939_v6 }
 0x1fe   : > { %v964_v9 = vadd.f32 1e-05, %v956_v7  ;;  %v965_v10 = vadd.f32 1e-05, %v957_v8 }
 0x1ff   : > { %v942_v11 = vpop.xlane.xlu1 %941  ;;  %v945_v12 = vpop.xlane.xlu0 %944 }
 0x200   : > { %11262 = vrsqrt.f32 %v964_v9  ;;  %v958_v13 = vmul.f32 0.03125, %v942_v11  ;;  %v959_v14 = vmul.f32 0.03125, %v945_v12 }
 0x201   : > { %11264 = vrsqrt.f32 %v965_v10 }
 0x202   : > { %v966_v15 = vadd.f32 1e-05, %v958_v13  ;;  %v967_v16 = vadd.f32 1e-05, %v959_v14 }
 0x203   : > { %v948_v17 = vpop.xlane.xlu1 %947  ;;  %v951_v18 = vpop.xlane.xlu0 %950 }
 0x204   : > { %11266 = vrsqrt.f32 %v966_v15  ;;  %v960_v19 = vmul.f32 0.03125, %v948_v17  ;;  %v961_v20 = vmul.f32 0.03125, %v951_v18 }
 0x205   : > { %11268 = vrsqrt.f32 %v967_v16 }
 0x206   : > { %v11261_v21 = vpop.eup %11260  ;;  %v968_v22 = vadd.f32 1e-05, %v960_v19  ;;  %v969_v23 = vadd.f32 1e-05, %v961_v20 }
 0x207   : > { %v954_v24 = vpop.xlane.xlu1 %953  ;;  %v979_v25 = vmul.f32 %v11261_v21, %v12171_v28 }
 0x208   : > { %11270 = vrsqrt.f32 %v968_v22  ;;  %v962_v26 = vmul.f32 0.03125, %v954_v24 }
 0x209   : > { %11272 = vrsqrt.f32 %v969_v23  ;;  %v993_v34 = vmul.f32 %v10259_v27, %v979_v25 }
 0x20a   : > { %v11263_v30 = vpop.eup %11262  ;;  %v970_v31 = vadd.f32 1e-05, %v962_v26 }
 0x20b   : > { %v11265_v32 = vpop.eup %11264  ;;  %v980_v33 = vmul.f32 %v11263_v30, %v12179_v36  ;;  %v1007_v41 = vadd.f32 %v10260_v35, %v993_v34 }
 0x20c   : > { %11274 = vrsqrt.f32 %v970_v31  ;;  %v981_v38 = vmul.f32 %v11265_v32, %v12173_v29 }
 0x20d   : > { %v994_v28 = vmul.f32 %v10259_v27, %v980_v33 }
 0x20e   : > { %v11267_v39 = vpop.eup %11266  ;;  %v995_v44 = vmul.f32 %v10259_v27, %v981_v38 }
 0x20f   : > { %v11269_v40 = vpop.eup %11268  ;;  %v1008_v42 = vadd.f32 %v10260_v35, %v994_v28  ;;  %v982_v43 = vmul.f32 %v11267_v39, %v12181_v37 }
 0x210   : > { %v983_v45 = vmul.f32 %v11269_v40, %v12189_v46  ;;  %v1009_v51 = vadd.f32 %v10260_v35, %v995_v44  ;;  %v11712_v44 = vmov 1983009808  }
 0x211   : > { %v1015_v48 = vpack.c.bf16 %v1008_v42, %v1007_v41  ;;  %v996_v49 = vmul.f32 %v10259_v27, %v982_v43  ;;  %v14694_v41 = vmov 0.0  }
 0x212   : > { %v11271_v50 = vpop.eup %11270  ;;  %v997_v53 = vmul.f32 %v10259_v27, %v983_v45  ;;  %10612 = vmatprep.subr.bf16.mxu1 %v14694_v41  ;;  %10624 = vmatprep.subr.bf16.mxu0 %v14694_v41  ;;  %v1231_v45 = vunpack.c.l.s4 %v11712_v44 }
 0x213   : > { %v11273_v36 = vpop.eup %11272  ;;  %10604 = vmatprep.mubr.msk.bf16.mxu1 %vm881_vm1, %v1015_v48  ;;  %v1010_v52 = vadd.f32 %v10260_v35, %v996_v49  ;;  %v984_v29 = vmul.f32 %v11271_v50, %v12191_v47  ;;  %10626 = vmatprep.mubr.msk.bf16.mxu0 %vm11711_vm2, %v14694_v41  ;;  %v14693_v48 = vlaneseq }
 0x214   : > { %v985_v54 = vmul.f32 %v11273_v36, %v12199_v56  ;;  %v1011_v46 = vadd.f32 %v10260_v35, %v997_v53  ;;  %v10261_v56 = vld [vmem:[%s14778_s18] ss:$0 sm:$0xff]  ;;  %v1232_v36 = vunpack.c.0.s8 %v1231_v45  ;;  %v11713_v53 = vmov 1934713408  }
 0x215   : > { %v1016_v55 = vpack.c.bf16 %v1010_v52, %v1009_v51  ;;  %v998_v58 = vmul.f32 %v10259_v27, %v984_v29  ;;  %v12323_v51 = vshrl.u32 %v14693_v48, 7 }
 0x216   : > { %v11275_v37 = vpop.eup %11274  ;;  %v999_v61 = vmul.f32 %v10259_v27, %v985_v54  ;;  %v1262_v54 = vunpack.c.l.s4 %v11713_v53 }
 0x217   : > { %10605 = vmatmul.mubr.msk.bf16.vlgmr.msra.gmra.mrb[0].mxu1 %vm881_vm1, %v1016_v55  ;;  %v1012_v59 = vadd.f32 %v10260_v35, %v998_v58  ;;  %v986_v60 = vmul.f32 %v11275_v37, %v12201_v57  ;;  %14779 = vst [vmem:[#allocation31_spill] sm:$0xff] %v12323_v51 }
 0x218   : > { %v1013_v0 = vadd.f32 %v10260_v35, %v999_v61 }
 0x219   : > { %v1017_v62 = vpack.c.bf16 %v1012_v59, %v1011_v46  ;;  %v1000_v63 = vmul.f32 %v10259_v27, %v986_v60  ;;  %v12326_v59 = vsub.s32 %v1232_v36, %v12323_v51 }
 0x21b   : > { %10608 = vmatprep.mubr.msk.bf16.mxu1 %vm881_vm1, %v1017_v62  ;;  %v1014_v47 = vadd.f32 %v10260_v35, %v1000_v63 }
 0x21d   : > { %v1018_v1 = vpack.c.bf16 %v1014_v47, %v1013_v0  ;;  %v1263_v47 = vunpack.c.0.s8 %v1262_v54 }
 0x21f   : > { %10609 = vmatmul.mubr.msk.bf16.gmra.mrb[4].mxu1 %vm881_vm1, %v1018_v1 }
 0x220   : > { %10614 = vmatprep.mubr.msk.bf16.mxu1 %vm11711_vm2, %v14694_v41 }
 0x2ea   : > { %v10606_v2 = vpop.f32.mrb[0].mxu1 }
 0x2eb   : > { %v1097_v3 = vadd.f32 %v10606_v2, %v10261_v56  ;;  %v1088_v4 = vpop.f32.mrb[1].mxu1  ;;  %v14696_v2 = vmov 0  }
 0x2ec   : > { %v1089_v5 = vadd.f32 %v10261_v56, %v1088_v4  ;;  %v10607_v6 = vpop.f32.mrb[2].mxu1 }
 0x2ed   : > { %v1100_v7 = vadd.f32 %v10607_v6, %v10261_v56  ;;  %v1091_v8 = vpop.f32.mrb[3].mxu1  ;;  %v1121_v9 = vmul.f32 0.35355338, %v1097_v3 }
 0x2ee   : > { %v1092_v57 = vadd.f32 %v10261_v56, %v1091_v8  ;;  %v1119_v12 = vmul.f32 0.35355338, %v1089_v5 }
 0x2ef   : > { %v1122_v10 = vmul.f32 0.35355338, %v1100_v7  ;;  %v12234_v11 = vpack.c.bf16 %v1100_v7, %v1097_v3  ;;  %v12333_v3 = vpack.i.b16 %v14696_v2, %v14696_v2 }
 0x2f0   : > { %v1120_v13 = vmul.f32 0.35355338, %v1092_v57  ;;  %v12236_v14 = vpack.c.bf16 %v1092_v57, %v1089_v5 }
 0x2f1   : > { %v12238_v15 = vpack.c.bf16 %v1122_v10, %v1121_v9  ;;  %14780 = vst [vmem:[#allocation32_spill] sm:$0xff] %v12333_v3  ;;  %v12345_v9 = vsub.s32 %v1263_v47, %v12323_v51 }
 0x2f2   : > { %v12240_v16 = vpack.c.bf16 %v1120_v13, %v1119_v12  ;;  %2269 = vrot.lane.b32.xlu1 %v12236_v14, %s11706_s14  ;;  %2261 = vrot.lane.b32.xlu0 %v12236_v14, %s11707_s23  ;;  %v10610_v17 = vpop.f32.mrb[4].mxu1 }
 0x2f3   : > { %v1113_v18 = vadd.f32 %v10610_v17, %v10261_v56  ;;  %v1104_v19 = vpop.f32.mrb[5].mxu1 }
 0x2f4   : > { %v1105_v20 = vadd.f32 %v10261_v56, %v1104_v19  ;;  %v10611_v21 = vpop.f32.mrb[6].mxu1  ;;  %v1163_v13 = vshrl.u32 %v12240_v16, 16 }
 0x2f5   : > { %v1116_v22 = vadd.f32 %v10611_v21, %v10261_v56  ;;  %v1107_v23 = vpop.f32.mrb[7].mxu1  ;;  %v1125_v25 = vmul.f32 0.35355338, %v1113_v18 }
 0x2f6   : > { %v1108_v24 = vadd.f32 %v10261_v56, %v1107_v23  ;;  %2277 = vrot.lane.b32.xlu1 %v12236_v14, %s11708_s29  ;;  %2271 = vrot.lane.b32.xlu0 %v12234_v11, %s11706_s14  ;;  %v1123_v30 = vmul.f32 0.35355338, %v1105_v20 }
 0x2f7   : > { %v1126_v26 = vmul.f32 0.35355338, %v1116_v22  ;;  %v12250_v27 = vpack.c.bf16 %v1116_v22, %v1113_v18 }
 0x2f8   : > { %v1124_v31 = vmul.f32 0.35355338, %v1108_v24  ;;  %v12252_v32 = vpack.c.bf16 %v1108_v24, %v1105_v20 }
 0x2f9   : > { %v12254_v33 = vpack.c.bf16 %v1126_v26, %v1125_v25 }
 0x2fa   : > { %v12256_v34 = vpack.c.bf16 %v1124_v31, %v1123_v30  ;;  %2263 = vrot.lane.b32.xlu1 %v12234_v11, %s11707_s23  ;;  %2285 = vrot.lane.b32.xlu0 %v12236_v14, %s11709_s9 }
 0x2fe   : > { %2279 = vrot.lane.b32.xlu1 %v12234_v11, %s11708_s29 }
 0x364   : > { %v12264_v35 = vpop.permute.xlu1 %2269  ;;  %v12266_v38 = vpop.permute.xlu0 %2261 }
 0x365   : > { %2301 = vrot.lane.b32.xlu0 %v12264_v35, %s11709_s9  ;;  %2293 = vrot.lane.b32.xlu1 %v12266_v38, %s11709_s9 }
 0x368   : > { %v12272_v28 = vpop.permute.xlu1 %2277  ;;  %v12292_v40 = vpop.permute.xlu0 %2271 }
 0x369   : > { %1135 = vrot.lane.b32.xlu0 %v12240_v16, %s11707_s23  ;;  %2309 = vrot.lane.b32.xlu1 %v12272_v28, %s11709_s9 }
 0x36c   : > { %v12290_v39 = vpop.permute.xlu1 %2263  ;;  %v2286_v43 = vpop.permute.xlu0 %2285 }
 0x36d   : > { %1151 = vrot.lane.b32.xlu0 %v12240_v16, %s11708_s29  ;;  %1143 = vrot.lane.b32.xlu1 %v12240_v16, %s11706_s14  ;;  %v2321_v63 = vshrl.u32 %v2286_v43, 16 }
 0x370   : > { %v12300_v42 = vpop.permute.xlu1 %2279 }
 0x371   : > { %2273 = vrot.lane.b32.xlu0 %v12252_v32, %s11706_s14  ;;  %2265 = vrot.lane.b32.xlu1 %v12252_v32, %s11707_s23 }
 0x375   : > { %2287 = vrot.lane.b32.xlu0 %v12234_v11, %s11709_s9  ;;  %2281 = vrot.lane.b32.xlu1 %v12252_v32, %s11708_s29 }
 0x379   : > { %2295 = vrot.lane.b32.xlu1 %v12290_v39, %s11709_s9  ;;  %2303 = vrot.lane.b32.xlu0 %v12292_v40, %s11709_s9 }
 0x37d   : > { %2311 = vrot.lane.b32.xlu1 %v12300_v42, %s11709_s9  ;;  %2267 = vrot.lane.b32.xlu0 %v12250_v27, %s11707_s23 }
 0x381   : > { %2275 = vrot.lane.b32.xlu1 %v12250_v27, %s11706_s14  ;;  %2283 = vrot.lane.b32.xlu0 %v12250_v27, %s11708_s29 }
 0x385   : > { %1137 = vrot.lane.b32.xlu1 %v12238_v15, %s11707_s23  ;;  %1145 = vrot.lane.b32.xlu0 %v12238_v15, %s11706_s14 }
 0x389   : > { %1153 = vrot.lane.b32.xlu1 %v12238_v15, %s11708_s29  ;;  %2289 = vrot.lane.b32.xlu0 %v12252_v32, %s11709_s9 }
 0x3d7   : > { %v2294_v49 = vpop.permute.xlu1 %2293  ;;  %v2302_v50 = vpop.permute.xlu0 %2301 }
 0x3d8   : > { %v2322_v37 = vshrl.u32 %v2294_v49, 16  ;;  %v2329_v46 = vshrl.u32 %v2302_v50, 16  ;;  %v2319_v60 = vpack.i.b16 %v2294_v49, %v2286_v43 }
 0x3da   : > { %v12329_v56 = vpack.i.b16 %v2322_v37, %v2321_v63  ;;  %v2388_v4 = vrot.slane %v2319_v60, %v12326_v59  ;;  %v2381_v20 = vcombine.high %v2319_v60, %v12333_v3 }
 0x3db   : > { %v2310_v52 = vpop.permute.xlu1 %2309  ;;  %v1136_v29 = vpop.permute.xlu0 %1135 }
 0x3dc   : > { %v2327_v55 = vpack.i.b16 %v2310_v52, %v2302_v50  ;;  %v2330_v58 = vshrl.u32 %v2310_v52, 16  ;;  %v1161_v5 = vpack.i.b16 %v1136_v29, %v12240_v16  ;;  %v1164_v6 = vshrl.u32 %v1136_v29, 16 }
 0x3dd   : > { %v2454_v17 = vrot.slane %v12329_v56, %v12326_v59  ;;  %v2395_v52 = vrot.slane %v2381_v20, %v12326_v59  ;;  %v2447_v29 = vcombine.high %v12329_v56, %v12333_v3 }
 0x3de   : > { %v2331_v0 = vpack.i.b16 %v2330_v58, %v2329_v46  ;;  %v2403_v1 = vrot.slane %v2327_v55, %v12326_v59  ;;  %v2396_v10 = vcombine.high %v2327_v55, %v12333_v3  ;;  %v12354_v21 = vpack.i.b16 %v1164_v6, %v1163_v13 }
 0x3df   : > { %v1144_v61 = vpop.permute.xlu1 %1143  ;;  %v1152_v62 = vpop.permute.xlu0 %1151  ;;  %v1229_v22 = vcombine.high %v1161_v5, %v12333_v3  ;;  %v1236_v53 = vrot.slane %v1161_v5, %v12326_v59  ;;  %v1185_v58 = vshrl.u32 %v12238_v15, 16 }
 0x3e0   : > { %v2469_v57 = vrot.slane %v2331_v0, %v12326_v59  ;;  %v2411_v12 = vcombine.low %v2388_v4, %v2403_v1  ;;  %v2412_v18 = vcombine.high %v2388_v4, %v2403_v1  ;;  %v1171_v19 = vshrl.u32 %v1144_v61, 16 }
 0x3e1   : > { %v1169_v26 = vpack.i.b16 %v1152_v62, %v1144_v61  ;;  %v1172_v30 = vshrl.u32 %v1152_v62, 16  ;;  %v2410_v31 = vrot.slane %v2396_v10, %v12326_v59  ;;  %v2462_v44 = vcombine.high %v2331_v0, %v12333_v3 }
 0x3e2   : > { %v2477_v25 = vcombine.low %v2454_v17, %v2469_v57  ;;  %v2478_v16 = vcombine.high %v2454_v17, %v2469_v57  ;;  %v2419_v43 = vrot.slane %v2411_v12, %v12345_v9  ;;  %v2426_v45 = vrot.slane %v2412_v18, %v12345_v9 }
 0x3e3   : > { %v12337_v7 = vpop.permute.xlu1 %2265  ;;  %v12339_v8 = vpop.permute.xlu0 %2273  ;;  %v1173_v49 = vpack.i.b16 %v1172_v30, %v1171_v19  ;;  %v1244_v50 = vcombine.high %v1169_v26, %v12333_v3  ;;  %v1251_v36 = vrot.slane %v1169_v26, %v12326_v59  ;;  %v1243_v60 = vrot.slane %v1229_v22, %v12326_v59 }
 0x3e4   : > { %2297 = vrot.lane.b32.xlu1 %v12337_v7, %s11709_s9  ;;  %2305 = vrot.lane.b32.xlu0 %v12339_v8, %s11709_s9  ;;  %v2485_v37 = vrot.slane %v2477_v25, %v12345_v9  ;;  %v2492_v46 = vrot.slane %v2478_v16, %v12345_v9  ;;  %v1302_v61 = vrot.slane %v12354_v21, %v12326_v59 }
 0x3e5   : > { %v1258_v62 = vrot.slane %v1244_v50, %v12326_v59  ;;  %v1259_v63 = vcombine.low %v1236_v53, %v1251_v36  ;;  %v1260_v0 = vcombine.high %v1236_v53, %v1251_v36  ;;  %v1317_v47 = vrot.slane %v1173_v49, %v12326_v59 }
 0x3e6   : > { %v2427_v1 = vcombine.low %v2395_v52, %v2410_v31  ;;  %v2428_v56 = vcombine.high %v2395_v52, %v2410_v31  ;;  %v2476_v4 = vrot.slane %v2462_v44, %v12326_v59  ;;  %v2909_v5 = vcombine.low %v2419_v43, %v2426_v45 }
 0x3e7   : > { %v12357_v23 = vpop.permute.xlu1 %2281  ;;  %v12359_v24 = vpop.permute.xlu0 %2287  ;;  %v10284_v6 = vcombine.high %v2419_v43, %v2426_v45  ;;  %v1310_v57 = vcombine.high %v1173_v49, %v12333_v3  ;;  %v1325_v10 = vcombine.low %v1302_v61, %v1317_v47  ;;  %v1326_v12 = vcombine.high %v1302_v61, %v1317_v47 }
 0x3e8   : > { %2313 = vrot.lane.b32.xlu1 %v12357_v23, %s11709_s9  ;;  %1139 = vrot.lane.b32.xlu0 %v12256_v34, %s11707_s23  ;;  %v2461_v18 = vrot.slane %v2447_v29, %v12326_v59  ;;  %v2934_v19 = vcombine.low %v2485_v37, %v2492_v46  ;;  %v10285_v20 = vcombine.high %v2485_v37, %v2492_v46 }
 0x3e9   : > { %v1295_v22 = vcombine.high %v12354_v21, %v12333_v3  ;;  %v1267_v25 = vrot.slane %v1259_v63, %v12345_v9  ;;  %v1274_v16 = vrot.slane %v1260_v0, %v12345_v9  ;;  %v1275_v26 = vcombine.low %v1243_v60, %v1258_v62 }
 0x3ea   : > { %v1276_v30 = vcombine.high %v1243_v60, %v1258_v62  ;;  %v12407_v31 = vrot.slane %v2427_v1, %v12345_v9  ;;  %v12410_v43 = vrot.slane %v2428_v56, %v12345_v9  ;;  %v1333_v21 = vrot.slane %v1325_v10, %v12345_v9 }
 0x3eb   : > { %v12375_v54 = vpop.permute.xlu1 %2295  ;;  %v12377_v55 = vpop.permute.xlu0 %2303  ;;  %v1340_v44 = vrot.slane %v1326_v12, %v12345_v9  ;;  %v2493_v45 = vcombine.low %v2461_v18, %v2476_v4  ;;  %v2916_v49 = vrot.slane %v2909_v5, %v12326_v59  ;;  %v2924_v50 = vrot.slane %v10284_v6, %v12326_v59 }
 0x3ec   : > { %1147 = vrot.lane.b32.xlu1 %v12256_v34, %s11706_s14  ;;  %1155 = vrot.lane.b32.xlu0 %v12256_v34, %s11708_s29  ;;  %v1324_v36 = vrot.slane %v1310_v57, %v12326_v59  ;;  %v2494_v53 = vcombine.high %v2461_v18, %v2476_v4  ;;  %v1309_v37 = vrot.slane %v1295_v22, %v12326_v59  ;;  %v2337_v18 = vshrl.u32 %v12359_v24, 16 }
 0x3ed   : > { %v2941_v46 = vrot.slane %v2934_v19, %v12326_v59  ;;  %v2949_v60 = vrot.slane %v10285_v20, %v12326_v59  ;;  %v1283_v61 = vrot.slane %v1275_v26, %v12345_v9  ;;  %v1290_v62 = vrot.slane %v1276_v30, %v12345_v9 }
 0x3ee   : > { %v1757_v63 = vcombine.low %v1267_v25, %v1274_v16  ;;  %v10268_v0 = vcombine.high %v1267_v25, %v1274_v16  ;;  %v2959_v47 = vcombine.low %v12407_v31, %v12410_v43  ;;  %v10286_v1 = vcombine.high %v12407_v31, %v12410_v43 }
 0x3ef   : > { %v12393_v13 = vpop.permute.xlu1 %2311  ;;  %v12395_v17 = vpop.permute.xlu0 %2267  ;;  %v1782_v56 = vcombine.low %v1333_v21, %v1340_v44  ;;  %v10269_v4 = vcombine.high %v1333_v21, %v1340_v44  ;;  %v12435_v5 = vrot.slane %v2493_v45, %v12345_v9  ;;  %v1341_v6 = vcombine.low %v1309_v37, %v1324_v36 }
 0x3f0   : > { %2291 = vrot.lane.b32.xlu1 %v12250_v27, %s11709_s9  ;;  %2299 = vrot.lane.b32.xlu0 %v12395_v17, %s11709_s9  ;;  %v1342_v57 = vcombine.high %v1309_v37, %v1324_v36  ;;  %v2925_v10 = vcombine.low %v2916_v49, %v2924_v50  ;;  %v12438_v12 = vrot.slane %v2494_v53, %v12345_v9  ;;  %v2338_v19 = vshrl.u32 %v12375_v54, 16 }
 0x3f1   : > { %v2950_v20 = vcombine.low %v2941_v46, %v2949_v60  ;;  %v1764_v22 = vrot.slane %v1757_v63, %v12326_v59  ;;  %v1772_v25 = vrot.slane %v10268_v0, %v12326_v59  ;;  %v1807_v16 = vcombine.low %v1283_v61, %v1290_v62 }
 0x3f2   : > { %v2335_v26 = vpack.i.b16 %v12375_v54, %v12359_v24  ;;  %v1789_v30 = vrot.slane %v1782_v56, %v12326_v59  ;;  %v1797_v31 = vrot.slane %v10269_v4, %v12326_v59  ;;  %v10270_v43 = vcombine.high %v1283_v61, %v1290_v62 }
 0x3f3   : > { %v12417_v52 = vpop.permute.xlu1 %2275  ;;  %v12419_v29 = vpop.permute.xlu0 %2283  ;;  %v12453_v21 = vrot.slane %v2950_v20, %v12345_v9  ;;  %v1349_v44 = vrot.slane %v1341_v6, %v12345_v9  ;;  %v1356_v45 = vrot.slane %v1342_v57, %v12345_v9  ;;  %v2346_v49 = vshrl.u32 %v12393_v13, 16 }
 0x3f4   : > { %14781 = vst [vmem:[#allocation33_spill] sm:$0xff] %v12419_v29  ;;  %2307 = vrot.lane.b32.xlu1 %v12417_v52, %s11709_s9  ;;  %2315 = vrot.lane.b32.xlu0 %v12419_v29, %s11709_s9  ;;  %v12459_v50 = vrot.slane %v2925_v10, %v12345_v9  ;;  %v2984_v24 = vcombine.low %v12435_v5, %v12438_v12  ;;  %v2345_v46 = vshrl.u32 %v12377_v55, 16  ;;  %s14853_s9 = sld [smem:[#allocation69_spill]] (!%p10425_p1) }
 0x3f5   : > { %v10287_v54 = vcombine.high %v12435_v5, %v12438_v12  ;;  %v2339_v36 = vpack.i.b16 %v2338_v19, %v2337_v18  ;;  %v12466_v53 = vrot.slane %v2959_v47, %v12326_v59  ;;  %v1773_v37 = vcombine.low %v1764_v22, %v1772_v25 }
 0x3f6   : > { %v2343_v60 = vpack.i.b16 %v12393_v13, %v12377_v55  ;;  %v3311_v61 = vpack.i.b16 %v12453_v21, %v12459_v50  ;;  %v1798_v62 = vcombine.low %v1789_v30, %v1797_v31  ;;  %v12478_v63 = vrot.slane %v1807_v16, %v12326_v59 }
 0x3f7   : > { %v12481_v0 = vrot.slane %v10270_v43, %v12326_v59  ;;  %v2513_v47 = vcombine.high %v2335_v26, %v12333_v3  ;;  %v1138_v56 = vpop.permute.xlu1 %1137  ;;  %v1832_v4 = vcombine.low %v1349_v44, %v1356_v45  ;;  %v10271_v6 = vcombine.high %v1349_v44, %v1356_v45 }
 0x3f8   : > { %1141 = vrot.lane.b32.xlu1 %v12254_v33, %s11707_s23  ;;  %1149 = vrot.lane.b32.xlu0 %v12254_v33, %s11706_s14  ;;  %v2347_v55 = vpack.i.b16 %v2346_v49, %v2345_v46  ;;  %v4536_v13 = vsel %vm4531_vm3, %v3311_v61, 0  ;;  %v2579_v57 = vcombine.high %v2339_v36, %v12333_v3  ;;  %v12492_v10 = vcombine.high %v12453_v21, %v14696_v2  ;;  %s14852_s14 = sld [smem:[#allocation68_spill]] (!%p10425_p1) }
 0x3f9   : > { %10613 = vmatpush3.bf16.xpose.msra.mxu1 %v4536_v13  ;;  %v12495_v18 = vrot.slane %v10286_v1, %v12326_v59  ;;  %v12498_v19 = vrot.slane %v1773_v37, %v12345_v9  ;;  %v2535_v20 = vrot.slane %v2343_v60, %v12326_v59  ;;  %v12502_v22 = vpack.i.b16 %v1138_v56, %v12238_v15 }
 0x3fa   : > { %10618 = vmatprep.subr.bf16.mxu1 %v14694_v41  ;;  %v2991_v25 = vrot.slane %v2984_v24, %v12326_v59  ;;  %v12507_v16 = vrot.slane %v1798_v62, %v12345_v9  ;;  %v2520_v1 = vrot.slane %v2335_v26, %v12326_v59  ;;  %v2528_v31 = vcombine.high %v2343_v60, %v12333_v3 }
 0x3fb   : > { %v12516_v43 = vrot.slane %v1832_v4, %v12326_v59  ;;  %v12519_v44 = vrot.slane %v10271_v6, %v12326_v59  ;;  %v12522_v45 = vrot.slane %v2513_v47, %v12326_v59  ;;  %v2594_v49 = vcombine.high %v2347_v55, %v12333_v3  ;;  %v1146_v47 = vpop.permute.xlu0 %1145  ;;  %v1154_v4 = vpop.permute.xlu1 %1153 }
 0x3fc   : > { %1157 = vrot.lane.b32.xlu1 %v12254_v33, %s11708_s29  ;;  %3405 = vrot.lane.b32.xlu0 %v12236_v14, %s11715_s6  ;;  %v12488_v14 = vcombine.high %v12459_v50, %v14696_v2  ;;  %v2586_v26 = vrot.slane %v2339_v36, %v12326_v59  ;;  %v12529_v24 = vrot.slane %v2579_v57, %v12326_v59  ;;  %v1186_v61 = vshrl.u32 %v1138_v56, 16 }
 0x3fd   : > { %v2543_v46 = vcombine.low %v2520_v1, %v2535_v20  ;;  %v2544_v60 = vcombine.high %v2520_v1, %v2535_v20  ;;  %v1361_v62 = vcombine.high %v12502_v22, %v12333_v3  ;;  %v12540_v6 = vrot.slane %v12502_v22, %v12326_v59 }
 0x3fe   : > { %v3318_v37 = vshrl.u32 %v12488_v14, 16  ;;  %v2159_v13 = vpack.i.b16 %v12507_v16, %v12498_v19  ;;  %v2601_v56 = vrot.slane %v2347_v55, %v12326_v59  ;;  %v2608_v57 = vrot.slane %v2594_v49, %v12326_v59 }
 0x3ff   : > { %v3312_v20 = vshrl.u32 %v12459_v50, 16  ;;  %v3313_v1 = vshrl.u32 %v12453_v21, 16  ;;  %v1194_v48 = vshrl.u32 %v1154_v4, 16  ;;  %v2551_v55 = vrot.slane %v2543_v46, %v12345_v9 }
 0x400   : > { %3413 = vrot.lane.b32.xlu1 %v12266_v38, %s11715_s6  ;;  %3407 = vrot.lane.b32.xlu0 %v12234_v11, %s11715_s6  ;;  %v3317_v38 = vpack.i.b16 %v12492_v10, %v12488_v14  ;;  %v2542_v11 = vrot.slane %v2528_v31, %v12326_v59  ;;  %v1193_v31 = vshrl.u32 %v1146_v47, 16  ;;  %v2558_v50 = vrot.slane %v2544_v60, %v12345_v9 }
 0x401   : > { %10615 = vmatmul.mubr.msk.bf16.vlgmr.msra.gmra.mrb[8].mxu1 %vm4531_vm3, %v2159_v13  ;;  %v1187_v21 = vpack.i.b16 %v1186_v61, %v1185_v58  ;;  %v3314_v49 = vpack.i.b16 %v3313_v1, %v3312_v20  ;;  %v12569_v13 = vcombine.high %v12498_v19, %v14696_v2  ;;  %v2975_v5 = vcombine.low %v12466_v53, %v12495_v18 }
 0x402   : > { %v4628_v36 = vsel %vm4531_vm3, %v3317_v38, 0  ;;  %v12553_v38 = vcombine.high %v12507_v16, %v14696_v2  ;;  %10620 = vmatprep.mubr.msk.bf16.mxu1 %vm11711_vm2, %v14694_v41  ;;  %v12571_v30 = vpack.i.b16 %v1194_v48, %v1193_v31  ;;  %v2609_v15 = vcombine.low %v2586_v26, %v2601_v56 }
 0x403   : > { %10625 = vmatpush3.bf16.xpose.msra.mxu0 %v4628_v36  ;;  %v2559_v36 = vcombine.low %v12522_v45, %v2542_v11  ;;  %v4582_v58 = vsel %vm4531_vm3, %v3314_v49, 0  ;;  %v12578_v12 = vpack.i.b16 %v1154_v4, %v1146_v47  ;;  %v2610_v46 = vcombine.high %v2586_v26, %v2601_v56 }
 0x404   : > { %3421 = vrot.lane.b32.xlu1 %v12264_v35, %s11715_s6  ;;  %10636 = vmatprep.subr.bf16.mxu0 %v14694_v41  ;;  %v2999_v35 = vrot.slane %v10287_v54, %v12326_v59  ;;  %v2625_v60 = vcombine.low %v12529_v24, %v2608_v57  ;;  %v2626_v61 = vcombine.high %v12529_v24, %v2608_v57  ;;  %v2161_v47 = vshrl.u32 %v12507_v16, 16 }
 0x405   : > { %10619 = vmatpush3.bf16.xpose.msra.mxu1 %v4582_v58  ;;  %v2165_v48 = vpack.i.b16 %v12553_v38, %v12569_v13  ;;  %v1434_v53 = vrot.slane %v1187_v21, %v12326_v59  ;;  %v3009_v26 = vcombine.low %v2551_v55, %v2558_v50  ;;  %v3319_v24 = vshrl.u32 %v12492_v10, 16 }
 0x406   : > { %v3000_v54 = vcombine.low %v2991_v25, %v2999_v35  ;;  %10630 = vmatprep.subr.bf16.mxu1 %v14694_v41  ;;  %v2560_v25 = vcombine.high %v12522_v45, %v2542_v11  ;;  %v12596_v4 = vrot.slane %v2975_v5, %v12345_v9  ;;  %v1383_v56 = vrot.slane %v12578_v12, %v12326_v59 }
 0x407   : > { %v2160_v1 = vshrl.u32 %v12498_v19, 16  ;;  %v2617_v16 = vrot.slane %v2609_v15, %v12345_v9  ;;  %v2624_v45 = vrot.slane %v2610_v46, %v12345_v9  ;;  %v10288_v10 = vcombine.high %v2551_v55, %v2558_v50 }
 0x408   : > { %3429 = vrot.lane.b32.xlu1 %v12272_v28, %s11715_s6  ;;  %v1449_v28 = vrot.slane %v12571_v30, %v12326_v59  ;;  %v12588_v18 = vrot.slane %v3000_v54, %v12345_v9  ;;  %v12610_v31 = vrot.slane %v2625_v60, %v12345_v9  ;;  %v12613_v35 = vrot.slane %v2626_v61, %v12345_v9 }
 0x409   : > { %v1427_v19 = vcombine.high %v1187_v21, %v12333_v3  ;;  %v2162_v49 = vpack.i.b16 %v2161_v47, %v2160_v1  ;;  %v12617_v5 = vrot.slane %v2559_v36, %v12345_v9  ;;  %v12620_v55 = vrot.slane %v2560_v25, %v12345_v9 }
 0x40a   : > { %10627 = vmatmul.mubr.msk.bf16.vlgmr.msra.gmra.mrb[0].mxu0 %vm4531_vm3, %v2165_v48  ;;  %v1457_v57 = vcombine.low %v1434_v53, %v1449_v28  ;;  %v1458_v20 = vcombine.high %v1434_v53, %v1449_v28  ;;  %v3323_v11 = vpack.i.b16 %v12588_v18, %v12596_v4  ;;  %v3016_v50 = vrot.slane %v3009_v26, %v12326_v59 }
 0x40b   : > { %10638 = vmatprep.mubr.msk.bf16.mxu0 %vm11711_vm2, %v14694_v41  ;;  %v1391_v15 = vcombine.low %v12540_v6, %v1383_v56  ;;  %v1392_v58 = vcombine.high %v12540_v6, %v1383_v56  ;;  %v3024_v36 = vrot.slane %v10288_v10, %v12326_v59  ;;  %v3034_v46 = vcombine.low %v2617_v16, %v2624_v45 }
 0x40c   : > { %3415 = vrot.lane.b32.xlu1 %v12290_v39, %s11715_s6  ;;  %v3320_v39 = vpack.i.b16 %v3319_v24, %v3318_v37  ;;  %v1465_v54 = vrot.slane %v1457_v57, %v12345_v9  ;;  %v1472_v21 = vrot.slane %v1458_v20, %v12345_v9  ;;  %10621 = vmatmul.mubr.msk.bf16.vlgmr.msra.gmra.mrb[12].mxu1 %vm4531_vm3, %v2162_v49  ;;  %v4720_v61 = vsel %vm4531_vm3, %v3323_v11, 0 }
 0x40d   : > { %v10289_v60 = vcombine.high %v2617_v16, %v2624_v45  ;;  %10632 = vmatprep.mubr.msk.bf16.mxu1 %vm11711_vm2, %v14694_v41  ;;  %v3084_v14 = vcombine.low %v12610_v31, %v12613_v35  ;;  %v12642_v37 = vrot.slane %v1361_v62, %v12326_v59  ;;  %v12645_v6 = vrot.slane %v1427_v19, %v12326_v59 }
 0x40e   : > { %v2166_v48 = vshrl.u32 %v12569_v13, 16  ;;  %10637 = vmatpush3.bf16.xpose.msra.mxu0 %v4720_v61  ;;  %v1376_v53 = vcombine.high %v12578_v12, %v12333_v3  ;;  %v4674_v28 = vsel %vm4531_vm3, %v3320_v39, 0  ;;  %v1848_v47 = vcombine.low %v12516_v43, %v12519_v44 }
 0x40f   : > { %10648 = vmatprep.subr.bf16.mxu0 %v14694_v41  ;;  %v1399_v22 = vrot.slane %v1391_v15, %v12345_v9  ;;  %v1406_v62 = vrot.slane %v1392_v58, %v12345_v9  ;;  %v1882_v25 = vcombine.low %v1465_v54, %v1472_v21  ;;  %10631 = vmatpush3.bf16.xpose.msra.mxu1 %v4674_v28  ;;  %v3324_v56 = vshrl.u32 %v12596_v4, 16 }
 0x410   : > { %3423 = vrot.lane.b32.xlu1 %v12292_v40, %s11715_s6  ;;  %v1442_v40 = vcombine.high %v12571_v30, %v12333_v3  ;;  %v14782_v13 = vcombine.low %v12478_v63, %v12481_v0  ;;  %v2167_v30 = vshrl.u32 %v12553_v38, 16  ;;  %v1855_v26 = vrot.slane %v1848_v47, %v12345_v9  ;;  %10642 = vmatprep.subr.bf16.mxu1 %v14694_v41 }
 0x411   : > { %v2983_v43 = vcombine.high %v12596_v4, %v14696_v2  ;;  %v3008_v44 = vcombine.high %v12588_v18, %v14696_v2  ;;  %v10273_v24 = vcombine.high %v1465_v54, %v1472_v21  ;;  %v3325_v63 = vshrl.u32 %v12588_v18, 16 }
 0x412   : > { %v1830_v12 = vrot.slane %v14782_v13, %v12345_v9  ;;  %v3041_v0 = vrot.slane %v3034_v46, %v12326_v59  ;;  %v3025_v20 = vcombine.low %v3016_v50, %v3024_v36  ;;  %v3049_v1 = vrot.slane %v10289_v60, %v12326_v59 }
 0x413   : > { %v3329_v57 = vpack.i.b16 %v3008_v44, %v2983_v43  ;;  %v1456_v16 = vrot.slane %v1442_v40, %v12326_v59  ;;  %v1857_v45 = vcombine.low %v1399_v22, %v1406_v62  ;;  %v10272_v10 = vcombine.high %v1399_v22, %v1406_v62 }
 0x414   : > { %3431 = vrot.lane.b32.xlu1 %v12300_v42, %s11715_s6  ;;  %v2171_v38 = vpack.i.b16 %v1855_v26, %v1830_v12  ;;  %v3326_v11 = vpack.i.b16 %v3325_v63, %v3324_v56  ;;  %v1390_v19 = vrot.slane %v1376_v53, %v12326_v59  ;;  %v2168_v4 = vpack.i.b16 %v2167_v30, %v2166_v48 }
 0x415   : > { %v4812_v42 = vsel %vm4531_vm3, %v3329_v57, 0  ;;  %v3050_v18 = vcombine.low %v3041_v0, %v3049_v1  ;;  %v1889_v49 = vrot.slane %v1882_v25, %v12326_v59  ;;  %v1897_v39 = vrot.slane %v10273_v24, %v12326_v59 }
 0x416   : > { %10639 = vmatmul.mubr.msk.bf16.vlgmr.msra.gmra.mrb[4].mxu0 %vm4531_vm3, %v2171_v38  ;;  %v12684_v50 = vcombine.high %v1855_v26, %v14696_v2  ;;  %10633 = vmatmul.mubr.msk.bf16.vlgmr.msra.gmra.mrb[16].mxu1 %vm4531_vm3, %v2168_v4  ;;  %v4766_v15 = vsel %vm4531_vm3, %v3326_v11, 0  ;;  %v3032_v58 = vrot.slane %v3025_v20, %v12345_v9  ;;  %v3331_v21 = vshrl.u32 %v3008_v44, 16 }
 0x417   : > { %10649 = vmatpush3.bf16.xpose.msra.mxu0 %v4812_v42  ;;  %10650 = vmatprep.mubr.msk.bf16.mxu0 %vm11711_vm2, %v14694_v41  ;;  %v3057_v54 = vrot.slane %v3050_v18, %v12345_v9  ;;  %v1473_v36 = vcombine.low %v12645_v6, %v1456_v16  ;;  %v1864_v46 = vrot.slane %v1857_v45, %v12326_v59  ;;  %v2173_v61 = vshrl.u32 %v1855_v26, 16 }
 0x418   : > { %10660 = vmatprep.subr.bf16.mxu0 %v14694_v41  ;;  %v1872_v60 = vrot.slane %v10272_v10, %v12326_v59  ;;  %10643 = vmatpush3.bf16.xpose.msra.mxu1 %v4766_v15  ;;  %v10291_v48 = vcombine.high %v12610_v31, %v12613_v35  ;;  %v1831_v53 = vcombine.high %v1830_v12, %v14696_v2  ;;  %v3330_v28 = vshrl.u32 %v2983_v43, 16 }
 0x419   : > { %10644 = vmatprep.mubr.msk.bf16.mxu1 %vm11711_vm2, %v14694_v41  ;;  %v3335_v40 = vpack.i.b16 %v3057_v54, %v3032_v58  ;;  %10654 = vmatprep.subr.bf16.mxu1 %v14694_v41  ;;  %v3059_v47 = vcombine.low %v12617_v5, %v12620_v55  ;;  %v1474_v22 = vcombine.high %v12645_v6, %v1456_v16  ;;  %v2172_v25 = vshrl.u32 %v1830_v12, 16 }
 0x41a   : > { %v1898_v62 = vcombine.low %v1889_v49, %v1897_v39  ;;  %v10290_v13 = vcombine.high %v12617_v5, %v12620_v55  ;;  %v1407_v30 = vcombine.low %v12642_v37, %v1390_v19  ;;  %v2177_v26 = vpack.i.b16 %v12684_v50, %v1831_v53 }
 0x41b   : > { %v3332_v44 = vpack.i.b16 %v3331_v21, %v3330_v28  ;;  %v1408_v24 = vcombine.high %v12642_v37, %v1390_v19  ;;  %v1481_v56 = vrot.slane %v1473_v36, %v12345_v9  ;;  %v1873_v43 = vcombine.low %v1864_v46, %v1872_v60 }
 0x41c   : > { %v2174_v63 = vpack.i.b16 %v2173_v61, %v2172_v25  ;;  %v4904_v6 = vsel %vm4531_vm3, %v3335_v40, 0  ;;  %v3058_v12 = vcombine.high %v3057_v54, %v14696_v2  ;;  %v3091_v5 = vrot.slane %v3084_v14, %v12326_v59 }
 0x41d   : > { %v3099_v55 = vrot.slane %v10291_v48, %v12326_v59  ;;  %v1488_v0 = vrot.slane %v1474_v22, %v12345_v9  ;;  %v1905_v37 = vrot.slane %v1898_v62, %v12345_v9  ;;  %v3033_v38 = vcombine.high %v3032_v58, %v14696_v2 }
 0x41e   : > { %10651 = vmatmul.mubr.msk.bf16.vlgmr.msra.gmra.mrb[8].mxu0 %vm4531_vm3, %v2177_v26  ;;  %v4858_v57 = vsel %vm4531_vm3, %v3332_v44, 0  ;;  %v3337_v31 = vshrl.u32 %v3057_v54, 16  ;;  %v3066_v35 = vrot.slane %v3059_v47, %v12326_v59  ;;  %v3074_v14 = vrot.slane %v10290_v13, %v12326_v59 }
 0x41f   : > { %10661 = vmatpush3.bf16.xpose.msra.mxu0 %v4904_v6  ;;  %10662 = vmatprep.mubr.msk.bf16.mxu0 %vm11711_vm2, %v14694_v41  ;;  %v1415_v20 = vrot.slane %v1407_v30, %v12345_v9  ;;  %v1422_v1 = vrot.slane %v1408_v24, %v12345_v9  ;;  %v1880_v16 = vrot.slane %v1873_v43, %v12345_v9  ;;  %v2179_v10 = vshrl.u32 %v12684_v50, 16 }
 0x420   : > { %10645 = vmatmul.mubr.msk.bf16.vlgmr.msra.gmra.mrb[20].mxu1 %vm4531_vm3, %v2174_v63  ;;  %10672 = vmatprep.subr.bf16.mxu0 %v14694_v41  ;;  %v3341_v45 = vpack.i.b16 %v3058_v12, %v3033_v38  ;;  %v3336_v11 = vshrl.u32 %v3032_v58, 16  ;;  %v3100_v19 = vcombine.low %v3091_v5, %v3099_v55  ;;  %v1932_v42 = vcombine.low %v1481_v56, %v1488_v0 }
 0x421   : > { %10655 = vmatpush3.bf16.xpose.msra.mxu1 %v4858_v57  ;;  %10656 = vmatprep.mubr.msk.bf16.mxu1 %vm11711_vm2, %v14694_v41  ;;  %v10275_v4 = vcombine.high %v1481_v56, %v1488_v0  ;;  %v2183_v18 = vpack.i.b16 %v1905_v37, %v1880_v16  ;;  %v2178_v49 = vshrl.u32 %v1831_v53, 16  ;;  %v3075_v15 = vcombine.low %v3066_v35, %v3074_v14 }
 0x422   : > { %10666 = vmatprep.subr.bf16.mxu1 %v14694_v41  ;;  %v3338_v39 = vpack.i.b16 %v3337_v31, %v3336_v11  ;;  %v1907_v54 = vcombine.low %v1415_v20, %v1422_v1  ;;  %v10274_v21 = vcombine.high %v1415_v20, %v1422_v1  ;;  %v4996_v36 = vsel %vm4531_vm3, %v3341_v45, 0 }
 0x423   : > { %v2180_v46 = vpack.i.b16 %v2179_v10, %v2178_v49  ;;  %v3107_v60 = vrot.slane %v3100_v19, %v12345_v9  ;;  %v1939_v50 = vrot.slane %v1932_v42, %v12326_v59  ;;  %v1947_v58 = vrot.slane %v10275_v4, %v12326_v59 }
 0x424   : > { %v4950_v61 = vsel %vm4531_vm3, %v3338_v39, 0  ;;  %v1906_v48 = vcombine.high %v1905_v37, %v14696_v2  ;;  %v3082_v53 = vrot.slane %v3075_v15, %v12345_v9  ;;  %v3343_v40 = vshrl.u32 %v3058_v12, 16 }
 0x425   : > { %v1914_v28 = vrot.slane %v1907_v54, %v12326_v59  ;;  %v1922_v47 = vrot.slane %v10274_v21, %v12326_v59  ;;  %v1881_v22 = vcombine.high %v1880_v16, %v14696_v2  ;;  %v2185_v25 = vshrl.u32 %v1905_v37, 16 }
 0x426   : > { %10663 = vmatmul.mubr.msk.bf16.vlgmr.msra.gmra.mrb[12].mxu0 %vm4531_vm3, %v2183_v18  ;;  %v3347_v62 = vpack.i.b16 %v3107_v60, %v3082_v53  ;;  %v3342_v13 = vshrl.u32 %v3033_v38, 16  ;;  %v2184_v26 = vshrl.u32 %v1880_v16, 16  ;;  %v1948_v24 = vcombine.low %v1939_v50, %v1947_v58  ;;  %v2290_v50 = vpop.permute.xlu0 %2289 }
 0x427   : > { %10673 = vmatpush3.bf16.xpose.msra.mxu0 %v4996_v36  ;;  %10674 = vmatprep.mubr.msk.bf16.mxu0 %vm11711_vm2, %v14694_v41  ;;  %v2189_v30 = vpack.i.b16 %v1906_v48, %v1881_v22  ;;  %v1923_v56 = vcombine.low %v1914_v28, %v1922_v47  ;;  %v3108_v6 = vcombine.high %v3107_v60, %v14696_v2  ;;  %v3349_v0 = vshrl.u32 %v3107_v60, 16 }
 0x428   : > { %10657 = vmatmul.mubr.msk.bf16.vlgmr.msra.gmra.mrb[24].mxu1 %vm4531_vm3, %v2180_v46  ;;  %10684 = vmatprep.subr.bf16.mxu0 %v14694_v41  ;;  %v3344_v44 = vpack.i.b16 %v3343_v40, %v3342_v13  ;;  %v5088_v43 = vsel %vm4531_vm3, %v3347_v62, 0  ;;  %v2186_v63 = vpack.i.b16 %v2185_v25, %v2184_v26  ;;  %v1955_v5 = vrot.slane %v1948_v24, %v12345_v9 }
 0x429   : > { %10667 = vmatpush3.bf16.xpose.msra.mxu1 %v4950_v61  ;;  %10668 = vmatprep.mubr.msk.bf16.mxu1 %vm11711_vm2, %v14694_v41  ;;  %v3083_v55 = vcombine.high %v3082_v53, %v14696_v2  ;;  %v1930_v37 = vrot.slane %v1923_v56, %v12345_v9  ;;  %v2191_v57 = vshrl.u32 %v1906_v48, 16  ;;  %v3348_v31 = vshrl.u32 %v3082_v53, 16 }
 0x42a   : > { %10678 = vmatprep.subr.bf16.mxu1 %v14694_v41  ;;  %v5042_v12 = vsel %vm4531_vm3, %v3344_v44, 0  ;;  %v2190_v14 = vshrl.u32 %v1881_v22, 16  ;;  %v1956_v10 = vcombine.high %v1955_v5, %v14696_v2  ;;  %v3355_v11 = vshrl.u32 %v3108_v6, 16 }
 0x42b   : > { %v3353_v38 = vpack.i.b16 %v3108_v6, %v3083_v55  ;;  %v2195_v35 = vpack.i.b16 %v1955_v5, %v1930_v37  ;;  %v3350_v20 = vpack.i.b16 %v3349_v0, %v3348_v31  ;;  %v1931_v19 = vcombine.high %v1930_v37, %v14696_v2 }
 0x42c   : > { %v2192_v16 = vpack.i.b16 %v2191_v57, %v2190_v14  ;;  %v2197_v42 = vshrl.u32 %v1955_v5, 16  ;;  %v3354_v4 = vshrl.u32 %v3083_v55, 16  ;;  %v2196_v49 = vshrl.u32 %v1930_v37, 16 }
 0x42d   : > { %v5180_v1 = vsel %vm4531_vm3, %v3353_v38, 0  ;;  %v5134_v45 = vsel %vm4531_vm3, %v3350_v20, 0  ;;  %v2201_v18 = vpack.i.b16 %v1956_v10, %v1931_v19  ;;  %v2203_v21 = vshrl.u32 %v1956_v10, 16 }
 0x42e   : > { %10675 = vmatmul.mubr.msk.bf16.vlgmr.msra.gmra.mrb[16].mxu0 %vm4531_vm3, %v2189_v30  ;;  %v3356_v39 = vpack.i.b16 %v3355_v11, %v3354_v4  ;;  %v2198_v15 = vpack.i.b16 %v2197_v42, %v2196_v49  ;;  %v2202_v36 = vshrl.u32 %v1931_v19, 16  ;;  %v2353_v13 = vshrl.u32 %v2290_v50, 16 }
 0x42f   : > { %10685 = vmatpush3.bf16.xpose.msra.mxu0 %v5088_v43  ;;  %10686 = vmatprep.mubr.msk.bf16.mxu0 %vm11711_vm2, %v14694_v41 }
 0x430   : > { %10669 = vmatmul.mubr.msk.bf16.vlgmr.msra.gmra.mrb[28].mxu1 %vm4531_vm3, %v2186_v63  ;;  %10696 = vmatprep.subr.bf16.mxu0 %v14694_v41  ;;  %v5226_v54 = vsel %vm4531_vm3, %v3356_v39, 0  ;;  %v2204_v46 = vpack.i.b16 %v2203_v21, %v2202_v36 }
 0x431   : > { %10679 = vmatpush3.bf16.xpose.msra.mxu1 %v5042_v12  ;;  %10680 = vmatprep.mubr.msk.bf16.mxu1 %vm11711_vm2, %v14694_v41 }
 0x432   : > { %10690 = vmatprep.subr.bf16.mxu1 %v14694_v41 }
 0x436   : > { %10687 = vmatmul.mubr.msk.bf16.vlgmr.msra.gmra.mrb[20].mxu0 %vm4531_vm3, %v2195_v35 }
 0x437   : > { %10697 = vmatpush3.bf16.xpose.msra.mxu0 %v5180_v1  ;;  %10698 = vmatprep.mubr.msk.bf16.mxu0 %vm11711_vm2, %v14694_v41  ;;  %v1201_v1 = vshrl.u32 %v12256_v34, 16 }
 0x438   : > { %10681 = vmatmul.mubr.msk.bf16.vlgmr.msra.gmra.mrb[32].mxu1 %vm4531_vm3, %v2192_v16  ;;  %10708 = vmatprep.subr.bf16.mxu0 %v14694_v41 }
 0x439   : > { %10691 = vmatpush3.bf16.xpose.msra.mxu1 %v5134_v45  ;;  %10692 = vmatprep.mubr.msk.bf16.mxu1 %vm11711_vm2, %v14694_v41 }
 0x43a   : > { %10702 = vmatprep.subr.bf16.mxu1 %v14694_v41 }
 0x43e   : > { %10699 = vmatmul.mubr.msk.bf16.vlgmr.msra.gmra.mrb[24].mxu0 %vm4531_vm3, %v2201_v18 }
 0x43f   : > { %10710 = vmatprep.mubr.msk.bf16.mxu0 %vm11711_vm2, %v14694_v41 }
 0x440   : > { %10693 = vmatmul.mubr.msk.bf16.vlgmr.msra.gmra.mrb[36].mxu1 %vm4531_vm3, %v2198_v15  ;;  %v1217_v15 = vshrl.u32 %v12254_v33, 16 }
 0x441   : > { %10703 = vmatpush3.bf16.xpose.msra.mxu1 %v5226_v54  ;;  %10704 = vmatprep.mubr.msk.bf16.mxu1 %vm11711_vm2, %v14694_v41 }
 0x442   : > { %10714 = vmatprep.subr.bf16.mxu1 %v14694_v41 }
 0x448   : > { %10705 = vmatmul.mubr.msk.bf16.vlgmr.msra.gmra.mrb[40].mxu1 %vm4531_vm3, %v2204_v46 }
 0x449   : > { %10716 = vmatprep.mubr.msk.bf16.mxu1 %vm11711_vm2, %v14694_v41 }
 0x456   : > { %v2298_v60 = vpop.permute.xlu1 %2297  ;;  %v2306_v58 = vpop.permute.xlu0 %2305 }
 0x457   : > { %v2351_v47 = vpack.i.b16 %v2298_v60, %v2290_v50  ;;  %v2354_v22 = vshrl.u32 %v2298_v60, 16  ;;  %v2361_v62 = vshrl.u32 %v2306_v58, 16 }
 0x459   : > { %v2355_v56 = vpack.i.b16 %v2354_v22, %v2353_v13  ;;  %v2645_v43 = vcombine.high %v2351_v47, %v12333_v3  ;;  %v2652_v63 = vrot.slane %v2351_v47, %v12326_v59 }
 0x45a   : > { %v2314_v61 = vpop.permute.xlu1 %2313  ;;  %v1140_v48 = vpop.permute.xlu0 %1139 }
 0x45b   : > { %v2359_v53 = vpack.i.b16 %v2314_v61, %v2306_v58  ;;  %v2362_v28 = vshrl.u32 %v2314_v61, 16  ;;  %v1199_v12 = vpack.i.b16 %v1140_v48, %v12256_v34  ;;  %v2659_v31 = vrot.slane %v2645_v43, %v12326_v59 }
 0x45c   : > { %v2711_v35 = vcombine.high %v2355_v56, %v12333_v3  ;;  %v1202_v14 = vshrl.u32 %v1140_v48, 16  ;;  %v2718_v18 = vrot.slane %v2355_v56, %v12326_v59 }
 0x45d   : > { %v2660_v25 = vcombine.high %v2359_v53, %v12333_v3  ;;  %v2667_v30 = vrot.slane %v2359_v53, %v12326_v59  ;;  %v2363_v44 = vpack.i.b16 %v2362_v28, %v2361_v62  ;;  %v1493_v16 = vcombine.high %v1199_v12, %v12333_v3 }
 0x45e   : > { %v1148_v40 = vpop.permute.xlu1 %1147  ;;  %v1156_v26 = vpop.permute.xlu0 %1155  ;;  %v2725_v34 = vrot.slane %v2711_v35, %v12326_v59  ;;  %v1203_v54 = vpack.i.b16 %v1202_v14, %v1201_v1  ;;  %v1500_v21 = vrot.slane %v1199_v12, %v12326_v59 }
 0x45f   : > { %v2674_v6 = vrot.slane %v2660_v25, %v12326_v59  ;;  %v1207_v5 = vpack.i.b16 %v1156_v26, %v1148_v40  ;;  %v2675_v55 = vcombine.low %v2652_v63, %v2667_v30  ;;  %v2676_v0 = vcombine.high %v2652_v63, %v2667_v30 }
 0x460   : > { %v1209_v37 = vshrl.u32 %v1148_v40, 16  ;;  %v1210_v38 = vshrl.u32 %v1156_v26, 16  ;;  %v2726_v57 = vcombine.high %v2363_v44, %v12333_v3  ;;  %v2733_v20 = vrot.slane %v2363_v44, %v12326_v59 }
 0x461   : > { %v1508_v45 = vcombine.high %v1207_v5, %v12333_v3  ;;  %v2683_v11 = vrot.slane %v2675_v55, %v12345_v9  ;;  %v2690_v19 = vrot.slane %v2676_v0, %v12345_v9  ;;  %v2691_v42 = vcombine.low %v2659_v31, %v2674_v6 }
 0x462   : > { %v12791_v24 = vpop.permute.xlu1 %2291  ;;  %v1211_v4 = vpack.i.b16 %v1210_v38, %v1209_v37  ;;  %v2692_v49 = vcombine.high %v2659_v31, %v2674_v6  ;;  %v2740_v39 = vrot.slane %v2726_v57, %v12326_v59  ;;  %v1515_v36 = vrot.slane %v1207_v5, %v12326_v59  ;;  %v2300_v25 = vpop.permute.xlu0 %2299 }
 0x463   : > { %v2741_v46 = vcombine.low %v2718_v18, %v2733_v20  ;;  %v2742_v60 = vcombine.high %v2718_v18, %v2733_v20  ;;  %v1507_v50 = vrot.slane %v1493_v16, %v12326_v59  ;;  %v1522_v58 = vrot.slane %v1508_v45, %v12326_v59 }
 0x464   : > { %v12817_v61 = vrot.slane %v2691_v42, %v12345_v9  ;;  %v3109_v48 = vcombine.low %v2683_v11, %v2690_v19  ;;  %v10292_v53 = vcombine.high %v2683_v11, %v2690_v19  ;;  %v1581_v40 = vrot.slane %v1211_v4, %v12326_v59 }
 0x465   : > { %v12821_v28 = vrot.slane %v2692_v49, %v12345_v9  ;;  %v2757_v47 = vcombine.low %v2725_v34, %v2740_v39  ;;  %v2758_v22 = vcombine.high %v2725_v34, %v2740_v39  ;;  %v1574_v62 = vcombine.high %v1211_v4, %v12333_v3 }
 0x466   : > { %v12804_v10 = vpop.permute.xlu1 %2307  ;;  %v1559_v30 = vcombine.high %v1203_v54, %v12333_v3  ;;  %v1566_v26 = vrot.slane %v1203_v54, %v12326_v59  ;;  %v1523_v44 = vcombine.low %v1500_v21, %v1515_v36  ;;  %v1524_v56 = vcombine.high %v1500_v21, %v1515_v36  ;;  %v2316_v4 = vpop.permute.xlu0 %2315 }
 0x467   : > { %v2749_v43 = vrot.slane %v2741_v46, %v12345_v9  ;;  %v2756_v63 = vrot.slane %v2742_v60, %v12345_v9  ;;  %v1539_v6 = vcombine.low %v1507_v50, %v1522_v58  ;;  %v1540_v12 = vcombine.high %v1507_v50, %v1522_v58 }
 0x468   : > { %v12831_v5 = vrot.slane %v3109_v48, %v12326_v59  ;;  %v12834_v55 = vrot.slane %v10292_v53, %v12326_v59  ;;  %v1589_v0 = vcombine.low %v1566_v26, %v1581_v40  ;;  %v1590_v37 = vcombine.high %v1566_v26, %v1581_v40 }
 0x469   : > { %v12837_v38 = vrot.slane %v2757_v47, %v12345_v9  ;;  %v12840_v57 = vrot.slane %v2758_v22, %v12345_v9  ;;  %v3159_v31 = vcombine.low %v12817_v61, %v12821_v28  ;;  %v1588_v35 = vrot.slane %v1574_v62, %v12326_v59 }
 0x46a   : > { %v12824_v13 = vpop.permute.xlu1 %1141  ;;  %v1531_v14 = vrot.slane %v1523_v44, %v12345_v9  ;;  %v1538_v20 = vrot.slane %v1524_v56, %v12345_v9  ;;  %v2369_v1 = vshrl.u32 %v12791_v24, 16  ;;  %v2370_v16 = vshrl.u32 %v2300_v25, 16 }
 0x46b   : > { %v3134_v45 = vcombine.low %v2749_v43, %v2756_v63  ;;  %v1573_v11 = vrot.slane %v1559_v30, %v12326_v59  ;;  %v1547_v19 = vrot.slane %v1539_v6, %v12345_v9  ;;  %v1554_v42 = vrot.slane %v1540_v12, %v12345_v9 }
 0x46c   : > { %v10293_v49 = vcombine.high %v2749_v43, %v2756_v63  ;;  %v10294_v39 = vcombine.high %v12817_v61, %v12821_v28  ;;  %v1597_v34 = vrot.slane %v1589_v0, %v12345_v9  ;;  %v1604_v54 = vrot.slane %v1590_v37, %v12345_v9 }
 0x46d   : > { %v3184_v21 = vcombine.low %v12837_v38, %v12840_v57  ;;  %v1605_v36 = vcombine.low %v1573_v11, %v1588_v35  ;;  %v1606_v46 = vcombine.high %v1573_v11, %v1588_v35  ;;  %v2367_v60 = vpack.i.b16 %v2300_v25, %v12791_v24  ;;  %v12873_v35 = vpop.permute.xlu0 %1149 }
 0x46e   : > { %v12851_v18 = vpop.permute.xlu1 %1157  ;;  %v1957_v50 = vcombine.low %v1531_v14, %v1538_v20  ;;  %v10276_v58 = vcombine.high %v1531_v14, %v1538_v20  ;;  %v2371_v48 = vpack.i.b16 %v2370_v16, %v2369_v1  ;;  %v2375_v53 = vpack.i.b16 %v2316_v4, %v12804_v10 }
 0x46f   : > { %v2007_v40 = vcombine.low %v1547_v19, %v1554_v42  ;;  %v10278_v47 = vcombine.high %v1547_v19, %v1554_v42  ;;  %v2377_v22 = vshrl.u32 %v12804_v10, 16  ;;  %v3141_v62 = vrot.slane %v3134_v45, %v12326_v59 }
 0x470   : > { %v1982_v30 = vcombine.low %v1597_v34, %v1604_v54  ;;  %v10277_v26 = vcombine.high %v1597_v34, %v1604_v54  ;;  %v2378_v44 = vshrl.u32 %v2316_v4, 16  ;;  %v3149_v56 = vrot.slane %v10293_v49, %v12326_v59 }
 0x471   : > { %v1613_v24 = vrot.slane %v1605_v36, %v12345_v9  ;;  %v1620_v25 = vrot.slane %v1606_v46, %v12345_v9  ;;  %v2777_v63 = vcombine.high %v2367_v60, %v12333_v3  ;;  %v1964_v12 = vrot.slane %v1957_v50, %v12326_v59 }
 0x472   : > { %v3414_v6 = vpop.permute.xlu1 %3413  ;;  %v1972_v10 = vrot.slane %v10276_v58, %v12326_v59  ;;  %v2843_v0 = vcombine.high %v2371_v48, %v12333_v3  ;;  %v2792_v37 = vcombine.high %v2375_v53, %v12333_v3  ;;  %v12876_v14 = vrot.slane %v2007_v40, %v12326_v59 }
 0x473   : > { %v12879_v20 = vrot.slane %v10278_v47, %v12326_v59  ;;  %v2799_v1 = vrot.slane %v2375_v53, %v12326_v59  ;;  %v3150_v16 = vcombine.low %v3141_v62, %v3149_v56  ;;  %v1989_v45 = vrot.slane %v1982_v30, %v12326_v59  ;;  %v3406_v62 = vpop.permute.xlu0 %3405 }
 0x474   : > { %v1997_v11 = vrot.slane %v10277_v26, %v12326_v59  ;;  %v2379_v19 = vpack.i.b16 %v2378_v44, %v2377_v22  ;;  %v3125_v42 = vcombine.low %v12831_v5, %v12834_v55  ;;  %v2032_v4 = vcombine.low %v1613_v24, %v1620_v25 }
 0x475   : > { %v2784_v49 = vrot.slane %v2367_v60, %v12326_v59  ;;  %v2791_v34 = vrot.slane %v2777_v63, %v12326_v59  ;;  %v12889_v54 = vrot.slane %v2371_v48, %v12326_v59  ;;  %v10279_v36 = vcombine.high %v1613_v24, %v1620_v25 }
 0x476   : > { %v12892_v46 = vrot.slane %v2843_v0, %v12326_v59  ;;  %v2806_v50 = vrot.slane %v2792_v37, %v12326_v59  ;;  %v3157_v58 = vrot.slane %v3150_v16, %v12345_v9  ;;  %v1973_v53 = vcombine.low %v1964_v12, %v1972_v10  ;;  %v3422_v40 = vpop.permute.xlu1 %3421 }
 0x477   : > { %v2807_v55 = vcombine.low %v2784_v49, %v2799_v1  ;;  %v12900_v60 = vpack.i.b16 %v12824_v13, %v12254_v33  ;;  %v1998_v48 = vcombine.low %v1989_v45, %v1997_v11  ;;  %v2808_v47 = vcombine.high %v2784_v49, %v2799_v1 }
 0x478   : > { %v2858_v22 = vcombine.high %v2379_v19, %v12333_v3  ;;  %v3132_v30 = vrot.slane %v3125_v42, %v12345_v9  ;;  %v12905_v26 = vrot.slane %v2032_v4, %v12326_v59  ;;  %v12908_v44 = vrot.slane %v2379_v19, %v12326_v59 }
 0x479   : > { %v1218_v56 = vshrl.u32 %v12824_v13, 16  ;;  %v3442_v24 = vshrl.u32 %v3414_v6, 16  ;;  %v12912_v25 = vrot.slane %v10279_v36, %v12326_v59  ;;  %v2823_v63 = vcombine.low %v2791_v34, %v2806_v50 }
 0x47a   : > { %v3359_v12 = vpack.i.b16 %v3157_v58, %v3132_v30  ;;  %v12914_v10 = vpack.i.b16 %v3414_v6, %v3406_v62  ;;  %v12917_v0 = vrot.slane %v2807_v55, %v12345_v9  ;;  %v12923_v1 = vrot.slane %v12900_v60, %v12326_v59  ;;  %v3430_v36 = vpop.permute.xlu1 %3429 }
 0x47b   : > { %v3441_v16 = vshrl.u32 %v3406_v62, 16  ;;  %v12926_v13 = vrot.slane %v2808_v47, %v12345_v9  ;;  %v2824_v45 = vcombine.high %v2791_v34, %v2806_v50  ;;  %v12929_v11 = vrot.slane %v2858_v22, %v12326_v59 }
 0x47c   : > { %v5272_v6 = vsel %vm4531_vm3, %v3359_v12, 0  ;;  %v2873_v19 = vcombine.low %v12889_v54, %v12908_v44  ;;  %v2874_v42 = vcombine.high %v12889_v54, %v12908_v44  ;;  %v12938_v4 = vpack.i.b16 %v1218_v56, %v1217_v15 }
 0x47d   : > { %10709 = vmatpush3.bf16.xpose.msra.mxu0 %v5272_v6  ;;  %v12940_v49 = vpack.i.b16 %v3442_v24, %v3441_v16  ;;  %v12943_v34 = vrot.slane %v2823_v63, %v12345_v9  ;;  %v3501_v50 = vcombine.high %v12914_v10, %v12333_v3  ;;  %v3360_v55 = vshrl.u32 %v3132_v30, 16 }
 0x47e   : > { %v3361_v47 = vshrl.u32 %v3157_v58, 16  ;;  %10720 = vmatprep.subr.bf16.mxu0 %v14694_v41  ;;  %v3449_v22 = vshrl.u32 %v3422_v40, 16  ;;  %v12949_v54 = vrot.slane %v1973_v53, %v12345_v9  ;;  %v12952_v33 = vrot.slane %v1998_v48, %v12345_v9 }
 0x47f   : > { %v3133_v15 = vcombine.high %v3132_v30, %v14696_v2  ;;  %v3158_v44 = vcombine.high %v3157_v58, %v14696_v2  ;;  %v12956_v56 = vpack.i.b16 %v3430_v36, %v3422_v40  ;;  %v3450_v24 = vshrl.u32 %v3430_v36, 16 }
 0x480   : > { %v3362_v62 = vpack.i.b16 %v3361_v47, %v3360_v55  ;;  %v12959_v63 = vrot.slane %v2824_v45, %v12345_v9  ;;  %v3209_v12 = vcombine.low %v12917_v0, %v12926_v13  ;;  %v3567_v53 = vcombine.high %v12940_v49, %v12333_v3 }
 0x481   : > { %v2207_v48 = vpack.i.b16 %v12952_v33, %v12949_v54  ;;  %v3365_v16 = vpack.i.b16 %v3158_v44, %v3133_v15  ;;  %v12968_v6 = vpack.i.b16 %v3450_v24, %v3449_v22  ;;  %v3516_v58 = vcombine.high %v12956_v56, %v12333_v3 }
 0x482   : > { %v5318_v30 = vsel %vm4531_vm3, %v3362_v62, 0  ;;  %v1226_v40 = vshrl.u32 %v12851_v18, 16  ;;  %v3515_v45 = vrot.slane %v3501_v50, %v12326_v59  ;;  %v2209_v36 = vshrl.u32 %v12952_v33, 16 }
 0x483   : > { %10715 = vmatpush3.bf16.xpose.msra.mxu1 %v5318_v30  ;;  %v3367_v55 = vshrl.u32 %v3158_v44, 16  ;;  %v5364_v47 = vsel %vm4531_vm3, %v3365_v16, 0  ;;  %v3530_v22 = vrot.slane %v3516_v58, %v12326_v59  ;;  %v3582_v62 = vcombine.high %v12968_v6, %v12333_v3 }
 0x484   : > { %10711 = vmatmul.mubr.msk.bf16.vlgmr.msra.gmra.mrb[28].mxu0 %vm4531_vm3, %v2207_v48  ;;  %10726 = vmatprep.subr.bf16.mxu1 %v14694_v41  ;;  %v3366_v24 = vshrl.u32 %v3133_v15, 16  ;;  %v1225_v5 = vshrl.u32 %v12873_v35, 16  ;;  %v1223_v50 = vpack.i.b16 %v12851_v18, %v12873_v35  ;;  %v3581_v30 = vrot.slane %v3567_v53, %v12326_v59 }
 0x485   : > { %10721 = vmatpush3.bf16.xpose.msra.mxu0 %v5364_v47  ;;  %v2208_v44 = vshrl.u32 %v12949_v54, 16  ;;  %10722 = vmatprep.mubr.msk.bf16.mxu0 %vm11711_vm2, %v14694_v41  ;;  %v3547_v48 = vcombine.low %v3515_v45, %v3530_v22  ;;  %v3548_v16 = vcombine.high %v3515_v45, %v3530_v22  ;;  %v3596_v58 = vrot.slane %v3582_v62, %v12326_v59 }
 0x486   : > { %v3368_v37 = vpack.i.b16 %v3367_v55, %v3366_v24  ;;  %10732 = vmatprep.subr.bf16.mxu0 %v14694_v41  ;;  %v12991_v15 = vrot.slane %v2873_v19, %v12345_v9  ;;  %v2889_v18 = vcombine.low %v12892_v46, %v12929_v11  ;;  %v10296_v35 = vcombine.high %v12917_v0, %v12926_v13 }
 0x487   : > { %v12997_v53 = vpack.i.b16 %v1226_v40, %v1225_v5  ;;  %v2210_v47 = vpack.i.b16 %v2209_v36, %v2208_v44  ;;  %v13000_v43 = vrot.slane %v3547_v48, %v12345_v9  ;;  %v13003_v45 = vrot.slane %v3548_v16, %v12345_v9 }
 0x488   : > { %v3613_v55 = vcombine.low %v3581_v30, %v3596_v58  ;;  %v13006_v22 = vrot.slane %v2874_v42, %v12345_v9  ;;  %v2890_v19 = vcombine.high %v12892_v46, %v12929_v11  ;;  %v1647_v62 = vrot.slane %v1223_v50, %v12326_v59 }
 0x489   : > { %v3614_v24 = vcombine.high %v3581_v30, %v3596_v58  ;;  %v5410_v42 = vsel %vm4531_vm3, %v3368_v37, 0  ;;  %v13021_v40 = vrot.slane %v3209_v12, %v12326_v59  ;;  %v13024_v46 = vrot.slane %v10296_v35, %v12326_v59 }
 0x48a   : > { %10717 = vmatmul.mubr.msk.bf16.vlgmr.msra.gmra.mrb[44].mxu1 %vm4531_vm3, %v2210_v47  ;;  %v13013_v5 = vrot.slane %v3613_v55, %v12345_v9  ;;  %v1713_v11 = vrot.slane %v12997_v53, %v12326_v59  ;;  %v13032_v30 = vrot.slane %v2889_v18, %v12345_v9  ;;  %v3259_v44 = vcombine.low %v12943_v34, %v12959_v63 }
 0x48b   : > { %v13029_v36 = vrot.slane %v3614_v24, %v12345_v9  ;;  %10727 = vmatpush3.bf16.xpose.msra.mxu1 %v5410_v42  ;;  %v1698_v12 = vrot.slane %v12938_v4, %v12326_v59  ;;  %10728 = vmatprep.mubr.msk.bf16.mxu1 %vm11711_vm2, %v14694_v41  ;;  %v1640_v48 = vcombine.high %v1223_v50, %v12333_v3 }
 0x48c   : > { %v1981_v18 = vcombine.high %v12949_v54, %v14696_v2  ;;  %10738 = vmatprep.subr.bf16.mxu1 %v14694_v41  ;;  %v1655_v35 = vcombine.low %v12923_v1, %v1647_v62  ;;  %v1656_v47 = vcombine.high %v12923_v1, %v1647_v62  ;;  %v2006_v55 = vcombine.high %v12952_v33, %v14696_v2 }
 0x48d   : > { %v3166_v50 = vrot.slane %v3159_v31, %v12326_v59  ;;  %v1721_v24 = vcombine.low %v1698_v12, %v1713_v11  ;;  %v3174_v54 = vrot.slane %v10294_v39, %v12326_v59  ;;  %v3191_v42 = vrot.slane %v3184_v21, %v12326_v59 }
 0x48e   : > { %v14783_v1 = vcombine.high %v12837_v38, %v12840_v57  ;;  %v1722_v62 = vcombine.high %v1698_v12, %v1713_v11  ;;  %v2213_v58 = vpack.i.b16 %v2006_v55, %v1981_v18  ;;  %v2214_v16 = vshrl.u32 %v1981_v18, 16 }
 0x48f   : > { %v2215_v31 = vshrl.u32 %v2006_v55, 16  ;;  %v13071_v13 = vrot.slane %v2890_v19, %v12345_v9  ;;  %v3234_v61 = vcombine.low %v12991_v15, %v13006_v22  ;;  %v3175_v28 = vcombine.low %v3166_v50, %v3174_v54 }
 0x490   : > { %v3199_v33 = vrot.slane %v14783_v1, %v12326_v59  ;;  %v10297_v21 = vcombine.high %v12991_v15, %v13006_v22  ;;  %v14784_v38 = vcombine.high %v12900_v60, %v12333_v3  ;;  %v1654_v11 = vrot.slane %v1640_v48, %v12326_v59  ;;  %10723 = vmatmul.mubr.msk.bf16.vlgmr.msra.gmra.mrb[32].mxu0 %vm4531_vm3, %v2213_v58 }
 0x491   : > { %v2216_v12 = vpack.i.b16 %v2215_v31, %v2214_v16  ;;  %v1691_v19 = vcombine.high %v12938_v4, %v12333_v3  ;;  %v1706_v18 = vcombine.high %v12997_v53, %v12333_v3  ;;  %v3182_v55 = vrot.slane %v3175_v28, %v12345_v9  ;;  %10734 = vmatprep.mubr.msk.bf16.mxu0 %vm11711_vm2, %v14694_v41 }
 0x492   : > { %v3200_v39 = vcombine.low %v3191_v42, %v3199_v33  ;;  %v1639_v57 = vrot.slane %v14784_v38, %v12326_v59  ;;  %v1663_v60 = vrot.slane %v1655_v35, %v12345_v9  ;;  %v1670_v48 = vrot.slane %v1656_v47, %v12345_v9 }
 0x493   : > { %v1729_v58 = vrot.slane %v1721_v24, %v12345_v9  ;;  %v1736_v16 = vrot.slane %v1722_v62, %v12345_v9  ;;  %10729 = vmatmul.mubr.msk.bf16.vlgmr.msra.gmra.mrb[48].mxu1 %vm4531_vm3, %v2216_v12  ;;  %v3372_v54 = vshrl.u32 %v3182_v55, 16  ;;  %v2048_v42 = vcombine.low %v12905_v26, %v12912_v25 }
 0x494   : > { %v3207_v50 = vrot.slane %v3200_v39, %v12345_v9  ;;  %10740 = vmatprep.mubr.msk.bf16.mxu1 %vm11711_vm2, %v14694_v41  ;;  %v3284_v35 = vcombine.low %v13032_v30, %v13071_v13  ;;  %v10299_v47 = vcombine.high %v13032_v30, %v13071_v13  ;;  %v1671_v24 = vcombine.low %v1639_v57, %v1654_v11 }
 0x495   : > { %v3523_v1 = vrot.slane %v12956_v56, %v12326_v59  ;;  %v1672_v33 = vcombine.high %v1639_v57, %v1654_v11  ;;  %v1720_v62 = vrot.slane %v1706_v18, %v12326_v59  ;;  %v1705_v26 = vrot.slane %v1691_v19, %v12326_v59 }
 0x496   : > { %v3371_v4 = vpack.i.b16 %v3207_v50, %v3182_v55  ;;  %v3373_v53 = vshrl.u32 %v3207_v50, 16  ;;  %v2057_v25 = vcombine.low %v1663_v60, %v1670_v48  ;;  %v10280_v39 = vcombine.high %v1663_v60, %v1670_v48 }
 0x497   : > { %v3508_v38 = vrot.slane %v12914_v10, %v12326_v59  ;;  %v2082_v12 = vcombine.low %v1729_v58, %v1736_v16  ;;  %v10281_v0 = vcombine.high %v1729_v58, %v1736_v16  ;;  %v2055_v56 = vrot.slane %v2048_v42, %v12345_v9 }
 0x498   : > { %v5456_v31 = vsel %vm4531_vm3, %v3371_v4, 0  ;;  %v3374_v28 = vpack.i.b16 %v3373_v53, %v3372_v54  ;;  %v13115_v57 = vrot.slane %v1671_v24, %v12345_v9  ;;  %v3589_v19 = vrot.slane %v12968_v6, %v12326_v59 }
 0x499   : > { %10733 = vmatpush3.bf16.xpose.msra.mxu0 %v5456_v31  ;;  %v3531_v11 = vcombine.low %v3508_v38, %v3523_v1  ;;  %v14785_v10 = vcombine.low %v12876_v14, %v12879_v20  ;;  %v13124_v60 = vrot.slane %v1672_v33, %v12345_v9  ;;  %v1737_v48 = vcombine.low %v1705_v26, %v1720_v62 }
 0x49a   : > { %v5502_v37 = vsel %vm4531_vm3, %v3374_v28, 0  ;;  %10744 = vmatprep.subr.bf16.mxu0 %v14694_v41  ;;  %v1738_v58 = vcombine.high %v1705_v26, %v1720_v62  ;;  %v3532_v16 = vcombine.high %v3508_v38, %v3523_v1  ;;  %v13128_v4 = vrot.slane %v2057_v25, %v12326_v59 }
 0x49b   : > { %10739 = vmatpush3.bf16.xpose.msra.mxu1 %v5502_v37  ;;  %v2030_v18 = vrot.slane %v14785_v10, %v12345_v9  ;;  %v13131_v54 = vrot.slane %v10280_v39, %v12326_v59  ;;  %v3574_v6 = vrot.slane %v12940_v49, %v12326_v59  ;;  %v3183_v14 = vcombine.high %v3182_v55, %v14696_v2 }
 0x49c   : > { %10750 = vmatprep.subr.bf16.mxu1 %v14694_v41  ;;  %v2089_v20 = vrot.slane %v2082_v12, %v12326_v59  ;;  %v2097_v37 = vrot.slane %v10281_v0, %v12326_v59  ;;  %v3208_v42 = vcombine.high %v3207_v50, %v14696_v2  ;;  %v3539_v24 = vrot.slane %v3531_v11, %v12345_v9 }
 0x49d   : > { %v2219_v53 = vpack.i.b16 %v2055_v56, %v2030_v18  ;;  %v3597_v1 = vcombine.low %v3574_v6, %v3589_v19  ;;  %v2220_v33 = vshrl.u32 %v2030_v18, 16  ;;  %v2221_v62 = vshrl.u32 %v2055_v56, 16 }
 0x49e   : > { %v3546_v31 = vrot.slane %v3532_v16, %v12345_v9  ;;  %v3377_v28 = vpack.i.b16 %v3208_v42, %v3183_v14  ;;  %v3378_v49 = vshrl.u32 %v3183_v14, 16  ;;  %v3379_v26 = vshrl.u32 %v3208_v42, 16 }
 0x49f   : > { %v3598_v55 = vcombine.high %v3574_v6, %v3589_v19  ;;  %v2222_v25 = vpack.i.b16 %v2221_v62, %v2220_v33  ;;  %v2056_v0 = vcombine.high %v2055_v56, %v14696_v2  ;;  %v3225_v50 = vcombine.low %v13021_v40, %v13024_v46 }
 0x4a0   : > { %10735 = vmatmul.mubr.msk.bf16.vlgmr.msra.gmra.mrb[36].mxu0 %vm4531_vm3, %v2219_v53  ;;  %v5548_v39 = vsel %vm4531_vm3, %v3377_v28, 0  ;;  %v3380_v38 = vpack.i.b16 %v3379_v26, %v3378_v49  ;;  %v3241_v12 = vrot.slane %v3234_v61, %v12326_v59  ;;  %v3249_v11 = vrot.slane %v10297_v21, %v12326_v59 }
 0x4a1   : > { %10746 = vmatprep.mubr.msk.bf16.mxu0 %vm11711_vm2, %v14694_v41  ;;  %v2098_v19 = vcombine.low %v2089_v20, %v2097_v37  ;;  %v2107_v56 = vcombine.low %v13115_v57, %v13124_v60  ;;  %10745 = vmatpush3.bf16.xpose.msra.mxu0 %v5548_v39  ;;  %v2031_v40 = vcombine.high %v2030_v18, %v14696_v2  ;;  %v2227_v16 = vshrl.u32 %v2056_v0, 16 }
 0x4a2   : > { %10741 = vmatmul.mubr.msk.bf16.vlgmr.msra.gmra.mrb[52].mxu1 %vm4531_vm3, %v2222_v25  ;;  %v10282_v46 = vcombine.high %v13115_v57, %v13124_v60  ;;  %v5594_v10 = vsel %vm4531_vm3, %v3380_v38, 0  ;;  %10756 = vmatprep.subr.bf16.mxu0 %v14694_v41  ;;  %v3232_v15 = vrot.slane %v3225_v50, %v12345_v9  ;;  %v3250_v22 = vcombine.low %v3241_v12, %v3249_v11 }
 0x4a3   : > { %10752 = vmatprep.mubr.msk.bf16.mxu1 %vm11711_vm2, %v14694_v41  ;;  %v1745_v61 = vrot.slane %v1737_v48, %v12345_v9  ;;  %v1752_v21 = vrot.slane %v1738_v58, %v12345_v9  ;;  %v2073_v18 = vcombine.low %v13128_v4, %v13131_v54  ;;  %10751 = vmatpush3.bf16.xpose.msra.mxu1 %v5594_v10  ;;  %v2226_v53 = vshrl.u32 %v2031_v40, 16 }
 0x4a4   : > { %v3605_v57 = vrot.slane %v3597_v1, %v12345_v9  ;;  %v3612_v60 = vrot.slane %v3598_v55, %v12345_v9  ;;  %v4029_v6 = vcombine.low %v3539_v24, %v3546_v31  ;;  %v3257_v14 = vrot.slane %v3250_v22, %v12345_v9  ;;  %10762 = vmatprep.subr.bf16.mxu1 %v14694_v41 }
 0x4a5   : > { %v10300_v20 = vcombine.high %v3539_v24, %v3546_v31  ;;  %v2225_v37 = vpack.i.b16 %v2056_v0, %v2031_v40  ;;  %v2105_v48 = vrot.slane %v2098_v19, %v12345_v9  ;;  %v3384_v42 = vshrl.u32 %v3232_v15, 16 }
 0x4a6   : > { %v3383_v58 = vpack.i.b16 %v3257_v14, %v3232_v15  ;;  %v3385_v33 = vshrl.u32 %v3257_v14, 16  ;;  %v3258_v4 = vcombine.high %v3257_v14, %v14696_v2  ;;  %v2228_v54 = vpack.i.b16 %v2227_v16, %v2226_v53 }
 0x4a7   : > { %v3233_v1 = vcombine.high %v3232_v15, %v14696_v2  ;;  %v3291_v62 = vrot.slane %v3284_v35, %v12326_v59  ;;  %v3299_v24 = vrot.slane %v10299_v47, %v12326_v59  ;;  %v3266_v49 = vrot.slane %v3259_v44, %v12326_v59 }
 0x4a8   : > { %10747 = vmatmul.mubr.msk.bf16.vlgmr.msra.gmra.mrb[40].mxu0 %vm4531_vm3, %v2225_v37  ;;  %v5640_v31 = vsel %vm4531_vm3, %v3383_v58, 0  ;;  %v3386_v28 = vpack.i.b16 %v3385_v33, %v3384_v42  ;;  %v14786_v26 = vcombine.high %v12943_v34, %v12959_v63  ;;  %v4036_v55 = vrot.slane %v4029_v6, %v12326_v59 }
 0x4a9   : > { %v4044_v13 = vrot.slane %v10300_v20, %v12326_v59  ;;  %10757 = vmatpush3.bf16.xpose.msra.mxu0 %v5640_v31  ;;  %10758 = vmatprep.mubr.msk.bf16.mxu0 %vm11711_vm2, %v14694_v41  ;;  %v2080_v30 = vrot.slane %v2073_v18, %v12345_v9  ;;  %v3391_v47 = vshrl.u32 %v3258_v4, 16  ;;  %v4054_v25 = vcombine.low %v3605_v57, %v3612_v60 }
 0x4aa   : > { %v3274_v35 = vrot.slane %v14786_v26, %v12326_v59  ;;  %v10301_v0 = vcombine.high %v3605_v57, %v3612_v60  ;;  %10753 = vmatmul.mubr.msk.bf16.vlgmr.msra.gmra.mrb[56].mxu1 %vm4531_vm3, %v2228_v54  ;;  %v5686_v44 = vsel %vm4531_vm3, %v3386_v28, 0  ;;  %10768 = vmatprep.subr.bf16.mxu0 %v14694_v41  ;;  %v3300_v34 = vcombine.low %v3291_v62, %v3299_v24 }
 0x4ab   : > { %v2132_v63 = vcombine.low %v1745_v61, %v1752_v21  ;;  %v10283_v50 = vcombine.high %v1745_v61, %v1752_v21  ;;  %10763 = vmatpush3.bf16.xpose.msra.mxu1 %v5686_v44  ;;  %10764 = vmatprep.mubr.msk.bf16.mxu1 %vm11711_vm2, %v14694_v41  ;;  %v3390_v39 = vshrl.u32 %v3233_v1, 16  ;;  %v2114_v38 = vrot.slane %v2107_v56, %v12326_v59 }
 0x4ac   : > { %v3389_v12 = vpack.i.b16 %v3258_v4, %v3233_v1  ;;  %v2233_v11 = vshrl.u32 %v2105_v48, 16  ;;  %10774 = vmatprep.subr.bf16.mxu1 %v14694_v41  ;;  %v3275_v19 = vcombine.low %v3266_v49, %v3274_v35  ;;  %v2122_v40 = vrot.slane %v10282_v46, %v12326_v59 }
 0x4ad   : > { %v2231_v10 = vpack.i.b16 %v2105_v48, %v2080_v30  ;;  %v2232_v15 = vshrl.u32 %v2080_v30, 16  ;;  %v3392_v22 = vpack.i.b16 %v3391_v47, %v3390_v39  ;;  %v3307_v18 = vrot.slane %v3300_v34, %v12345_v9 }
 0x4ae   : > { %v4045_v61 = vcombine.low %v4036_v55, %v4044_v13  ;;  %v4061_v21 = vrot.slane %v4054_v25, %v12326_v59  ;;  %v4069_v16 = vrot.slane %v10301_v0, %v12326_v59  ;;  %v2139_v57 = vrot.slane %v2132_v63, %v12326_v59 }
 0x4af   : > { %v2147_v56 = vrot.slane %v10283_v50, %v12326_v59  ;;  %v2106_v60 = vcombine.high %v2105_v48, %v14696_v2  ;;  %v5732_v46 = vsel %vm4531_vm3, %v3389_v12, 0  ;;  %v2234_v6 = vpack.i.b16 %v2233_v11, %v2232_v15 }
 0x4b0   : > { %10759 = vmatmul.mubr.msk.bf16.vlgmr.msra.gmra.mrb[44].mxu0 %vm4531_vm3, %v2231_v10  ;;  %v3282_v14 = vrot.slane %v3275_v19, %v12345_v9  ;;  %v13219_v20 = vrot.slane %v4045_v61, %v12345_v9  ;;  %v2081_v37 = vcombine.high %v2080_v30, %v14696_v2  ;;  %v4070_v53 = vcombine.low %v4061_v21, %v4069_v16 }
 0x4b1   : > { %10769 = vmatpush3.bf16.xpose.msra.mxu0 %v5732_v46  ;;  %10770 = vmatprep.mubr.msk.bf16.mxu0 %vm11711_vm2, %v14694_v41  ;;  %v2123_v58 = vcombine.low %v2114_v38, %v2122_v40  ;;  %v5778_v48 = vsel %vm4531_vm3, %v3392_v22, 0  ;;  %v3397_v42 = vshrl.u32 %v3307_v18, 16  ;;  %v2239_v33 = vshrl.u32 %v2106_v60, 16 }
 0x4b2   : > { %10765 = vmatmul.mubr.msk.bf16.vlgmr.msra.gmra.mrb[60].mxu1 %vm4531_vm3, %v2234_v6  ;;  %10780 = vmatprep.subr.bf16.mxu0 %v14694_v41  ;;  %v2148_v4 = vcombine.low %v2139_v57, %v2147_v56  ;;  %v13230_v54 = vrot.slane %v4070_v53, %v12345_v9  ;;  %v13234_v1 = vcombine.high %v13219_v20, %v14696_v2  ;;  %v3396_v24 = vshrl.u32 %v3282_v14, 16 }
 0x4b3   : > { %10775 = vmatpush3.bf16.xpose.msra.mxu1 %v5778_v48  ;;  %10776 = vmatprep.mubr.msk.bf16.mxu1 %vm11711_vm2, %v14694_v41  ;;  %v3395_v62 = vpack.i.b16 %v3307_v18, %v3282_v14  ;;  %v14788_v31 = vcombine.low %v13000_v43, %v13003_v45  ;;  %v14789_v49 = vcombine.high %v13000_v43, %v13003_v45  ;;  %v2238_v55 = vshrl.u32 %v2081_v37, 16 }
 0x4b4   : > { %14787 = vst [vmem:[#allocation34_spill] sm:$0xff] %v13234_v1  ;;  %10786 = vmatprep.subr.bf16.mxu1 %v14694_v41  ;;  %v2237_v35 = vpack.i.b16 %v2106_v60, %v2081_v37  ;;  %v3308_v13 = vcombine.high %v3307_v18, %v14696_v2  ;;  %v13248_v30 = vcombine.high %v13230_v54, %v14696_v2  ;;  %v4438_v63 = vshrl.u32 %v13234_v1, 16 }
 0x4b5   : > { %v4086_v28 = vrot.slane %v14788_v31, %v12326_v59  ;;  %v4094_v26 = vrot.slane %v14789_v49, %v12326_v59  ;;  %v3398_v47 = vpack.i.b16 %v3397_v42, %v3396_v24  ;;  %v3283_v25 = vcombine.high %v3282_v14, %v14696_v2 }
 0x4b6   : > { %14790 = vst [vmem:[#allocation35_spill] sm:$0xff] %v13248_v30  ;;  %v14791_v44 = vcombine.low %v13013_v5, %v13029_v36  ;;  %v2155_v43 = vrot.slane %v2148_v4, %v12345_v9  ;;  %v4439_v50 = vshrl.u32 %v13248_v30, 16  ;;  %v5824_v39 = vsel %vm4531_vm3, %v3395_v62, 0 }
 0x4b7   : > { %v4095_v0 = vcombine.low %v4086_v28, %v4094_v26  ;;  %v2240_v38 = vpack.i.b16 %v2239_v33, %v2238_v55  ;;  %v14793_v11 = vcombine.high %v13013_v5, %v13029_v36  ;;  %v2130_v40 = vrot.slane %v2123_v58, %v12345_v9 }
 0x4b8   : > { %v4111_v34 = vrot.slane %v14791_v44, %v12326_v59  ;;  %10771 = vmatmul.mubr.msk.bf16.vlgmr.msra.gmra.mrb[48].mxu0 %vm4531_vm3, %v2237_v35  ;;  %v3403_v10 = vshrl.u32 %v3308_v13, 16  ;;  %v13272_v15 = vpack.i.b16 %v4439_v50, %v4438_v63  ;;  %v5870_v22 = vsel %vm4531_vm3, %v3398_v47, 0 }
 0x4b9   : > { %v13263_v12 = vrot.slane %v4095_v0, %v12345_v9  ;;  %v4119_v19 = vrot.slane %v14793_v11, %v12326_v59  ;;  %10781 = vmatpush3.bf16.xpose.msra.mxu0 %v5824_v39  ;;  %10782 = vmatprep.mubr.msk.bf16.mxu0 %vm11711_vm2, %v14694_v41  ;;  %v3401_v5 = vpack.i.b16 %v3308_v13, %v3283_v25  ;;  %v2245_v36 = vshrl.u32 %v2155_v43, 16 }
 0x4ba   : > { %14794 = vst [vmem:[#allocation37_spill] sm:$0xff] %v13272_v15  ;;  %10777 = vmatmul.mubr.msk.bf16.vlgmr.msra.gmra.mrb[64].mxu1 %vm4531_vm3, %v2240_v38  ;;  %10792 = vmatprep.subr.bf16.mxu0 %v14694_v41  ;;  %v3402_v61 = vshrl.u32 %v3283_v25, 16  ;;  %v2243_v57 = vpack.i.b16 %v2155_v43, %v2130_v40  ;;  %v2244_v56 = vshrl.u32 %v2130_v40, 16  ;;  %v2156_v48 = vcombine.high %v2155_v43, %v14696_v2 }
 0x4bb   : > { %14792 = vst [vmem:[#allocation36_spill] sm:$0xff] %v13263_v12  ;;  %v4120_v18 = vcombine.low %v4111_v34, %v4119_v19  ;;  %10787 = vmatpush3.bf16.xpose.msra.mxu1 %v5870_v22  ;;  %10788 = vmatprep.mubr.msk.bf16.mxu1 %vm11711_vm2, %v14694_v41  ;;  %v13285_v16 = vcombine.high %v13263_v12, %v14696_v2  ;;  %v4444_v6 = vshrl.u32 %v13263_v12, 16  ;;  %v5916_v53 = vsel %vm4531_vm3, %v3401_v5, 0 }
 0x4bc   : > { %10798 = vmatprep.subr.bf16.mxu1 %v14694_v41  ;;  %v3404_v60 = vpack.i.b16 %v3403_v10, %v3402_v61  ;;  %v2246_v58 = vpack.i.b16 %v2245_v36, %v2244_v56  ;;  %v14798_v42 = vlaneseq  ;;  %v2131_v49 = vcombine.high %v2130_v40, %v14696_v2 }
 0x4bd   : > { %v13281_v21 = vrot.slane %v4120_v18, %v12345_v9  ;;  %14796 = vst [vmem:[#allocation39_spill] sm:$0xff] %v13285_v16  ;;  %v4450_v24 = vshrl.u32 %v13285_v16, 16  ;;  %v4433_v26 = vshrl.u32 %v13230_v54, 16  ;;  %v4431_v55 = vpack.i.b16 %v13230_v54, %v13219_v20 }
 0x4be   : > { %v4528_v33 = vand.u32 127, %v14798_v42  ;;  %v5962_v28 = vsel %vm4531_vm3, %v3404_v60, 0  ;;  %v2251_v13 = vshrl.u32 %v2156_v48, 16  ;;  %v4432_v47 = vshrl.u32 %v13219_v20, 16 }
 0x4bf   : > { %14795 = vst [vmem:[#allocation38_spill] sm:$0xff] %v13281_v21  ;;  %v4445_v14 = vshrl.u32 %v13281_v21, 16  ;;  %v13293_v37 = vcombine.high %v13281_v21, %v14696_v2  ;;  %v2249_v25 = vpack.i.b16 %v2156_v48, %v2131_v49  ;;  %v2250_v0 = vshrl.u32 %v2131_v49, 16 }
 0x4c0   : > { %10783 = vmatmul.mubr.msk.bf16.vlgmr.msra.gmra.mrb[52].mxu0 %vm4531_vm3, %v2243_v57  ;;  %vm4529_vm4 = vcmp.gt.s32.totalorder %v4528_v33, %v12323_v51  ;;  %v4434_v44 = vpack.i.b16 %v4433_v26, %v4432_v47  ;;  %v6393_v43 = vsel %vm6391_vm5, %v4431_v55, 0 }
 0x4c1   : > { %14797 = vst [vmem:[#allocation40_spill] sm:$0xff] %v13293_v37  ;;  %v13299_v4 = vpack.i.b16 %v4445_v14, %v4444_v6  ;;  %v4451_v31 = vshrl.u32 %v13293_v37, 16  ;;  %10793 = vmatpush3.bf16.xpose.msra.mxu0 %v5916_v53  ;;  %10794 = vmatprep.mubr.msk.bf16.mxu0 %vm11711_vm2, %v14694_v41  ;;  %v13322_v34 = vsel %vm4529_vm4, -1e+09, %v14694_v41  ;;  %v2252_v63 = vpack.i.b16 %v2251_v13, %v2250_v0 }
 0x4c2   : > { %10789 = vmatmul.mubr.msk.bf16.vlgmr.msra.gmra.mrb[68].mxu1 %vm4531_vm3, %v2246_v58  ;;  %10804 = vmatprep.subr.bf16.mxu0 %v14694_v41  ;;  %v6439_v20 = vsel %vm6391_vm5, %v4434_v44, 0 }
 0x4c3   : > { %14799 = vst [vmem:[#allocation41_spill] sm:$0xff] %v13299_v4  ;;  %v13312_v35 = vpack.i.b16 %v4451_v31, %v4450_v24  ;;  %10799 = vmatpush3.bf16.xpose.msra.mxu1 %v5962_v28  ;;  %10800 = vmatprep.mubr.msk.bf16.mxu1 %vm11711_vm2, %v14694_v41 }
 0x4c4   : > { %10810 = vmatprep.subr.bf16.mxu1 %v14694_v41 }
 0x4c5   : > { %14800 = vst [vmem:[#allocation42_spill] sm:$0xff] %v13312_v35 }
 0x4c8   : > { %10795 = vmatmul.mubr.msk.bf16.vlgmr.msra.gmra.mrb[56].mxu0 %vm4531_vm3, %v2249_v25 }
 0x4c9   : > { %10805 = vmatpush3.bf16.msra.mxu0 %v6393_v43  ;;  %10806 = vmatprep.mubr.msk.bf16.mxu0 %vm11711_vm2, %v14694_v41 }
 0x4ca   : > { %10801 = vmatmul.mubr.msk.bf16.vlgmr.msra.gmra.mrb[72].mxu1 %vm4531_vm3, %v2252_v63  ;;  %10816 = vmatprep.subr.bf16.mxu0 %v14694_v41 }
 0x4cb   : > { %10811 = vmatpush3.bf16.msra.mxu1 %v6439_v20  ;;  %10812 = vmatprep.mubr.msk.bf16.mxu1 %vm11711_vm2, %v14694_v41 }
 0x4cc   : > { %10822 = vmatprep.subr.bf16.mxu1 %v14694_v41 }
 0x4d4   : > { %v4572_v50 = vpop.f32.mrb[8].mxu1 }
 0x4d5   : > { %v13327_v54 = vadd.f32 %v4572_v50, %v13322_v34  ;;  %v10616_v39 = vpop.f32.mrb[9].mxu1 }
 0x4d6   : > { %v4575_v38 = vpop.f32.mrb[10].mxu1 }
 0x4d7   : > { %v10617_v11 = vpop.f32.mrb[11].mxu1  ;;  %v6004_v19 = vsel %vm4531_vm3, %v13327_v54, -inf }
 0x4d8   : > { %6005 = vmax.xlane.f32.xlu0 %v6004_v19 }
 0x4dd   : > { %v4664_v40 = vpop.f32.mrb[0].mxu0 }
 0x4de   : > { %v13340_v10 = vadd.f32 %v4664_v40, %v13322_v34  ;;  %v10628_v22 = vpop.f32.mrb[1].mxu0 }
 0x4df   : > { %v4667_v18 = vpop.f32.mrb[2].mxu0  ;;  %v4618_v61 = vpop.f32.mrb[12].mxu1 }
 0x4e0   : > { %v10629_v5 = vpop.f32.mrb[3].mxu0  ;;  %v6010_v36 = vsel %vm4531_vm3, %v13340_v10, -inf  ;;  %v13345_v57 = vadd.f32 %v4618_v61, %v13322_v34  ;;  %v10622_v56 = vpop.f32.mrb[13].mxu1 }
 0x4e1   : > { %6011 = vmax.xlane.f32.xlu0 %v6010_v36  ;;  %v4621_v60 = vpop.f32.mrb[14].mxu1 }
 0x4e2   : > { %v10623_v6 = vpop.f32.mrb[15].mxu1  ;;  %v6007_v14 = vsel %vm4531_vm3, %v13345_v57, -inf }
 0x4e3   : > { %6008 = vmax.xlane.f32.xlu1 %v6007_v14 }
 0x4e9   : > { %v4756_v53 = vpop.f32.mrb[4].mxu0  ;;  %v4710_v33 = vpop.f32.mrb[16].mxu1 }
 0x4ea   : > { %v13350_v58 = vadd.f32 %v4756_v53, %v13322_v34  ;;  %v10640_v48 = vpop.f32.mrb[5].mxu0  ;;  %v13355_v28 = vadd.f32 %v4710_v33, %v13322_v34  ;;  %v10634_v49 = vpop.f32.mrb[17].mxu1 }
 0x4eb   : > { %v4759_v42 = vpop.f32.mrb[6].mxu0  ;;  %v4713_v26 = vpop.f32.mrb[18].mxu1 }
 0x4ec   : > { %v10641_v24 = vpop.f32.mrb[7].mxu0  ;;  %v6016_v31 = vsel %vm4531_vm3, %v13350_v58, -inf  ;;  %v10635_v55 = vpop.f32.mrb[19].mxu1  ;;  %v6013_v13 = vsel %vm4531_vm3, %v13355_v28, -inf }
 0x4ed   : > { %6017 = vmax.xlane.f32.xlu0 %v6016_v31 }
 0x4f1   : > { %v4848_v47 = vpop.f32.mrb[8].mxu0  ;;  %6014 = vmax.xlane.f32.xlu0 %v6013_v13 }
 0x4f2   : > { %v13360_v25 = vadd.f32 %v4848_v47, %v13322_v34  ;;  %v10652_v0 = vpop.f32.mrb[9].mxu0 }
 0x4f3   : > { %v4851_v44 = vpop.f32.mrb[10].mxu0  ;;  %v4802_v43 = vpop.f32.mrb[20].mxu1 }
 0x4f4   : > { %v10653_v63 = vpop.f32.mrb[11].mxu0  ;;  %v6022_v50 = vsel %vm4531_vm3, %v13360_v25, -inf  ;;  %v10646_v39 = vpop.f32.mrb[21].mxu1  ;;  %3417 = vrot.lane.b32.xlu1 %v12337_v7, %s11715_s6 }
 0x4f5   : > { %6023 = vmax.xlane.f32.xlu0 %v6022_v50  ;;  %v4805_v20 = vpop.f32.mrb[22].mxu1 }
 0x4f6   : > { %v10647_v38 = vpop.f32.mrb[23].mxu1 }
 0x4f8   : > { %3425 = vrot.lane.b32.xlu1 %v12339_v8, %s11715_s6 }
 0x4f9   : > { %v4940_v11 = vpop.f32.mrb[12].mxu0 }
 0x4fa   : > { %v10664_v19 = vpop.f32.mrb[13].mxu0 }
 0x4fb   : > { %v4943_v40 = vpop.f32.mrb[14].mxu0  ;;  %v4894_v22 = vpop.f32.mrb[24].mxu1  ;;  %v13373_v19 = vadd.f32 %v4802_v43, %v13322_v34 }
 0x4fc   : > { %v10665_v18 = vpop.f32.mrb[15].mxu0  ;;  %v10658_v5 = vpop.f32.mrb[25].mxu1  ;;  %3433 = vrot.lane.b32.xlu1 %v12357_v23, %s11715_s6 }
 0x4fd   : > { %v4897_v36 = vpop.f32.mrb[26].mxu1  ;;  %v13376_v5 = vadd.f32 %v4894_v22, %v13322_v34 }
 0x4fe   : > { %v10659_v61 = vpop.f32.mrb[27].mxu1  ;;  %v6019_v36 = vsel %vm4531_vm3, %v13373_v19, -inf }
 0x501   : > { %v5032_v56 = vpop.f32.mrb[16].mxu0 }
 0x502   : > { %v10676_v60 = vpop.f32.mrb[17].mxu0 }
 0x503   : > { %v5035_v6 = vpop.f32.mrb[18].mxu0  ;;  %v4986_v14 = vpop.f32.mrb[28].mxu1  ;;  %v6025_v60 = vsel %vm4531_vm3, %v13376_v5, -inf }
 0x504   : > { %v10677_v7 = vpop.f32.mrb[19].mxu0  ;;  %v10670_v53 = vpop.f32.mrb[29].mxu1  ;;  %v13381_v61 = vadd.f32 %v4986_v14, %v13322_v34  ;;  %v13386_v6 = vadd.f32 %v4940_v11, %v13322_v34 }
 0x505   : > { %v4989_v48 = vpop.f32.mrb[30].mxu1  ;;  %v13394_v7 = vadd.f32 %v5032_v56, %v13322_v34 }
 0x506   : > { %v10671_v42 = vpop.f32.mrb[31].mxu1  ;;  %v6031_v22 = vsel %vm4531_vm3, %v13381_v61, -inf  ;;  %v6028_v14 = vsel %vm4531_vm3, %v13386_v6, -inf }
 0x507   : > { %v6034_v42 = vsel %vm4531_vm3, %v13394_v7, -inf }
 0x509   : > { %v5124_v33 = vpop.f32.mrb[20].mxu0 }
 0x50a   : > { %v10688_v8 = vpop.f32.mrb[21].mxu0  ;;  %v13404_v48 = vadd.f32 %v5124_v33, %v13322_v34 }
 0x50b   : > { %v5127_v24 = vpop.f32.mrb[22].mxu0  ;;  %3409 = vrot.lane.b32.xlu0 %v12252_v32, %s11715_s6  ;;  %v5078_v31 = vpop.f32.mrb[32].mxu1 }
 0x50c   : > { %v10689_v49 = vpop.f32.mrb[23].mxu0  ;;  %v10682_v26 = vpop.f32.mrb[33].mxu1  ;;  %v13389_v43 = vadd.f32 %v5078_v31, %v13322_v34  ;;  %v6040_v31 = vsel %vm4531_vm3, %v13404_v48, -inf }
 0x50d   : > { %v5081_v55 = vpop.f32.mrb[34].mxu1  ;;  %v13422_v26 = vpop.permute.xlu1 %3415 }
 0x50e   : > { %v10683_v23 = vpop.f32.mrb[35].mxu1  ;;  %v6037_v11 = vsel %vm4531_vm3, %v13389_v43, -inf }
 0x511   : > { %v5216_v13 = vpop.f32.mrb[24].mxu0 }
 0x512   : > { %v10700_v47 = vpop.f32.mrb[25].mxu0  ;;  %v13414_v24 = vadd.f32 %v5216_v13, %v13322_v34 }
 0x513   : > { %v5219_v0 = vpop.f32.mrb[26].mxu0  ;;  %v5170_v44 = vpop.f32.mrb[36].mxu1 }
 0x514   : > { %v10701_v63 = vpop.f32.mrb[27].mxu0  ;;  %v10694_v50 = vpop.f32.mrb[37].mxu1  ;;  %v13399_v53 = vadd.f32 %v5170_v44, %v13322_v34  ;;  %v6046_v49 = vsel %vm4531_vm3, %v13414_v24, -inf }
 0x515   : > { %v5173_v39 = vpop.f32.mrb[38].mxu1  ;;  %v13429_v63 = vpop.permute.xlu1 %3423 }
 0x516   : > { %v10695_v20 = vpop.f32.mrb[39].mxu1  ;;  %v6043_v8 = vsel %vm4531_vm3, %v13399_v53, -inf }
 0x51b   : > { %v5262_v38 = vpop.f32.mrb[40].mxu1 }
 0x51c   : > { %v10706_v40 = vpop.f32.mrb[41].mxu1  ;;  %v13409_v56 = vadd.f32 %v5262_v38, %v13322_v34 }
 0x51d   : > { %v5265_v18 = vpop.f32.mrb[42].mxu1  ;;  %v13434_v40 = vpop.permute.xlu0 %3407 }
 0x51e   : > { %v10707_v32 = vpop.f32.mrb[43].mxu1  ;;  %v6049_v33 = vsel %vm4531_vm3, %v13409_v56, -inf }
 0x520   : > { %6020 = vmax.xlane.f32.xlu1 %v6019_v36  ;;  %v13438_v36 = vpop.permute.xlu1 %3431 }
 0x524   : > { %6026 = vmax.xlane.f32.xlu1 %v6025_v60 }
 0x528   : > { %6032 = vmax.xlane.f32.xlu1 %v6031_v22 }
 0x52a   : > { %6029 = vmax.xlane.f32.xlu0 %v6028_v14 }
 0x52c   : > { %6038 = vmax.xlane.f32.xlu1 %v6037_v11 }
 0x52e   : > { %6035 = vmax.xlane.f32.xlu0 %v6034_v42 }
 0x530   : > { %6044 = vmax.xlane.f32.xlu1 %v6043_v8 }
 0x532   : > { %6041 = vmax.xlane.f32.xlu0 %v6040_v31 }
 0x534   : > { %6050 = vmax.xlane.f32.xlu1 %v6049_v33 }
 0x536   : > { %6047 = vmax.xlane.f32.xlu0 %v6046_v49 }
 0x557   : > { %v5308_v55 = vpop.f32.mrb[28].mxu0 }
 0x558   : > { %v13425_v23 = vadd.f32 %v5308_v55, %v13322_v34  ;;  %v10712_v13 = vpop.f32.mrb[29].mxu0 }
 0x559   : > { %v5311_v47 = vpop.f32.mrb[30].mxu0 }
 0x55a   : > { %v10713_v0 = vpop.f32.mrb[31].mxu0  ;;  %v6052_v44 = vsel %vm4531_vm3, %v13425_v23, -inf }
 0x55b   : > { %6053 = vmax.xlane.f32.xlu0 %v6052_v44 }
 0x55d   : > { %v5354_v50 = vpop.f32.mrb[44].mxu1 }
 0x55e   : > { %v13432_v39 = vadd.f32 %v5354_v50, %v13322_v34  ;;  %v10718_v20 = vpop.f32.mrb[45].mxu1 }
 0x55f   : > { %v5357_v38 = vpop.f32.mrb[46].mxu1 }
 0x560   : > { %v10719_v18 = vpop.f32.mrb[47].mxu1  ;;  %v6055_v32 = vsel %vm4531_vm3, %v13432_v39, -inf }
 0x561   : > { %6056 = vmax.xlane.f32.xlu1 %v6055_v32 }
 0x563   : > { %v5400_v22 = vpop.f32.mrb[32].mxu0 }
 0x564   : > { %v13445_v11 = vadd.f32 %v5400_v22, %v13322_v34  ;;  %v10724_v42 = vpop.f32.mrb[33].mxu0 }
 0x565   : > { %v13440_v60 = vpop.xlane.xlu0 %6005  ;;  %v5403_v8 = vpop.f32.mrb[34].mxu0 }
 0x566   : > { %v5446_v31 = vpop.f32.mrb[48].mxu1  ;;  %v10725_v49 = vpop.f32.mrb[35].mxu0  ;;  %v6058_v13 = vsel %vm4531_vm3, %v13445_v11, -inf }
 0x567   : > { %v13448_v33 = vadd.f32 %v5446_v31, %v13322_v34  ;;  %v10730_v55 = vpop.f32.mrb[49].mxu1  ;;  %6059 = vmax.xlane.f32.xlu0 %v6058_v13 }
 0x568   : > { %v5449_v47 = vpop.f32.mrb[50].mxu1 }
 0x569   : > { %v10731_v44 = vpop.f32.mrb[51].mxu1  ;;  %v6061_v50 = vsel %vm4531_vm3, %v13448_v33, -inf }
 0x56a   : > { %6062 = vmax.xlane.f32.xlu1 %v6061_v50 }
 0x56e   : > { %v13454_v20 = vpop.xlane.xlu0 %6011 }
 0x570   : > { %v13442_v14 = vpop.xlane.xlu1 %6008 }
 0x573   : > { %v5492_v22 = vpop.f32.mrb[36].mxu0 }
 0x574   : > { %v3418_v0 = vpop.permute.xlu1 %3417  ;;  %v13461_v55 = vadd.f32 %v5492_v22, %v13322_v34  ;;  %v10736_v13 = vpop.f32.mrb[37].mxu0 }
 0x575   : > { %v5495_v47 = vpop.f32.mrb[38].mxu0  ;;  %v5538_v62 = vpop.f32.mrb[52].mxu1 }
 0x576   : > { %v10737_v46 = vpop.f32.mrb[39].mxu0  ;;  %v6064_v50 = vsel %vm4531_vm3, %v13461_v55, -inf  ;;  %v13466_v41 = vadd.f32 %v5538_v62, %v13322_v34  ;;  %v10742_v45 = vpop.f32.mrb[53].mxu1 }
 0x577   : > { %6065 = vmax.xlane.f32.xlu0 %v6064_v50  ;;  %v3474_v46 = vshrl.u32 %v3418_v0, 16 }
 0x578   : > { %v3426_v38 = vpop.permute.xlu1 %3425  ;;  %v6067_v22 = vsel %vm4531_vm3, %v13466_v41, -inf }
 0x579   : > { %v3481_v42 = vshrl.u32 %v3426_v38, 16  ;;  %6068 = vmax.xlane.f32.xlu1 %v6067_v22 }
 0x57a   : > { %v13456_v18 = vpop.xlane.xlu0 %6017 }
 0x57b   : > { %v5584_v51 = vpop.f32.mrb[40].mxu0 }
 0x57c   : > { %v3434_v32 = vpop.permute.xlu1 %3433  ;;  %v13476_v50 = vadd.f32 %v5584_v51, %v13322_v34 }
 0x57d   : > { %v3479_v31 = vpack.i.b16 %v3434_v32, %v3426_v38  ;;  %v3482_v49 = vshrl.u32 %v3434_v32, 16  ;;  %v5541_v38 = vpop.f32.mrb[54].mxu1 }
 0x57e   : > { %v13458_v8 = vpop.xlane.xlu0 %6014  ;;  %v10743_v32 = vpop.f32.mrb[55].mxu1  ;;  %v6070_v51 = vsel %vm4531_vm3, %v13476_v50, -inf }
 0x57f   : > { %v3483_v44 = vpack.i.b16 %v3482_v49, %v3481_v42  ;;  %v3780_v42 = vcombine.high %v3479_v31, %v12333_v3  ;;  %v3787_v62 = vrot.slane %v3479_v31, %v12326_v59  ;;  %v10748_v38 = vpop.f32.mrb[41].mxu0  ;;  %v5630_v16 = vpop.f32.mrb[56].mxu1  ;;  %6071 = vmax.xlane.f32.xlu0 %v6070_v51 }
 0x580   : > { %v5587_v35 = vpop.f32.mrb[42].mxu0  ;;  %v10754_v4 = vpop.f32.mrb[57].mxu1 }
 0x581   : > { %v3846_v45 = vcombine.high %v3483_v44, %v12333_v3  ;;  %v3794_v37 = vrot.slane %v3780_v42, %v12326_v59  ;;  %v10749_v31 = vpop.f32.mrb[43].mxu0  ;;  %v5633_v38 = vpop.f32.mrb[58].mxu1 }
 0x582   : > { %v13468_v2 = vpop.xlane.xlu0 %6023  ;;  %v10755_v12 = vpop.f32.mrb[59].mxu1 }
 0x583   : > { %v3860_v35 = vrot.slane %v3846_v45, %v12326_v59 }
 0x586   : > { %v3410_v49 = vpop.permute.xlu0 %3409 }
 0x587   : > { %v3471_v13 = vpack.i.b16 %v3418_v0, %v3410_v49  ;;  %v3473_v47 = vshrl.u32 %v3410_v49, 16  ;;  %v3853_v0 = vrot.slane %v3483_v44, %v12326_v59  ;;  %v13483_v49 = vadd.f32 %v5630_v16, %v13322_v34 }
 0x589   : > { %v3475_v32 = vpack.i.b16 %v3474_v46, %v3473_v47  ;;  %v3765_v29 = vcombine.high %v3471_v13, %v12333_v3  ;;  %v3772_v22 = vrot.slane %v3471_v13, %v12326_v59  ;;  %v6073_v16 = vsel %vm4531_vm3, %v13483_v49, -inf }
 0x58a   : > { %6074 = vmax.xlane.f32.xlu1 %v6073_v16 }
 0x58b   : > { %v3779_v46 = vrot.slane %v3765_v29, %v12326_v59  ;;  %v3795_v47 = vcombine.low %v3772_v22, %v3787_v62  ;;  %v3796_v13 = vcombine.high %v3772_v22, %v3787_v62  ;;  %v3831_v42 = vcombine.high %v3475_v32, %v12333_v3 }
 0x58c   : > { %v3838_v44 = vrot.slane %v3475_v32, %v12326_v59  ;;  %v5676_v32 = vpop.f32.mrb[44].mxu0 }
 0x58d   : > { %v3803_v4 = vrot.slane %v3795_v47, %v12345_v9  ;;  %v3811_v31 = vcombine.low %v3779_v46, %v3794_v37  ;;  %v3812_v21 = vcombine.high %v3779_v46, %v3794_v37  ;;  %v3810_v29 = vrot.slane %v3796_v13, %v12345_v9  ;;  %v10760_v46 = vpop.f32.mrb[45].mxu0 }
 0x58e   : > { %v3845_v51 = vrot.slane %v3831_v42, %v12326_v59  ;;  %v3861_v38 = vcombine.low %v3838_v44, %v3853_v0  ;;  %v3862_v45 = vcombine.high %v3838_v44, %v3853_v0  ;;  %v13501_v37 = vadd.f32 %v5676_v32, %v13322_v34  ;;  %v5679_v30 = vpop.f32.mrb[46].mxu0  ;;  %v5722_v0 = vpop.f32.mrb[60].mxu1 }
 0x58f   : > { %v3819_v62 = vrot.slane %v3811_v31, %v12345_v9  ;;  %v3826_v22 = vrot.slane %v3812_v21, %v12345_v9  ;;  %v4229_v13 = vcombine.low %v3803_v4, %v3810_v29  ;;  %v10308_v16 = vcombine.high %v3803_v4, %v3810_v29 }
 0x590   : > { %v3869_v12 = vrot.slane %v3861_v38, %v12345_v9  ;;  %v3876_v15 = vrot.slane %v3862_v45, %v12345_v9  ;;  %v3877_v1 = vcombine.low %v3845_v51, %v3860_v35  ;;  %v3878_v47 = vcombine.high %v3845_v51, %v3860_v35  ;;  %v10761_v45 = vpop.f32.mrb[47].mxu0  ;;  %v10766_v35 = vpop.f32.mrb[61].mxu1 }
 0x591   : > { %v4279_v42 = vcombine.low %v3819_v62, %v3826_v22  ;;  %v13506_v38 = vadd.f32 %v5722_v0, %v13322_v34  ;;  %v6076_v51 = vsel %vm4531_vm3, %v13501_v37, -inf  ;;  %v4236_v32 = vrot.slane %v4229_v13, %v12326_v59  ;;  %v5725_v30 = vpop.f32.mrb[62].mxu1 }
 0x592   : > { %v3885_v44 = vrot.slane %v3877_v1, %v12345_v9  ;;  %v3892_v21 = vrot.slane %v3878_v47, %v12345_v9  ;;  %v4254_v31 = vcombine.low %v3869_v12, %v3876_v15  ;;  %v10309_v3 = vcombine.high %v3869_v12, %v3876_v15  ;;  %6077 = vmax.xlane.f32.xlu0 %v6076_v51  ;;  %v10767_v46 = vpop.f32.mrb[63].mxu1 }
 0x593   : > { %v4244_v4 = vrot.slane %v10308_v16, %v12326_v59  ;;  %v4286_v15 = vrot.slane %v4279_v42, %v12326_v59  ;;  %v10310_v12 = vcombine.high %v3819_v62, %v3826_v22  ;;  %v6100_v47 = vsub.f32 %v13327_v54, %v13440_v60  ;;  %v5768_v42 = vpop.f32.mrb[48].mxu0 }
 0x594   : > { %v4261_v1 = vrot.slane %v4254_v31, %v12326_v59  ;;  %v4269_v29 = vrot.slane %v10309_v3, %v12326_v59  ;;  %v6079_v0 = vsel %vm4531_vm3, %v13506_v38, -inf  ;;  %v4304_v45 = vcombine.low %v3885_v44, %v3892_v21 }
 0x595   : > { %v10311_v13 = vcombine.high %v3885_v44, %v3892_v21  ;;  %6080 = vmax.xlane.f32.xlu1 %v6079_v0  ;;  %v4294_v16 = vrot.slane %v10310_v12, %v12326_v59  ;;  %v4245_v35 = vcombine.low %v4236_v32, %v4244_v4  ;;  %v6132_v22 = vmul.f32 1.442695, %v6100_v47  ;;  %v10772_v21 = vpop.f32.mrb[49].mxu0  ;;  %v5814_v4 = vpop.f32.mrb[64].mxu1 }
 0x596   : > { %v4270_v51 = vcombine.low %v4261_v1, %v4269_v29  ;;  %v4311_v31 = vrot.slane %v4304_v45, %v12326_v59  ;;  %v13529_v44 = vadd.f32 %v5768_v42, %v13322_v34  ;;  %v5771_v32 = vpop.f32.mrb[50].mxu0  ;;  %v14801_v46 = vmov 0   ;;  %v10778_v45 = vpop.f32.mrb[65].mxu1 }
 0x597   : > { %v4319_v3 = vrot.slane %v10311_v13, %v12326_v59  ;;  %v13523_v62 = vrot.slane %v4245_v35, %v12345_v9  ;;  %v4295_v60 = vcombine.low %v4286_v15, %v4294_v16  ;;  %v13540_v15 = vadd.f32 %v5814_v4, %v13322_v34  ;;  %v10773_v47 = vpop.f32.mrb[51].mxu0 }
 0x598   : > { %v13526_v54 = vrot.slane %v4270_v51, %v12345_v9  ;;  %v6082_v13 = vsel %vm4531_vm3, %v13529_v44, -inf  ;;  %v6102_v51 = vsub.f32 %v13340_v10, %v13454_v20  ;;  %11276 = vpow2.f32 %v6132_v22 }
 0x599   : > { %v4320_v30 = vcombine.low %v4311_v31, %v4319_v3  ;;  %v4480_v29 = vshrl.u32 %v13523_v62, 16  ;;  %v13537_v0 = vcombine.high %v13523_v62, %v14801_v46  ;;  %v13549_v35 = vrot.slane %v4295_v60, %v12345_v9  ;;  %v5817_v3 = vpop.f32.mrb[66].mxu1  ;;  %6083 = vmax.xlane.f32.xlu0 %v6082_v13  ;;  %v5860_v13 = vpop.f32.mrb[52].mxu0 }
 0x59a   : > { %v4481_v12 = vshrl.u32 %v13526_v54, 16  ;;  %v13546_v16 = vcombine.high %v13526_v54, %v14801_v46  ;;  %v6101_v31 = vsub.f32 %v13345_v57, %v13442_v14  ;;  %v10779_v32 = vpop.f32.mrb[67].mxu1  ;;  %v6085_v4 = vsel %vm4531_vm3, %v13540_v15, -inf }
 0x59b   : > { %14802 = vst [vmem:[#allocation43_spill] sm:$0xff] %v13549_v35  ;;  %v13558_v21 = vrot.slane %v4320_v30, %v12345_v9  ;;  %v4486_v47 = vshrl.u32 %v13537_v0, 16  ;;  %6086 = vmax.xlane.f32.xlu1 %v6085_v4  ;;  %v4492_v14 = vshrl.u32 %v13549_v35, 16  ;;  %v13572_v30 = vcombine.high %v13549_v35, %v14801_v46  ;;  %v10784_v4 = vpop.f32.mrb[53].mxu0  ;;  %v5906_v35 = vpop.f32.mrb[68].mxu1 }
 0x59c   : > { %v13555_v42 = vpack.i.b16 %v4481_v12, %v4480_v29  ;;  %v4487_v10 = vshrl.u32 %v13546_v16, 16  ;;  %v6134_v45 = vmul.f32 1.442695, %v6101_v31  ;;  %v13583_v32 = vadd.f32 %v5860_v13, %v13322_v34  ;;  %v5863_v31 = vpop.f32.mrb[54].mxu0  ;;  %v10790_v13 = vpop.f32.mrb[69].mxu1 }
 0x59d   : > { %14803 = vst [vmem:[#allocation44_spill] sm:$0xff] %v13558_v21  ;;  %v4493_v20 = vshrl.u32 %v13558_v21, 16  ;;  %14804 = vst [vmem:[#allocation45_spill] sm:$0xff] %v13572_v30  ;;  %v13578_v12 = vcombine.high %v13558_v21, %v14801_v46  ;;  %v4498_v60 = vshrl.u32 %v13572_v30, 16  ;;  %v6104_v1 = vsub.f32 %v13350_v58, %v13456_v18  ;;  %v5909_v30 = vpop.f32.mrb[70].mxu1  ;;  %v14814_v21 = vld [vmem:[#allocation32_spill] sm:$0xff] }
 0x59e   : > { %v13574_v29 = vpack.i.b16 %v4487_v10, %v4486_v47  ;;  %v6136_v10 = vmul.f32 1.442695, %v6102_v51  ;;  %v6088_v4 = vsel %vm4531_vm3, %v13583_v32, -inf  ;;  %11278 = vpow2.f32 %v6134_v45  ;;  %v10791_v22 = vpop.f32.mrb[71].mxu1 }
 0x59f   : > { %14805 = vst [vmem:[#allocation46_spill] sm:$0xff] %v13578_v12  ;;  %v13580_v3 = vpack.i.b16 %v4493_v20, %v4492_v14  ;;  %v4499_v47 = vshrl.u32 %v13578_v12, 16  ;;  %v13592_v14 = vadd.f32 %v5906_v35, %v13322_v34  ;;  %v10785_v20 = vpop.f32.mrb[55].mxu0  ;;  %6089 = vmax.xlane.f32.xlu0 %v6088_v4  ;;  %v6140_v58 = vmul.f32 1.442695, %v6104_v1 }
 0x5a0   : > { %11280 = vpow2.f32 %v6136_v10  ;;  %v6103_v18 = vsub.f32 %v13355_v28, %v13458_v8  ;;  %v5952_v35 = vpop.f32.mrb[56].mxu0  ;;  %v6106_v30 = vsub.f32 %v13360_v25, %v13468_v2 }
 0x5a1   : > { %14806 = vst [vmem:[#allocation47_spill] sm:$0xff] %v13580_v3  ;;  %v13596_v57 = vpack.i.b16 %v4499_v47, %v4498_v60  ;;  %v6091_v51 = vsel %vm4531_vm3, %v13592_v14, -inf  ;;  %v13603_v31 = vadd.f32 %v5952_v35, %v13322_v34  ;;  %v10796_v20 = vpop.f32.mrb[57].mxu0  ;;  %11282 = vpow2.f32 %v6140_v58  ;;  %v5998_v47 = vpop.f32.mrb[72].mxu1 }
 0x5a2   : > { %6092 = vmax.xlane.f32.xlu1 %v6091_v51  ;;  %v6138_v60 = vmul.f32 1.442695, %v6103_v18  ;;  %v5955_v45 = vpop.f32.mrb[58].mxu0  ;;  %v13608_v13 = vadd.f32 %v5998_v47, %v13322_v34  ;;  %v10802_v10 = vpop.f32.mrb[73].mxu1  ;;  %v6144_v2 = vmul.f32 1.442695, %v6106_v30 }
 0x5a3   : > { %14807 = vst [vmem:[#allocation48_spill] sm:$0xff] %v13596_v57  ;;  %v10797_v1 = vpop.f32.mrb[59].mxu0  ;;  %v6094_v28 = vsel %vm4531_vm3, %v13603_v31, -inf  ;;  %v13612_v8 = vpop.eup %11276 }
 0x5a4   : > { %v6001_v4 = vpop.f32.mrb[74].mxu1  ;;  %6095 = vmax.xlane.f32.xlu0 %v6094_v28  ;;  %v6097_v51 = vsel %vm4531_vm3, %v13608_v13, -inf  ;;  %11284 = vpow2.f32 %v6138_v60  ;;  %v6196_v25 = vsel %vm4531_vm3, %v13612_v8, 0.0 }
 0x5a5   : > { %v10803_v22 = vpop.f32.mrb[75].mxu1  ;;  %11286 = vpow2.f32 %v6144_v2 }
 0x5a6   : > { %6098 = vmax.xlane.f32.xlu1 %v6097_v51 }
 0x5a8   : > { %v13616_v58 = vpop.eup %11278  ;;  %6197 = vadd.xlane.f32.xlu0 %v6196_v25 }
 0x5a9   : > { %v6199_v20 = vsel %vm4531_vm3, %v13616_v58, 0.0 }
 0x5aa   : > { %v13621_v35 = vpop.eup %11280  ;;  %6200 = vadd.xlane.f32.xlu1 %v6199_v20 }
 0x5ab   : > { %v6202_v60 = vsel %vm4531_vm3, %v13621_v35, 0.0  ;;  %v13628_v1 = vpop.eup %11282 }
 0x5ac   : > { %6203 = vadd.xlane.f32.xlu0 %v6202_v60  ;;  %v6208_v28 = vsel %vm4531_vm3, %v13628_v1, 0.0 }
 0x5ad   : > { %v6021_v34 = vpop.xlane.xlu1 %6020 }
 0x5ae   : > { %v6105_v18 = vsub.f32 %v13373_v19, %v6021_v34  ;;  %v13633_v51 = vpop.eup %11284 }
 0x5b0   : > { %v6142_v45 = vmul.f32 1.442695, %v6105_v18  ;;  %6209 = vadd.xlane.f32.xlu0 %v6208_v28  ;;  %v6205_v18 = vsel %vm4531_vm3, %v13633_v51, 0.0 }
 0x5b1   : > { %v6027_v47 = vpop.xlane.xlu1 %6026 }
 0x5b2   : > { %11288 = vpow2.f32 %v6142_v45  ;;  %v6107_v30 = vsub.f32 %v13376_v5, %v6027_v47  ;;  %v13639_v47 = vpop.eup %11286 }
 0x5b3   : > { %v6214_v28 = vsel %vm4531_vm3, %v13639_v47, 0.0 }
 0x5b4   : > { %v6146_v19 = vmul.f32 1.442695, %v6107_v30  ;;  %6206 = vadd.xlane.f32.xlu0 %v6205_v18 }
 0x5b5   : > { %v6033_v10 = vpop.xlane.xlu1 %6032 }
 0x5b6   : > { %11290 = vpow2.f32 %v6146_v19  ;;  %v6109_v22 = vsub.f32 %v13381_v61, %v6033_v10 }
 0x5b7   : > { %v6030_v4 = vpop.xlane.xlu0 %6029 }
 0x5b8   : > { %v6108_v2 = vsub.f32 %v13386_v6, %v6030_v4  ;;  %v6150_v34 = vmul.f32 1.442695, %v6109_v22  ;;  %6215 = vadd.xlane.f32.xlu0 %v6214_v28 }
 0x5b9   : > { %v6039_v5 = vpop.xlane.xlu1 %6038 }
 0x5ba   : > { %v6148_v25 = vmul.f32 1.442695, %v6108_v2  ;;  %11292 = vpow2.f32 %v6150_v34  ;;  %v6111_v45 = vsub.f32 %v13389_v43, %v6039_v5 }
 0x5bb   : > { %v6036_v20 = vpop.xlane.xlu0 %6035 }
 0x5bc   : > { %11294 = vpow2.f32 %v6148_v25  ;;  %v6110_v61 = vsub.f32 %v13394_v7, %v6036_v20  ;;  %v13642_v60 = vpop.eup %11288  ;;  %v6154_v30 = vmul.f32 1.442695, %v6111_v45 }
 0x5bd   : > { %v6045_v19 = vpop.xlane.xlu1 %6044  ;;  %v6211_v10 = vsel %vm4531_vm3, %v13642_v60, 0.0 }
 0x5be   : > { %v6152_v6 = vmul.f32 1.442695, %v6110_v61  ;;  %11296 = vpow2.f32 %v6154_v30  ;;  %6212 = vadd.xlane.f32.xlu1 %v6211_v10  ;;  %v6113_v2 = vsub.f32 %v13399_v53, %v6045_v19 }
 0x5bf   : > { %v6042_v4 = vpop.xlane.xlu0 %6041 }
 0x5c0   : > { %11298 = vpow2.f32 %v6152_v6  ;;  %v6112_v43 = vsub.f32 %v13404_v48, %v6042_v4  ;;  %v13649_v22 = vpop.eup %11290  ;;  %v6158_v30 = vmul.f32 1.442695, %v6113_v2 }
 0x5c1   : > { %v6051_v34 = vpop.xlane.xlu1 %6050  ;;  %v6217_v25 = vsel %vm4531_vm3, %v13649_v22, 0.0 }
 0x5c2   : > { %v6156_v7 = vmul.f32 1.442695, %v6112_v43  ;;  %v6115_v18 = vsub.f32 %v13409_v56, %v6051_v34  ;;  %6218 = vadd.xlane.f32.xlu1 %v6217_v25 }
 0x5c3   : > { %v6048_v5 = vpop.xlane.xlu0 %6047 }
 0x5c4   : > { %11300 = vpow2.f32 %v6156_v7  ;;  %v6114_v20 = vsub.f32 %v13414_v24, %v6048_v5  ;;  %v13656_v45 = vpop.eup %11292  ;;  %v6162_v61 = vmul.f32 1.442695, %v6115_v18 }
 0x5c5   : > { %v6223_v53 = vsel %vm4531_vm3, %v13656_v45, 0.0 }
 0x5c6   : > { %v13658_v48 = vpop.eup %11294  ;;  %v6160_v6 = vmul.f32 1.442695, %v6114_v20  ;;  %11302 = vpow2.f32 %v6162_v61  ;;  %6224 = vadd.xlane.f32.xlu1 %v6223_v53 }
 0x5c7   : > { %v6220_v19 = vsel %vm4531_vm3, %v13658_v48, 0.0 }
 0x5c8   : > { %11304 = vpow2.f32 %v6160_v6  ;;  %6221 = vadd.xlane.f32.xlu0 %v6220_v19  ;;  %v13664_v56 = vpop.eup %11296 }
 0x5c9   : > { %11306 = vpow2.f32 %v6158_v30  ;;  %v6229_v10 = vsel %vm4531_vm3, %v13664_v56, 0.0 }
 0x5ca   : > { %v13666_v24 = vpop.eup %11298  ;;  %6230 = vadd.xlane.f32.xlu1 %v6229_v10 }
 0x5cb   : > { %v6226_v28 = vsel %vm4531_vm3, %v13666_v24, 0.0 }
 0x5cc   : > { %6227 = vadd.xlane.f32.xlu0 %v6226_v28 }
 0x5ce   : > { %v13672_v4 = vpop.eup %11300 }
 0x5cf   : > { %v6232_v43 = vsel %vm4531_vm3, %v13672_v4, 0.0 }
 0x5d0   : > { %6233 = vadd.xlane.f32.xlu0 %v6232_v43  ;;  %v13676_v7 = vpop.eup %11302 }
 0x5d1   : > { %v6241_v34 = vsel %vm4531_vm3, %v13676_v7, 0.0 }
 0x5d2   : > { %v13678_v2 = vpop.eup %11304  ;;  %6242 = vadd.xlane.f32.xlu1 %v6241_v34 }
 0x5d3   : > { %v6238_v25 = vsel %vm4531_vm3, %v13678_v2, 0.0  ;;  %v13684_v5 = vpop.eup %11306 }
 0x5d4   : > { %6239 = vadd.xlane.f32.xlu0 %v6238_v25  ;;  %v6235_v18 = vsel %vm4531_vm3, %v13684_v5, 0.0 }
 0x5d8   : > { %6236 = vadd.xlane.f32.xlu0 %v6235_v18 }
 0x5e8   : > { %v6054_v20 = vpop.xlane.xlu0 %6053 }
 0x5e9   : > { %v6116_v61 = vsub.f32 %v13425_v23, %v6054_v20 }
 0x5eb   : > { %v6164_v30 = vmul.f32 1.442695, %v6116_v61 }
 0x5ed   : > { %11308 = vpow2.f32 %v6164_v30 }
 0x5ee   : > { %v6057_v6 = vpop.xlane.xlu1 %6056 }
 0x5ef   : > { %v6117_v53 = vsub.f32 %v13432_v39, %v6057_v6 }
 0x5f1   : > { %v6166_v19 = vmul.f32 1.442695, %v6117_v53 }
 0x5f3   : > { %11310 = vpow2.f32 %v6166_v19 }
 0x5f4   : > { %v6060_v10 = vpop.xlane.xlu0 %6059 }
 0x5f5   : > { %v6118_v43 = vsub.f32 %v13445_v11, %v6060_v10 }
 0x5f7   : > { %v13690_v28 = vpop.eup %11308  ;;  %v6063_v34 = vpop.xlane.xlu1 %6062  ;;  %v6168_v18 = vmul.f32 1.442695, %v6118_v43 }
 0x5f8   : > { %v6244_v25 = vsel %vm4531_vm3, %v13690_v28, 0.0  ;;  %v6119_v57 = vsub.f32 %v13448_v33, %v6063_v34 }
 0x5f9   : > { %6245 = vadd.xlane.f32.xlu0 %v6244_v25  ;;  %11312 = vpow2.f32 %v6168_v18 }
 0x5fa   : > { %v6170_v23 = vmul.f32 1.442695, %v6119_v57 }
 0x5fc   : > { %11314 = vpow2.f32 %v6170_v23 }
 0x5fd   : > { %v13696_v20 = vpop.eup %11310 }
 0x5fe   : > { %v6247_v39 = vsel %vm4531_vm3, %v13696_v20, 0.0 }
 0x5ff   : > { %6248 = vadd.xlane.f32.xlu1 %v6247_v39 }
 0x603   : > { %v13701_v30 = vpop.eup %11312 }
 0x604   : > { %v6066_v61 = vpop.xlane.xlu0 %6065  ;;  %14808 = vst [vmem:[#allocation49_spill] sm:$0xff] %v13701_v30  ;;  %v6250_v53 = vsel %vm4531_vm3, %v13701_v30, 0.0 }
 0x605   : > { %v6120_v11 = vsub.f32 %v13461_v55, %v6066_v61  ;;  %6251 = vadd.xlane.f32.xlu0 %v6250_v53 }
 0x606   : > { %v13705_v33 = vpop.eup %11314  ;;  %v6069_v19 = vpop.xlane.xlu1 %6068 }
 0x607   : > { %v6172_v6 = vmul.f32 1.442695, %v6120_v11  ;;  %14809 = vst [vmem:[#allocation50_spill] sm:$0xff] %v13705_v33  ;;  %v6253_v57 = vsel %vm4531_vm3, %v13705_v33, 0.0  ;;  %v6121_v10 = vsub.f32 %v13466_v41, %v6069_v19 }
 0x608   : > { %6254 = vadd.xlane.f32.xlu1 %v6253_v57 }
 0x609   : > { %11316 = vpow2.f32 %v6172_v6  ;;  %v6174_v34 = vmul.f32 1.442695, %v6121_v10 }
 0x60c   : > { %v6072_v43 = vpop.xlane.xlu0 %6071 }
 0x60d   : > { %v6122_v55 = vsub.f32 %v13476_v50, %v6072_v43 }
 0x60f   : > { %v6176_v25 = vmul.f32 1.442695, %v6122_v55 }
 0x611   : > { %11318 = vpow2.f32 %v6176_v25 }
 0x612   : > { %11320 = vpow2.f32 %v6174_v34 }
 0x613   : > { %v13711_v18 = vpop.eup %11316 }
 0x614   : > { %14810 = vst [vmem:[#allocation51_spill] sm:$0xff] %v13711_v18  ;;  %v6256_v23 = vsel %vm4531_vm3, %v13711_v18, 0.0 }
 0x615   : > { %6257 = vadd.xlane.f32.xlu0 %v6256_v23  ;;  %v3466_v23 = vshrl.u32 %v13438_v36, 16 }
 0x617   : > { %v6075_v53 = vpop.xlane.xlu1 %6074 }
 0x619   : > { %3419 = vrot.lane.b32.xlu1 %v12395_v17, %s11715_s6 }
 0x61b   : > { %v13718_v41 = vpop.eup %11318 }
 0x61c   : > { %14811 = vst [vmem:[#allocation52_spill] sm:$0xff] %v13718_v41  ;;  %v6262_v50 = vsel %vm4531_vm3, %v13718_v41, 0.0  ;;  %v13722_v6 = vpop.eup %11320 }
 0x61d   : > { %14812 = vst [vmem:[#allocation53_spill] sm:$0xff] %v13722_v6  ;;  %6263 = vadd.xlane.f32.xlu0 %v6262_v50  ;;  %3427 = vrot.lane.b32.xlu1 %v12417_v52, %s11715_s6  ;;  %v6123_v52 = vsub.f32 %v13483_v49, %v6075_v53  ;;  %v3458_v50 = vshrl.u32 %v13422_v26, 16 }
 0x61f   : > { %v6078_v39 = vpop.xlane.xlu0 %6077 }
 0x620   : > { %v6124_v61 = vsub.f32 %v13501_v37, %v6078_v39  ;;  %v6259_v37 = vsel %vm4531_vm3, %v13722_v6, 0.0 }
 0x621   : > { %6260 = vadd.xlane.f32.xlu0 %v6259_v37  ;;  %v3465_v37 = vshrl.u32 %v13429_v63, 16 }
 0x622   : > { %v6180_v11 = vmul.f32 1.442695, %v6124_v61  ;;  %v6081_v57 = vpop.xlane.xlu1 %6080  ;;  %v6178_v61 = vmul.f32 1.442695, %v6123_v52  ;;  %v3463_v52 = vpack.i.b16 %v13438_v36, %v13429_v63 }
 0x623   : > { %v13750_v6 = vpack.i.b16 %v3466_v23, %v3465_v37 }
 0x624   : > { %11322 = vpow2.f32 %v6180_v11  ;;  %v6125_v11 = vsub.f32 %v13506_v38, %v6081_v57  ;;  %v3455_v57 = vpack.i.b16 %v13422_v26, %v13434_v40  ;;  %v3648_v30 = vcombine.high %v3463_v52, %v14814_v21 }
 0x625   : > { %v3721_v38 = vrot.slane %v13750_v6, %v12326_v59 }
 0x626   : > { %v13730_v17 = vpop.xlane.xlu0 %6083  ;;  %v6182_v53 = vmul.f32 1.442695, %v6125_v11  ;;  %v3633_v33 = vcombine.high %v3455_v57, %v14814_v21 }
 0x628   : > { %v13734_v43 = vpop.xlane.xlu1 %6086 }
 0x62c   : > { %v13736_v55 = vpop.xlane.xlu0 %6089 }
 0x62e   : > { %v13728_v19 = vpop.eup %11322 }
 0x62f   : > { %14813 = vst [vmem:[#allocation54_spill] sm:$0xff] %v13728_v19  ;;  %v6268_v10 = vsel %vm4531_vm3, %v13728_v19, 0.0  ;;  %v13738_v34 = vpop.xlane.xlu1 %6092  ;;  %v3457_v19 = vshrl.u32 %v13434_v40, 16 }
 0x630   : > { %6269 = vadd.xlane.f32.xlu0 %v6268_v10 }
 0x631   : > { %v13741_v25 = vpop.xlane.xlu0 %6095  ;;  %v3459_v41 = vpack.i.b16 %v3458_v50, %v3457_v19  ;;  %v3640_v50 = vrot.slane %v3455_v57, %v12326_v59 }
 0x633   : > { %v13744_v39 = vpop.xlane.xlu1 %6098  ;;  %v3706_v23 = vrot.slane %v3459_v41, %v12326_v59 }
 0x635   : > { %v6198_v10 = vpop.xlane.xlu0 %6197  ;;  %v3729_v11 = vcombine.low %v3706_v23, %v3721_v38  ;;  %v3730_v19 = vcombine.high %v3706_v23, %v3721_v38 }
 0x636   : > { %11324 = vrcp.f32 %v6198_v10 }
 0x637   : > { %v6201_v49 = vpop.xlane.xlu1 %6200  ;;  %11326 = vpow2.f32 %v6178_v61  ;;  %v3655_v61 = vrot.slane %v3463_v52, %v12326_v59  ;;  %v3744_v18 = vrot.slane %v3730_v19, %v12345_v9 }
 0x638   : > { %11328 = vrcp.f32 %v6201_v49 }
 0x639   : > { %v6204_v12 = vpop.xlane.xlu0 %6203  ;;  %v3664_v49 = vcombine.high %v3640_v50, %v3655_v61 }
 0x63a   : > { %11330 = vrcp.f32 %v6204_v12  ;;  %v3663_v12 = vcombine.low %v3640_v50, %v3655_v61  ;;  %v3699_v61 = vcombine.high %v3459_v41, %v14814_v21 }
 0x63b   : > { %11332 = vpow2.f32 %v6182_v53  ;;  %v3737_v53 = vrot.slane %v3729_v11, %v12345_v9  ;;  %v14816_v11 = vld [vmem:[#allocation34_spill] sm:$0xff] }
 0x63c   : > { %v3671_v52 = vrot.slane %v3663_v12, %v12345_v9  ;;  %v3662_v12 = vrot.slane %v3648_v30, %v12326_v59 }
 0x63d   : > { %v6210_v37 = vpop.xlane.xlu0 %6209  ;;  %v10305_v41 = vcombine.high %v3737_v53, %v3744_v18 }
 0x640   : > { %v11325_v63 = vpop.eup %11324 }
 0x641   : > { %v6207_v36 = vpop.xlane.xlu0 %6206  ;;  %v13763_v10 = vpop.eup %11326  ;;  %v6324_v26 = vmul.f32 %v11325_v63, %v13612_v8 }
 0x642   : > { %11334 = vrcp.f32 %v6207_v36  ;;  %v11329_v40 = vpop.eup %11328  ;;  %v6265_v8 = vsel %vm4531_vm3, %v13763_v10, 0.0  ;;  %v4154_v36 = vcombine.low %v3737_v53, %v3744_v18 }
 0x643   : > { %11336 = vrcp.f32 %v6210_v37  ;;  %v6325_v38 = vmul.f32 %v11329_v40, %v13616_v58  ;;  %v6356_v23 = vpack.c.bf16 %v6324_v26, %v6324_v26  ;;  %v3714_v37 = vcombine.high %v13750_v6, %v14814_v21  ;;  %v14815_v58 = vld [vmem:[#allocation35_spill] sm:$0xff]  ;;  %6266 = vadd.xlane.f32.xlu1 %v6265_v8 }
 0x644   : > { %v14817_v19 = vpack.i.b16 %v14815_v58, %v14816_v11  ;;  %v14818_v26 = vmov 0.0   ;;  %v6126_v6 = vsub.f32 %v13529_v44, %v13730_v17  ;;  %v3647_v44 = vrot.slane %v3633_v33, %v12326_v59 }
 0x645   : > { %10807 = vmatmul.mubr.msk.bf16.vlgmr.msra.gmra.mrb[60].mxu0 %vm4531_vm3, %v6356_v23  ;;  %v6357_v50 = vpack.c.bf16 %v6325_v38, %v6325_v38  ;;  %v6216_v23 = vpop.xlane.xlu0 %6215  ;;  %v14819_v38 = vld [vmem:[#allocation37_spill] sm:$0xff]  ;;  %v3713_v17 = vrot.slane %v3699_v61, %v12326_v59  ;;  %v4161_v58 = vrot.slane %v4154_v36, %v12326_v59  ;;  %v4169_v11 = vrot.slane %v10305_v41, %v12326_v59 }
 0x646   : > { %3411 = vrot.lane.b32.xlu0 %v12250_v27, %s11715_s6  ;;  %v11331_v27 = vpop.eup %11330  ;;  %v6485_v57 = vsel %vm6391_vm5, %v14817_v19, 0  ;;  %10818 = vmatprep.mubr.msk.bf16.mxu0 %vm11711_vm2, %v14818_v26  ;;  %v6531_v8 = vsel %vm6391_vm5, %v14819_v38, 0  ;;  %v6184_v19 = vmul.f32 1.442695, %v6126_v6  ;;  %v3679_v33 = vcombine.low %v3647_v44, %v3662_v12 }
 0x647   : > { %v13773_v63 = vpop.eup %11332  ;;  %10817 = vmatpush3.bf16.msra.mxu0 %v6485_v57  ;;  %v6326_v40 = vmul.f32 %v11331_v27, %v13621_v35  ;;  %10813 = vmatmul.mubr.msk.bf16.vlgmr.msra.gmra.mrb[76].mxu1 %vm4531_vm3, %v6357_v50  ;;  %v3728_v35 = vrot.slane %v3714_v37, %v12326_v59  ;;  %v3680_v38 = vcombine.high %v3647_v44, %v3662_v12 }
 0x648   : > { %10828 = vmatprep.subr.bf16.mxu0 %v14818_v26  ;;  %10823 = vmatpush3.bf16.msra.mxu1 %v6531_v8  ;;  %v6271_v18 = vsel %vm4531_vm3, %v13773_v63, 0.0  ;;  %v6128_v37 = vsub.f32 %v13583_v32, %v13736_v55  ;;  %v14823_v55 = vld [vmem:[#allocation41_spill] sm:$0xff] }
 0x649   : > { %10824 = vmatprep.mubr.msk.bf16.mxu1 %vm11711_vm2, %v14818_v26  ;;  %10834 = vmatprep.subr.bf16.mxu1 %v14818_v26  ;;  %v6358_v57 = vpack.c.bf16 %v6326_v40, %v6326_v40  ;;  %v6623_v44 = vsel %vm6391_vm5, %v14823_v55, 0 }
 0x64a   : > { %6272 = vadd.xlane.f32.xlu1 %v6271_v18  ;;  %v3745_v18 = vcombine.low %v3713_v17, %v3728_v35 }
 0x64b   : > { %v6213_v3 = vpop.xlane.xlu1 %6212 }
 0x64c   : > { %11338 = vrcp.f32 %v6213_v3  ;;  %v3678_v3 = vrot.slane %v3664_v49, %v12345_v9  ;;  %v11335_v27 = vpop.eup %11334 }
 0x64d   : > { %11340 = vrcp.f32 %v6216_v23  ;;  %v11337_v50 = vpop.eup %11336  ;;  %v6327_v8 = vmul.f32 %v11335_v27, %v13633_v51  ;;  %10819 = vmatmul.mubr.msk.bf16.vlgmr.msra.gmra.mrb[64].mxu0 %vm4531_vm3, %v6358_v57  ;;  %v14821_v23 = vld [vmem:[#allocation36_spill] sm:$0xff]  ;;  %v3694_v27 = vrot.slane %v3680_v38, %v12345_v9 }
 0x64e   : > { %v4129_v49 = vcombine.low %v3671_v52, %v3678_v3  ;;  %v10304_v53 = vcombine.high %v3671_v52, %v3678_v3  ;;  %v3746_v52 = vcombine.high %v3713_v17, %v3728_v35  ;;  %v14820_v3 = vld [vmem:[#allocation38_spill] sm:$0xff]  ;;  %10830 = vmatprep.mubr.msk.bf16.mxu0 %vm11711_vm2, %v14818_v26  ;;  %v6328_v51 = vmul.f32 %v11337_v50, %v13628_v1  ;;  %v14824_v38 = vld [vmem:[#allocation40_spill] sm:$0xff] }
 0x64f   : > { %v6219_v30 = vpop.xlane.xlu1 %6218  ;;  %v14822_v36 = vpack.i.b16 %v14820_v3, %v14821_v23  ;;  %v6359_v32 = vpack.c.bf16 %v6327_v8, %v6327_v8  ;;  %v4170_v35 = vcombine.low %v4161_v58, %v4169_v11  ;;  %v6188_v17 = vmul.f32 1.442695, %v6128_v37  ;;  %v14825_v8 = vld [vmem:[#allocation39_spill] sm:$0xff] }
 0x650   : > { %11342 = vrcp.f32 %v6219_v30  ;;  %v4136_v40 = vrot.slane %v4129_v49, %v12326_v59  ;;  %v4144_v12 = vrot.slane %v10304_v53, %v12326_v59  ;;  %v6129_v49 = vsub.f32 %v13592_v14, %v13738_v34 }
 0x651   : > { %v6577_v41 = vsel %vm6391_vm5, %v14822_v36, 0  ;;  %11344 = vpow2.f32 %v6184_v19  ;;  %10825 = vmatmul.mubr.msk.bf16.vlgmr.msra.gmra.mrb[80].mxu1 %vm4531_vm3, %v6359_v32  ;;  %v3687_v1 = vrot.slane %v3679_v33, %v12345_v9  ;;  %v3753_v14 = vrot.slane %v3745_v18, %v12345_v9 }
 0x652   : > { %10829 = vmatpush3.bf16.msra.mxu0 %v6577_v41  ;;  %10835 = vmatpush3.bf16.msra.mxu1 %v6623_v44  ;;  %v4145_v19 = vcombine.low %v4136_v40, %v4144_v12  ;;  %v3760_v34 = vrot.slane %v3746_v52, %v12345_v9  ;;  %v6360_v11 = vpack.c.bf16 %v6328_v51, %v6328_v51  ;;  %v6190_v50 = vmul.f32 1.442695, %v6129_v49  ;;  %v14827_v40 = vld [vmem:[#allocation42_spill] sm:$0xff] }
 0x653   : > { %10840 = vmatprep.subr.bf16.mxu0 %v14818_v26  ;;  %10836 = vmatprep.mubr.msk.bf16.mxu1 %vm11711_vm2, %v14818_v26  ;;  %v6225_v58 = vpop.xlane.xlu1 %6224  ;;  %v6130_v37 = vsub.f32 %v13603_v31, %v13741_v25  ;;  %v4179_v36 = vcombine.low %v3687_v1, %v3694_v27  ;;  %v6715_v12 = vsel %vm6391_vm5, %v14827_v40, 0 }
 0x654   : > { %10846 = vmatprep.subr.bf16.mxu1 %v14818_v26  ;;  %v4152_v18 = vrot.slane %v4145_v19, %v12345_v9  ;;  %v4204_v41 = vcombine.low %v3753_v14, %v3760_v34  ;;  %v10307_v31 = vcombine.high %v3753_v14, %v3760_v34 }
 0x655   : > { %v6222_v61 = vpop.xlane.xlu0 %6221  ;;  %10831 = vmatmul.mubr.msk.bf16.vlgmr.msra.gmra.mrb[68].mxu0 %vm4531_vm3, %v6360_v11  ;;  %v4186_v19 = vrot.slane %v4179_v36, %v12326_v59 }
 0x656   : > { %v11339_v6 = vpop.eup %11338  ;;  %11346 = vrcp.f32 %v6222_v61  ;;  %v14826_v61 = vpack.i.b16 %v14824_v38, %v14825_v8  ;;  %10842 = vmatprep.mubr.msk.bf16.mxu0 %vm11711_vm2, %v14818_v26  ;;  %v4211_v14 = vrot.slane %v4204_v41, %v12326_v59 }
 0x657   : > { %v6329_v53 = vmul.f32 %v11339_v6, %v13642_v60  ;;  %v4177_v60 = vrot.slane %v4170_v35, %v12345_v9  ;;  %v11341_v57 = vpop.eup %11340  ;;  %11348 = vpow2.f32 %v6188_v17  ;;  %v6192_v6 = vmul.f32 1.442695, %v6130_v37  ;;  %v14828_v17 = vld [vmem:[#allocation33_spill] sm:$0xff]  ;;  %v6231_v49 = vpop.xlane.xlu1 %6230 }
 0x658   : > { %v6669_v3 = vsel %vm6391_vm5, %v14826_v61, 0  ;;  %11350 = vrcp.f32 %v6225_v58  ;;  %v6330_v25 = vmul.f32 %v11341_v57, %v13639_v47  ;;  %v10306_v35 = vcombine.high %v3687_v1, %v3694_v27 }
 0x659   : > { %v6228_v30 = vpop.xlane.xlu0 %6227  ;;  %v6361_v33 = vpack.c.bf16 %v6329_v53, %v6329_v53  ;;  %10841 = vmatpush3.bf16.msra.mxu0 %v6669_v3  ;;  %11352 = vpow2.f32 %v6190_v50  ;;  %v4457_v32 = vshrl.u32 %v4177_v60, 16  ;;  %v4455_v55 = vpack.i.b16 %v4177_v60, %v4152_v18 }
 0x65a   : > { %v11343_v23 = vpop.eup %11342  ;;  %10852 = vmatprep.subr.bf16.mxu0 %v14818_v26  ;;  %11354 = vrcp.f32 %v6228_v30  ;;  %v4456_v53 = vshrl.u32 %v4152_v18, 16  ;;  %v6362_v58 = vpack.c.bf16 %v6330_v25, %v6330_v25  ;;  %v4178_v11 = vcombine.high %v4177_v60, %v14801_v46 }
 0x65b   : > { %10837 = vmatmul.mubr.msk.bf16.vlgmr.msra.gmra.mrb[84].mxu1 %vm4531_vm3, %v6361_v33  ;;  %v13848_v51 = vpop.eup %11344  ;;  %v6331_v47 = vmul.f32 %v11343_v23, %v13649_v22  ;;  %3435 = vrot.lane.b32.xlu1 %v14828_v17, %s11715_s6  ;;  %11356 = vpow2.f32 %v6192_v6  ;;  %v4219_v22 = vrot.slane %v10307_v31, %v12326_v59  ;;  %v6761_v30 = vsel %vm6391_vm5, %v4455_v55, 0 }
 0x65c   : > { %10847 = vmatpush3.bf16.msra.mxu1 %v6715_v12  ;;  %10848 = vmatprep.mubr.msk.bf16.mxu1 %vm11711_vm2, %v14818_v26  ;;  %v4458_v1 = vpack.i.b16 %v4457_v32, %v4456_v53  ;;  %v6274_v27 = vsel %vm4531_vm3, %v13848_v51, 0.0  ;;  %11358 = vrcp.f32 %v6231_v49  ;;  %v4194_v37 = vrot.slane %v10306_v35, %v12326_v59 }
 0x65d   : > { %v6234_v52 = vpop.xlane.xlu0 %6233  ;;  %10858 = vmatprep.subr.bf16.mxu1 %v14818_v26  ;;  %10843 = vmatmul.mubr.msk.bf16.vlgmr.msra.gmra.mrb[72].mxu0 %vm4531_vm3, %v6362_v58  ;;  %v4153_v60 = vcombine.high %v4152_v18, %v14801_v46  ;;  %v6363_v33 = vpack.c.bf16 %v6331_v47, %v6331_v47  ;;  %v4220_v8 = vcombine.low %v4211_v14, %v4219_v22  ;;  %v4463_v61 = vshrl.u32 %v4178_v11, 16 }
 0x65e   : > { %10853 = vmatpush3.bf16.msra.mxu0 %v6761_v30  ;;  %10854 = vmatprep.mubr.msk.bf16.mxu0 %vm11711_vm2, %v14818_v26  ;;  %11360 = vrcp.f32 %v6234_v52  ;;  %v4195_v25 = vcombine.low %v4186_v19, %v4194_v37  ;;  %v6127_v49 = vsub.f32 %v13540_v15, %v13734_v43  ;;  %v6131_v30 = vsub.f32 %v13608_v13, %v13744_v39 }
 0x65f   : > { %10864 = vmatprep.subr.bf16.mxu0 %v14818_v26  ;;  %v4461_v36 = vpack.i.b16 %v4178_v11, %v4153_v60  ;;  %v4462_v6 = vshrl.u32 %v4153_v60, 16  ;;  %v4227_v12 = vrot.slane %v4220_v8, %v12345_v9  ;;  %v6243_v11 = vpop.xlane.xlu1 %6242 }
 0x660   : > { %v11347_v44 = vpop.eup %11346  ;;  %v6186_v22 = vmul.f32 1.442695, %v6127_v49  ;;  %v6194_v13 = vmul.f32 1.442695, %v6131_v30 }
 0x661   : > { %v6240_v34 = vpop.xlane.xlu0 %6239  ;;  %v6332_v57 = vmul.f32 %v11347_v44, %v13658_v48  ;;  %v13865_v50 = vpop.eup %11348  ;;  %v6807_v48 = vsel %vm6391_vm5, %v4458_v1, 0  ;;  %v4464_v32 = vpack.i.b16 %v4463_v61, %v4462_v6  ;;  %v6853_v44 = vsel %vm6391_vm5, %v4461_v36, 0 }
 0x662   : > { %v11351_v38 = vpop.eup %11350  ;;  %v6280_v3 = vsel %vm4531_vm3, %v13865_v50, 0.0  ;;  %v4469_v19 = vshrl.u32 %v4227_v12, 16 }
 0x663   : > { %10849 = vmatmul.mubr.msk.bf16.vlgmr.msra.gmra.mrb[88].mxu1 %vm4531_vm3, %v6363_v33  ;;  %v6364_v23 = vpack.c.bf16 %v6332_v57, %v6332_v57  ;;  %v13878_v18 = vpop.eup %11352  ;;  %v6333_v41 = vmul.f32 %v11351_v38, %v13656_v45  ;;  %v4202_v45 = vrot.slane %v4195_v25, %v12345_v9  ;;  %v6899_v53 = vsel %vm6391_vm5, %v4464_v32, 0 }
 0x664   : > { %10859 = vmatpush3.bf16.msra.mxu1 %v6807_v48  ;;  %10860 = vmatprep.mubr.msk.bf16.mxu1 %vm11711_vm2, %v14818_v26  ;;  %v11355_v40 = vpop.eup %11354  ;;  %v6283_v55 = vsel %vm4531_vm3, %v13878_v18, 0.0  ;;  %v14829_v32 = vpack.i.b16 %v13526_v54, %v13523_v62 }
 0x665   : > { %6275 = vadd.xlane.f32.xlu0 %v6274_v27  ;;  %v6237_v31 = vpop.xlane.xlu0 %6236  ;;  %10870 = vmatprep.subr.bf16.mxu1 %v14818_v26  ;;  %v13887_v35 = vpop.eup %11356  ;;  %v6365_v52 = vpack.c.bf16 %v6333_v41, %v6333_v41  ;;  %v6334_v17 = vmul.f32 %v11355_v40, %v13666_v24  ;;  %v4467_v14 = vpack.i.b16 %v4227_v12, %v4202_v45  ;;  %v4468_v15 = vshrl.u32 %v4202_v45, 16 }
 0x666   : > { %10855 = vmatmul.mubr.msk.bf16.vlgmr.msra.gmra.mrb[76].mxu0 %vm4531_vm3, %v6364_v23  ;;  %11362 = vrcp.f32 %v6237_v31  ;;  %v11359_v47 = vpop.eup %11358  ;;  %v6286_v58 = vsel %vm4531_vm3, %v13887_v35, 0.0  ;;  %v4228_v27 = vcombine.high %v4227_v12, %v14801_v46 }
 0x667   : > { %10865 = vmatpush3.bf16.msra.mxu0 %v6853_v44  ;;  %10866 = vmatprep.mubr.msk.bf16.mxu0 %vm11711_vm2, %v14818_v26  ;;  %v6335_v24 = vmul.f32 %v11359_v47, %v13664_v56  ;;  %11364 = vrcp.f32 %v6240_v34  ;;  %v6366_v43 = vpack.c.bf16 %v6334_v17, %v6334_v17  ;;  %v4470_v57 = vpack.i.b16 %v4469_v19, %v4468_v15 }
 0x668   : > { %10876 = vmatprep.subr.bf16.mxu0 %v14818_v26  ;;  %v11361_v1 = vpop.eup %11360  ;;  %11366 = vrcp.f32 %v6243_v11  ;;  %v6945_v56 = vsel %vm6391_vm5, %v4467_v14, 0  ;;  %v4203_v34 = vcombine.high %v4202_v45, %v14801_v46  ;;  %v4475_v38 = vshrl.u32 %v4228_v27, 16 }
 0x669   : > { %6281 = vadd.xlane.f32.xlu0 %v6280_v3  ;;  %v6367_v37 = vpack.c.bf16 %v6335_v24, %v6335_v24  ;;  %v6336_v33 = vmul.f32 %v11361_v1, %v13672_v4  ;;  %11368 = vpow2.f32 %v6186_v22  ;;  %v6991_v39 = vsel %vm6391_vm5, %v4470_v57, 0  ;;  %v14834_v57 = vld [vmem:[#allocation43_spill] sm:$0xff] }
 0x66a   : > { %v4473_v48 = vpack.i.b16 %v4228_v27, %v4203_v34  ;;  %v4474_v61 = vshrl.u32 %v4203_v34, 16  ;;  %11370 = vpow2.f32 %v6194_v13  ;;  %v14830_v19 = vpack.i.b16 %v13546_v16, %v13537_v0  ;;  %v14831_v16 = vld [vmem:[#allocation49_spill] sm:$0xff]  ;;  %v14833_v27 = vld [vmem:[#allocation44_spill] sm:$0xff] }
 0x66b   : > { %10861 = vmatmul.mubr.msk.bf16.vlgmr.msra.gmra.mrb[92].mxu1 %vm4531_vm3, %v6365_v52  ;;  %v6368_v4 = vpack.c.bf16 %v6336_v33, %v6336_v33  ;;  %v7267_v11 = vsel %vm6391_vm5, %v13574_v29, 0  ;;  %v14835_v29 = vpack.i.b16 %v14833_v27, %v14834_v57 }
 0x66c   : > { %10871 = vmatpush3.bf16.msra.mxu1 %v6899_v53  ;;  %10872 = vmatprep.mubr.msk.bf16.mxu1 %vm11711_vm2, %v14818_v26  ;;  %v4476_v23 = vpack.i.b16 %v4475_v38, %v4474_v61  ;;  %v7037_v36 = vsel %vm6391_vm5, %v4473_v48, 0  ;;  %v14838_v61 = vld [vmem:[#allocation46_spill] sm:$0xff] }
 0x66d   : > { %6284 = vadd.xlane.f32.xlu0 %v6283_v55  ;;  %10882 = vmatprep.subr.bf16.mxu1 %v14818_v26  ;;  %v7129_v55 = vsel %vm6391_vm5, %v14829_v32, 0  ;;  %v14843_v32 = vld [vmem:[#allocation48_spill] sm:$0xff] }
 0x66e   : > { %10867 = vmatmul.mubr.msk.bf16.vlgmr.msra.gmra.mrb[80].mxu0 %vm4531_vm3, %v6366_v43 }
 0x66f   : > { %10877 = vmatpush3.bf16.msra.mxu0 %v6945_v56  ;;  %10878 = vmatprep.mubr.msk.bf16.mxu0 %vm11711_vm2, %v14818_v26  ;;  %v7313_v56 = vsel %vm6391_vm5, %v14835_v29, 0 }
 0x670   : > { %v11363_v60 = vpop.eup %11362  ;;  %10888 = vmatprep.subr.bf16.mxu0 %v14818_v26 }
 0x671   : > { %6287 = vadd.xlane.f32.xlu0 %v6286_v58  ;;  %v6337_v8 = vmul.f32 %v11363_v60, %v13684_v5  ;;  %v11365_v3 = vpop.eup %11364  ;;  %v7083_v5 = vsel %vm6391_vm5, %v4476_v23, 0  ;;  %v7221_v58 = vsel %vm6391_vm5, %v14830_v19, 0 }
 0x672   : > { %v11367_v31 = vpop.eup %11366  ;;  %v6338_v25 = vmul.f32 %v11365_v3, %v13678_v2 }
 0x673   : > { %10873 = vmatmul.mubr.msk.bf16.vlgmr.msra.gmra.mrb[96].mxu1 %vm4531_vm3, %v6367_v37  ;;  %v6369_v41 = vpack.c.bf16 %v6337_v8, %v6337_v8  ;;  %v13930_v6 = vpop.eup %11368  ;;  %v6339_v40 = vmul.f32 %v11367_v31, %v13676_v7  ;;  %v7175_v7 = vsel %vm6391_vm5, %v13555_v42, 0  ;;  %v14836_v37 = vld [vmem:[#allocation47_spill] sm:$0xff] }
 0x674   : > { %10883 = vmatpush3.bf16.msra.mxu1 %v6991_v39  ;;  %10884 = vmatprep.mubr.msk.bf16.mxu1 %vm11711_vm2, %v14818_v26  ;;  %v6370_v12 = vpack.c.bf16 %v6338_v25, %v6338_v25  ;;  %v6277_v2 = vsel %vm4531_vm3, %v13930_v6, 0.0  ;;  %v13941_v44 = vpop.eup %11370  ;;  %v7359_v60 = vsel %vm6391_vm5, %v14836_v37, 0  ;;  %v14837_v39 = vld [vmem:[#allocation51_spill] sm:$0xff] }
 0x675   : > { %10894 = vmatprep.subr.bf16.mxu1 %v14818_v26  ;;  %v6371_v45 = vpack.c.bf16 %v6339_v40, %v6339_v40  ;;  %v6289_v62 = vsel %vm4531_vm3, %v13941_v44, 0.0  ;;  %v14842_v40 = vld [vmem:[#allocation53_spill] sm:$0xff] }
 0x676   : > { %10879 = vmatmul.mubr.msk.bf16.vlgmr.msra.gmra.mrb[84].mxu0 %vm4531_vm3, %v6368_v4  ;;  %v14839_v4 = vld [vmem:[#allocation45_spill] sm:$0xff] }
 0x677   : > { %10889 = vmatpush3.bf16.msra.mxu0 %v7037_v36  ;;  %10890 = vmatprep.mubr.msk.bf16.mxu0 %vm11711_vm2, %v14818_v26  ;;  %v14840_v3 = vpack.i.b16 %v14838_v61, %v14839_v4 }
 0x678   : > { %10900 = vmatprep.subr.bf16.mxu0 %v14818_v26 }
 0x679   : > { %v7405_v23 = vsel %vm6391_vm5, %v14840_v3, 0 }
 0x67b   : > { %10885 = vmatmul.mubr.msk.bf16.vlgmr.msra.gmra.mrb[100].mxu1 %vm4531_vm3, %v6369_v41  ;;  %v14841_v41 = vld [vmem:[#allocation52_spill] sm:$0xff] }
 0x67c   : > { %10895 = vmatpush3.bf16.msra.mxu1 %v7083_v5  ;;  %10896 = vmatprep.mubr.msk.bf16.mxu1 %vm11711_vm2, %v14818_v26 }
 0x67d   : > { %10906 = vmatprep.subr.bf16.mxu1 %v14818_v26 }
 0x67e   : > { %10891 = vmatmul.mubr.msk.bf16.vlgmr.msra.gmra.mrb[88].mxu0 %vm4531_vm3, %v6370_v12 }
 0x67f   : > { %6278 = vadd.xlane.f32.xlu1 %v6277_v2  ;;  %10901 = vmatpush3.bf16.msra.mxu0 %v7129_v55  ;;  %v7451_v55 = vsel %vm6391_vm5, %v14843_v32, 0 }
 0x680   : > { %10902 = vmatprep.mubr.msk.bf16.mxu0 %vm11711_vm2, %v14818_v26  ;;  %10912 = vmatprep.subr.bf16.mxu0 %v14818_v26 }
 0x683   : > { %10897 = vmatmul.mubr.msk.bf16.vlgmr.msra.gmra.mrb[104].mxu1 %vm4531_vm3, %v6371_v45  ;;  %6290 = vadd.xlane.f32.xlu1 %v6289_v62 }
 0x684   : > { %10907 = vmatpush3.bf16.msra.mxu1 %v7175_v7  ;;  %10908 = vmatprep.mubr.msk.bf16.mxu1 %vm11711_vm2, %v14818_v26 }
 0x685   : > { %10918 = vmatprep.subr.bf16.mxu1 %v14818_v26 }
 0x686   : > { %v6246_v54 = vpop.xlane.xlu0 %6245 }
 0x687   : > { %11372 = vrcp.f32 %v6246_v54 }
 0x68c   : > { %v6249_v52 = vpop.xlane.xlu1 %6248 }
 0x68d   : > { %11374 = vrcp.f32 %v6249_v52 }
 0x691   : > { %v11373_v47 = vpop.eup %11372 }
 0x692   : > { %v6340_v17 = vmul.f32 %v11373_v47, %v13690_v28  ;;  %v6252_v49 = vpop.xlane.xlu0 %6251 }
 0x693   : > { %11376 = vrcp.f32 %v6252_v49 }
 0x694   : > { %v6372_v53 = vpack.c.bf16 %v6340_v17, %v6340_v17 }
 0x695   : > { %v6255_v42 = vpop.xlane.xlu1 %6254 }
 0x696   : > { %10903 = vmatmul.mubr.msk.bf16.vlgmr.msra.gmra.mrb[92].mxu0 %vm4531_vm3, %v6372_v53  ;;  %11378 = vrcp.f32 %v6255_v42 }
 0x697   : > { %v11375_v14 = vpop.eup %11374  ;;  %10913 = vmatpush3.bf16.msra.mxu0 %v7221_v58  ;;  %10914 = vmatprep.mubr.msk.bf16.mxu0 %vm11711_vm2, %v14818_v26 }
 0x698   : > { %v6341_v24 = vmul.f32 %v11375_v14, %v13696_v20  ;;  %10924 = vmatprep.subr.bf16.mxu0 %v14818_v26  ;;  %v14832_v20 = vld [vmem:[#allocation50_spill] sm:$0xff] }
 0x699   : > { %v3420_v45 = vpop.permute.xlu1 %3419 }
 0x69a   : > { %v6373_v28 = vpack.c.bf16 %v6341_v24, %v6341_v24  ;;  %v3490_v17 = vshrl.u32 %v3420_v45, 16 }
 0x69c   : > { %10909 = vmatmul.mubr.msk.bf16.vlgmr.msra.gmra.mrb[108].mxu1 %vm4531_vm3, %v6373_v28 }
 0x69d   : > { %10919 = vmatpush3.bf16.msra.mxu1 %v7267_v11  ;;  %10920 = vmatprep.mubr.msk.bf16.mxu1 %vm11711_vm2, %v14818_v26  ;;  %v11377_v0 = vpop.eup %11376  ;;  %v3428_v62 = vpop.permute.xlu1 %3427 }
 0x69e   : > { %10930 = vmatprep.subr.bf16.mxu1 %v14818_v26  ;;  %v6342_v15 = vmul.f32 %v11377_v0, %v14831_v16  ;;  %v3497_v14 = vshrl.u32 %v3428_v62, 16 }
 0x6a0   : > { %v11379_v43 = vpop.eup %11378  ;;  %v6374_v30 = vpack.c.bf16 %v6342_v15, %v6342_v15 }
 0x6a1   : > { %v6343_v22 = vmul.f32 %v11379_v43, %v14832_v20 }
 0x6a2   : > { %v6258_v1 = vpop.xlane.xlu0 %6257  ;;  %10915 = vmatmul.mubr.msk.bf16.vlgmr.msra.gmra.mrb[96].mxu0 %vm4531_vm3, %v6374_v30 }
 0x6a3   : > { %11380 = vrcp.f32 %v6258_v1  ;;  %v6375_v34 = vpack.c.bf16 %v6343_v22, %v6343_v22  ;;  %10925 = vmatpush3.bf16.msra.mxu0 %v7313_v56  ;;  %10926 = vmatprep.mubr.msk.bf16.mxu0 %vm11711_vm2, %v14818_v26 }
 0x6a4   : > { %10936 = vmatprep.subr.bf16.mxu0 %v14818_v26 }
 0x6a5   : > { %10921 = vmatmul.mubr.msk.bf16.vlgmr.msra.gmra.mrb[112].mxu1 %vm4531_vm3, %v6375_v34 }
 0x6a6   : > { %10931 = vmatpush3.bf16.msra.mxu1 %v7359_v60  ;;  %10932 = vmatprep.mubr.msk.bf16.mxu1 %vm11711_vm2, %v14818_v26 }
 0x6a7   : > { %10942 = vmatprep.subr.bf16.mxu1 %v14818_v26 }
 0x6aa   : > { %v6264_v33 = vpop.xlane.xlu0 %6263 }
 0x6ab   : > { %11382 = vrcp.f32 %v6264_v33 }
 0x6ad   : > { %v11381_v13 = vpop.eup %11380 }
 0x6ae   : > { %v6344_v38 = vmul.f32 %v11381_v13, %v14837_v39  ;;  %v6261_v48 = vpop.xlane.xlu0 %6260 }
 0x6af   : > { %11384 = vrcp.f32 %v6261_v48 }
 0x6b0   : > { %v6376_v8 = vpack.c.bf16 %v6344_v38, %v6344_v38 }
 0x6b2   : > { %10927 = vmatmul.mubr.msk.bf16.vlgmr.msra.gmra.mrb[100].mxu0 %vm4531_vm3, %v6376_v8 }
 0x6b3   : > { %10937 = vmatpush3.bf16.msra.mxu0 %v7405_v23  ;;  %10938 = vmatprep.mubr.msk.bf16.mxu0 %vm11711_vm2, %v14818_v26 }
 0x6b4   : > { %10948 = vmatprep.subr.bf16.mxu0 %v14818_v26 }
 0x6b5   : > { %v11383_v36 = vpop.eup %11382 }
 0x6b6   : > { %v6346_v31 = vmul.f32 %v11383_v36, %v14841_v41 }
 0x6b8   : > { %v6378_v25 = vpack.c.bf16 %v6346_v31, %v6346_v31 }
 0x6b9   : > { %v11385_v5 = vpop.eup %11384 }
 0x6ba   : > { %v6345_v12 = vmul.f32 %v11385_v5, %v14842_v40  ;;  %10939 = vmatmul.mubr.msk.bf16.vlgmr.msra.gmra.mrb[104].mxu0 %vm4531_vm3, %v6378_v25 }
 0x6bb   : > { %10950 = vmatprep.mubr.msk.bf16.mxu0 %vm11711_vm2, %v14818_v26 }
 0x6bc   : > { %v6377_v2 = vpack.c.bf16 %v6345_v12, %v6345_v12 }
 0x6bd   : > { %v6270_v7 = vpop.xlane.xlu0 %6269 }
 0x6be   : > { %10933 = vmatmul.mubr.msk.bf16.vlgmr.msra.gmra.mrb[116].mxu1 %vm4531_vm3, %v6377_v2 }
 0x6bf   : > { %10943 = vmatpush3.bf16.msra.mxu1 %v7451_v55  ;;  %10944 = vmatprep.mubr.msk.bf16.mxu1 %vm11711_vm2, %v14818_v26 }
 0x6c0   : > { %10954 = vmatprep.subr.bf16.mxu1 %v14818_v26 }
 0x6c1   : > { %v3412_v54 = vpop.permute.xlu0 %3411 }
 0x6c2   : > { %v3489_v47 = vshrl.u32 %v3412_v54, 16  ;;  %v3487_v49 = vpack.i.b16 %v3420_v45, %v3412_v54 }
 0x6c4   : > { %v3491_v42 = vpack.i.b16 %v3490_v17, %v3489_v47  ;;  %v3897_v19 = vcombine.high %v3487_v49, %v14814_v21  ;;  %v3904_v16 = vrot.slane %v3487_v49, %v12326_v59 }
 0x6c6   : > { %v3963_v11 = vcombine.high %v3491_v42, %v14814_v21  ;;  %v3911_v20 = vrot.slane %v3897_v19, %v12326_v59  ;;  %v3970_v56 = vrot.slane %v3491_v42, %v12326_v59 }
 0x6c8   : > { %v3977_v34 = vrot.slane %v3963_v11, %v12326_v59 }
 0x6d0   : > { %v6267_v52 = vpop.xlane.xlu1 %6266 }
 0x6d1   : > { %11386 = vrcp.f32 %v6267_v52 }
 0x6d2   : > { %11388 = vrcp.f32 %v6270_v7 }
 0x6d7   : > { %v6273_v53 = vpop.xlane.xlu1 %6272 }
 0x6d8   : > { %11390 = vrcp.f32 %v6273_v53 }
 0x6db   : > { %v3436_v58 = vpop.permute.xlu1 %3435  ;;  %v11387_v0 = vpop.eup %11386 }
 0x6dc   : > { %v3495_v24 = vpack.i.b16 %v3436_v58, %v3428_v62  ;;  %v3498_v28 = vshrl.u32 %v3436_v58, 16  ;;  %v6347_v22 = vmul.f32 %v11387_v0, %v13763_v10  ;;  %v11389_v45 = vpop.eup %11388 }
 0x6de   : > { %v3499_v15 = vpack.i.b16 %v3498_v28, %v3497_v14  ;;  %v3912_v43 = vcombine.high %v3495_v24, %v14814_v21  ;;  %v3919_v1 = vrot.slane %v3495_v24, %v12326_v59  ;;  %v6379_v60 = vpack.c.bf16 %v6347_v22, %v6347_v22  ;;  %v14844_v28 = vld [vmem:[#allocation54_spill] sm:$0xff] }
 0x6df   : > { %v6348_v11 = vmul.f32 %v11389_v45, %v14844_v28 }
 0x6e0   : > { %v3926_v30 = vrot.slane %v3912_v43, %v12326_v59  ;;  %v3927_v27 = vcombine.low %v3904_v16, %v3919_v1  ;;  %v3928_v57 = vcombine.high %v3904_v16, %v3919_v1  ;;  %v3978_v29 = vcombine.high %v3499_v15, %v14814_v21  ;;  %10945 = vmatmul.mubr.msk.bf16.vlgmr.msra.gmra.mrb[120].mxu1 %vm4531_vm3, %v6379_v60 }
 0x6e1   : > { %v3985_v37 = vrot.slane %v3499_v15, %v12326_v59  ;;  %10956 = vmatprep.mubr.msk.bf16.mxu1 %vm11711_vm2, %v14818_v26 }
 0x6e2   : > { %v3935_v33 = vrot.slane %v3927_v27, %v12345_v9  ;;  %v3942_v13 = vrot.slane %v3928_v57, %v12345_v9  ;;  %v3943_v39 = vcombine.low %v3911_v20, %v3926_v30  ;;  %v3944_v38 = vcombine.high %v3911_v20, %v3926_v30  ;;  %v11391_v19 = vpop.eup %11390 }
 0x6e3   : > { %v3992_v10 = vrot.slane %v3978_v29, %v12326_v59  ;;  %v3993_v48 = vcombine.low %v3970_v56, %v3985_v37  ;;  %v3994_v8 = vcombine.high %v3970_v56, %v3985_v37  ;;  %v6349_v30 = vmul.f32 %v11391_v19, %v13773_v63 }
 0x6e4   : > { %v4329_v21 = vcombine.low %v3935_v33, %v3942_v13  ;;  %v10312_v61 = vcombine.high %v3935_v33, %v3942_v13  ;;  %v3951_v41 = vrot.slane %v3943_v39, %v12345_v9  ;;  %v3958_v31 = vrot.slane %v3944_v38, %v12345_v9 }
 0x6e5   : > { %v4001_v4 = vrot.slane %v3993_v48, %v12345_v9  ;;  %v4008_v3 = vrot.slane %v3994_v8, %v12345_v9  ;;  %v4009_v23 = vcombine.low %v3977_v34, %v3992_v10  ;;  %v4010_v36 = vcombine.high %v3977_v34, %v3992_v10 }
 0x6e6   : > { %v4336_v25 = vrot.slane %v4329_v21, %v12326_v59  ;;  %v4344_v5 = vrot.slane %v10312_v61, %v12326_v59  ;;  %v4379_v47 = vcombine.low %v3951_v41, %v3958_v31  ;;  %v10314_v17 = vcombine.high %v3951_v41, %v3958_v31 }
 0x6e7   : > { %v4017_v40 = vrot.slane %v4009_v23, %v12345_v9  ;;  %v4024_v12 = vrot.slane %v4010_v36, %v12345_v9  ;;  %v4354_v2 = vcombine.low %v4001_v4, %v4008_v3  ;;  %v10313_v32 = vcombine.high %v4001_v4, %v4008_v3 }
 0x6e8   : > { %v4345_v55 = vcombine.low %v4336_v25, %v4344_v5  ;;  %v4386_v0 = vrot.slane %v4379_v47, %v12326_v59  ;;  %v4394_v16 = vrot.slane %v10314_v17, %v12326_v59  ;;  %v6380_v13 = vpack.c.bf16 %v6348_v11, %v6348_v11 }
 0x6e9   : > { %v4361_v7 = vrot.slane %v4354_v2, %v12326_v59  ;;  %v4369_v62 = vrot.slane %v10313_v32, %v12326_v59  ;;  %v4404_v54 = vcombine.low %v4017_v40, %v4024_v12  ;;  %v10315_v52 = vcombine.high %v4017_v40, %v4024_v12 }
 0x6ea   : > { %v4352_v49 = vrot.slane %v4345_v55, %v12345_v9  ;;  %v4395_v39 = vcombine.low %v4386_v0, %v4394_v16  ;;  %v6381_v48 = vpack.c.bf16 %v6349_v30, %v6349_v30 }
 0x6eb   : > { %v4370_v53 = vcombine.low %v4361_v7, %v4369_v62  ;;  %v4411_v14 = vrot.slane %v4404_v54, %v12326_v59  ;;  %v4419_v24 = vrot.slane %v10315_v52, %v12326_v59 }
 0x6ec   : > { %v4353_v15 = vcombine.high %v4352_v49, %v14801_v46  ;;  %v4504_v1 = vshrl.u32 %v4352_v49, 16  ;;  %v4402_v4 = vrot.slane %v4395_v39, %v12345_v9 }
 0x6ed   : > { %v4377_v58 = vrot.slane %v4370_v53, %v12345_v9  ;;  %v4420_v34 = vcombine.low %v4411_v14, %v4419_v24 }
 0x6ee   : > { %v4510_v37 = vshrl.u32 %v4353_v15, 16  ;;  %v4403_v40 = vcombine.high %v4402_v4, %v14801_v46  ;;  %v4516_v54 = vshrl.u32 %v4402_v4, 16 }
 0x6ef   : > { %v4503_v43 = vpack.i.b16 %v4377_v58, %v4352_v49  ;;  %v4505_v20 = vshrl.u32 %v4377_v58, 16  ;;  %v4378_v22 = vcombine.high %v4377_v58, %v14801_v46  ;;  %v4427_v8 = vrot.slane %v4420_v34, %v12345_v9 }
 0x6f1   : > { %v7497_v57 = vsel %vm6391_vm5, %v4503_v43, 0  ;;  %v4506_v29 = vpack.i.b16 %v4505_v20, %v4504_v1  ;;  %v4509_v56 = vpack.i.b16 %v4378_v22, %v4353_v15  ;;  %v4511_v60 = vshrl.u32 %v4378_v22, 16 }
 0x6f2   : > { %v6276_v42 = vpop.xlane.xlu0 %6275  ;;  %10949 = vmatpush3.bf16.msra.mxu0 %v7497_v57  ;;  %v4515_v36 = vpack.i.b16 %v4427_v8, %v4402_v4  ;;  %v4428_v5 = vcombine.high %v4427_v8, %v14801_v46  ;;  %v4517_v46 = vshrl.u32 %v4427_v8, 16  ;;  %v4522_v15 = vshrl.u32 %v4403_v40, 16 }
 0x6f3   : > { %11392 = vrcp.f32 %v6276_v42  ;;  %v7543_v33 = vsel %vm6391_vm5, %v4506_v29, 0  ;;  %10960 = vmatprep.subr.bf16.mxu0 %v14818_v26  ;;  %v4512_v10 = vpack.i.b16 %v4511_v60, %v4510_v37  ;;  %v7589_v63 = vsel %vm6391_vm5, %v4509_v56, 0 }
 0x6f4   : > { %10955 = vmatpush3.bf16.msra.mxu1 %v7543_v33  ;;  %v7681_v25 = vsel %vm6391_vm5, %v4515_v36, 0  ;;  %v4521_v12 = vpack.i.b16 %v4428_v5, %v4403_v40  ;;  %v4518_v17 = vpack.i.b16 %v4517_v46, %v4516_v54  ;;  %v4523_v11 = vshrl.u32 %v4428_v5, 16 }
 0x6f5   : > { %10951 = vmatmul.mubr.msk.bf16.vlgmr.msra.gmra.mrb[108].mxu0 %vm4531_vm3, %v6380_v13  ;;  %10966 = vmatprep.subr.bf16.mxu1 %v14818_v26  ;;  %v7635_v61 = vsel %vm6391_vm5, %v4512_v10, 0 }
 0x6f6   : > { %v6282_v27 = vpop.xlane.xlu0 %6281  ;;  %10961 = vmatpush3.bf16.msra.mxu0 %v7589_v63  ;;  %10962 = vmatprep.mubr.msk.bf16.mxu0 %vm11711_vm2, %v14818_v26  ;;  %v7773_v55 = vsel %vm6391_vm5, %v4521_v12, 0  ;;  %v7727_v28 = vsel %vm6391_vm5, %v4518_v17, 0  ;;  %v4524_v43 = vpack.i.b16 %v4523_v11, %v4522_v15 }
 0x6f7   : > { %11394 = vrcp.f32 %v6282_v27  ;;  %10957 = vmatmul.mubr.msk.bf16.vlgmr.msra.gmra.mrb[124].mxu1 %vm4531_vm3, %v6381_v48  ;;  %10972 = vmatprep.subr.bf16.mxu0 %v14818_v26 }
 0x6f8   : > { %10967 = vmatpush3.bf16.msra.mxu1 %v7635_v61  ;;  %10968 = vmatprep.mubr.msk.bf16.mxu1 %vm11711_vm2, %v14818_v26  ;;  %v7819_v37 = vsel %vm6391_vm5, %v4524_v43, 0 }
 0x6f9   : > { %10978 = vmatprep.subr.bf16.mxu1 %v14818_v26 }
 0x6fa   : > { %v6285_v38 = vpop.xlane.xlu0 %6284 }
 0x6fd   : > { %v11393_v21 = vpop.eup %11392 }
 0x6fe   : > { %v6350_v3 = vmul.f32 %v11393_v21, %v13848_v51  ;;  %v6288_v23 = vpop.xlane.xlu0 %6287 }
 0x6ff   : > { %11396 = vrcp.f32 %v6288_v23 }
 0x700   : > { %v6382_v41 = vpack.c.bf16 %v6350_v3, %v6350_v3 }
 0x701   : > { %v11395_v31 = vpop.eup %11394 }
 0x702   : > { %10963 = vmatmul.mubr.msk.bf16.vlgmr.msra.gmra.mrb[112].mxu0 %vm4531_vm3, %v6382_v41  ;;  %v6352_v51 = vmul.f32 %v11395_v31, %v13865_v50 }
 0x703   : > { %10973 = vmatpush3.bf16.msra.mxu0 %v7681_v25  ;;  %10974 = vmatprep.mubr.msk.bf16.mxu0 %vm11711_vm2, %v14818_v26 }
 0x704   : > { %10984 = vmatprep.subr.bf16.mxu0 %v14818_v26  ;;  %v6384_v2 = vpack.c.bf16 %v6352_v51, %v6352_v51 }
 0x709   : > { %v11397_v32 = vpop.eup %11396 }
 0x70a   : > { %10975 = vmatmul.mubr.msk.bf16.vlgmr.msra.gmra.mrb[116].mxu0 %vm4531_vm3, %v6384_v2  ;;  %v6354_v45 = vmul.f32 %v11397_v32, %v13887_v35 }
 0x70b   : > { %10985 = vmatpush3.bf16.msra.mxu0 %v7773_v55  ;;  %10986 = vmatprep.mubr.msk.bf16.mxu0 %vm11711_vm2, %v14818_v26 }
 0x70c   : > { %v6386_v7 = vpack.c.bf16 %v6354_v45, %v6354_v45  ;;  %v6279_v62 = vpop.xlane.xlu1 %6278 }
 0x70d   : > { %11398 = vrcp.f32 %v6279_v62 }
 0x70e   : > { %11400 = vrcp.f32 %v6285_v38 }
 0x710   : > { %v6291_v50 = vpop.xlane.xlu1 %6290 }
 0x711   : > { %11402 = vrcp.f32 %v6291_v50 }
 0x712   : > { %10987 = vmatmul.mubr.msk.bf16.vlgmr.msra.gmra.mrb[120].mxu0 %vm4531_vm3, %v6386_v7 }
 0x717   : > { %v11399_v52 = vpop.eup %11398 }
 0x718   : > { %v6351_v47 = vmul.f32 %v11399_v52, %v13930_v6  ;;  %v6429_v49 = vpop.f32.mrb[60].mxu0  ;;  %v11401_v19 = vpop.eup %11400 }
 0x719   : > { %v10808_v53 = vpop.f32.mrb[61].mxu0  ;;  %v6353_v6 = vmul.f32 %v11401_v19, %v13878_v18 }
 0x71a   : > { %v6383_v42 = vpack.c.bf16 %v6351_v47, %v6351_v47  ;;  %v6432_v58 = vpop.f32.mrb[62].mxu0  ;;  %v6475_v35 = vpop.f32.mrb[76].mxu1 }
 0x71b   : > { %v10809_v14 = vpop.f32.mrb[63].mxu0  ;;  %v10814_v24 = vpop.f32.mrb[77].mxu1  ;;  %v6385_v27 = vpack.c.bf16 %v6353_v6, %v6353_v6 }
 0x71c   : > { %10969 = vmatmul.mubr.msk.bf16.vlgmr.msra.gmra.mrb[128].mxu1 %vm4531_vm3, %v6383_v42  ;;  %v6478_v0 = vpop.f32.mrb[78].mxu1  ;;  %v11403_v57 = vpop.eup %11402 }
 0x71d   : > { %10979 = vmatpush3.bf16.msra.mxu1 %v7727_v28  ;;  %10980 = vmatprep.mubr.msk.bf16.mxu1 %vm11711_vm2, %v14818_v26  ;;  %v10815_v16 = vpop.f32.mrb[79].mxu1  ;;  %v6355_v13 = vmul.f32 %v11403_v57, %v13941_v44 }
 0x71e   : > { %10990 = vmatprep.subr.bf16.mxu1 %v14818_v26 }
 0x71f   : > { %v6387_v41 = vpack.c.bf16 %v6355_v13, %v6355_v13 }
 0x720   : > { %v6521_v1 = vpop.f32.mrb[64].mxu0 }
 0x721   : > { %v7861_v20 = vcombine.low %v6429_v49, %v6521_v1  ;;  %v7862_v22 = vcombine.high %v6429_v49, %v6521_v1  ;;  %v10820_v30 = vpop.f32.mrb[65].mxu0 }
 0x722   : > { %v6524_v29 = vpop.f32.mrb[66].mxu0 }
 0x723   : > { %v10821_v56 = vpop.f32.mrb[67].mxu0  ;;  %v7869_v38 = vrot.slane %v7861_v20, %v12326_v59  ;;  %v7876_v10 = vrot.slane %v7862_v22, %v12326_v59 }
 0x724   : > { %v6567_v34 = vpop.f32.mrb[80].mxu1  ;;  %10981 = vmatmul.mubr.msk.bf16.vlgmr.msra.gmra.mrb[132].mxu1 %vm4531_vm3, %v6385_v27 }
 0x725   : > { %v7877_v60 = vcombine.low %v6475_v35, %v6567_v34  ;;  %v7878_v18 = vcombine.high %v6475_v35, %v6567_v34  ;;  %v10826_v33 = vpop.f32.mrb[81].mxu1  ;;  %10991 = vmatpush3.bf16.msra.mxu1 %v7819_v37  ;;  %10992 = vmatprep.mubr.msk.bf16.mxu1 %vm11711_vm2, %v14818_v26 }
 0x726   : > { %v6570_v39 = vpop.f32.mrb[82].mxu1 }
 0x727   : > { %v7885_v63 = vrot.slane %v7877_v60, %v12326_v59  ;;  %v7892_v48 = vrot.slane %v7878_v18, %v12326_v59  ;;  %v10827_v8 = vpop.f32.mrb[83].mxu1 }
 0x728   : > { %v6613_v23 = vpop.f32.mrb[68].mxu0 }
 0x729   : > { %v7893_v21 = vcombine.low %v7869_v38, %v7885_v63  ;;  %v7894_v61 = vcombine.high %v7869_v38, %v7885_v63  ;;  %v7909_v4 = vcombine.low %v7876_v10, %v7892_v48  ;;  %v7910_v3 = vcombine.high %v7876_v10, %v7892_v48  ;;  %v10832_v36 = vpop.f32.mrb[69].mxu0 }
 0x72a   : > { %v6616_v5 = vpop.f32.mrb[70].mxu0 }
 0x72b   : > { %v7901_v26 = vrot.slane %v7893_v21, %v12345_v9  ;;  %v7908_v44 = vrot.slane %v7894_v61, %v12345_v9  ;;  %v7917_v31 = vrot.slane %v7909_v4, %v12345_v9  ;;  %v7924_v25 = vrot.slane %v7910_v3, %v12345_v9  ;;  %v10833_v51 = vpop.f32.mrb[71].mxu0 }
 0x72c   : > { %10993 = vmatmul.mubr.msk.bf16.vlgmr.msra.gmra.mrb[136].mxu1 %vm4531_vm3, %v6387_v41 }
 0x72d   : > { %v8405_v12 = vcombine.low %v7901_v26, %v7908_v44  ;;  %v10380_v2 = vcombine.high %v7901_v26, %v7908_v44  ;;  %v8421_v32 = vcombine.low %v7917_v31, %v7924_v25  ;;  %v10381_v55 = vcombine.high %v7917_v31, %v7924_v25 }
 0x72e   : > { %v6659_v40 = vpop.f32.mrb[84].mxu1 }
 0x72f   : > { %v10838_v45 = vpop.f32.mrb[85].mxu1  ;;  %v8412_v62 = vrot.slane %v8405_v12, %v12326_v59  ;;  %v8420_v46 = vrot.slane %v10380_v2, %v12326_v59  ;;  %v8428_v50 = vrot.slane %v8421_v32, %v12326_v59  ;;  %v8436_v54 = vrot.slane %v10381_v55, %v12326_v59 }
 0x730   : > { %v6662_v7 = vpop.f32.mrb[86].mxu1  ;;  %v6705_v47 = vpop.f32.mrb[72].mxu0 }
 0x731   : > { %v10839_v52 = vpop.f32.mrb[87].mxu1  ;;  %v8438_v17 = vcombine.high %v8412_v62, %v8420_v46  ;;  %v8454_v49 = vcombine.high %v8428_v50, %v8436_v54  ;;  %v8437_v53 = vcombine.low %v8412_v62, %v8420_v46  ;;  %v8453_v42 = vcombine.low %v8428_v50, %v8436_v54  ;;  %v10844_v35 = vpop.f32.mrb[73].mxu0 }
 0x732   : > { %v7929_v19 = vcombine.low %v6613_v23, %v6705_v47  ;;  %v7930_v58 = vcombine.high %v6613_v23, %v6705_v47  ;;  %v6708_v14 = vpop.f32.mrb[74].mxu0 }
 0x733   : > { %v14101_v24 = vrot.slane %v8438_v17, %v12345_v9  ;;  %v14104_v28 = vrot.slane %v8454_v49, %v12345_v9  ;;  %v14107_v11 = vrot.slane %v8437_v53, %v12345_v9  ;;  %v14110_v0 = vrot.slane %v8453_v42, %v12345_v9  ;;  %v10845_v6 = vpop.f32.mrb[75].mxu0 }
 0x734   : > { %v7937_v29 = vrot.slane %v7929_v19, %v12326_v59  ;;  %v7944_v56 = vrot.slane %v7930_v58, %v12326_v59 }
 0x735   : > { %v8471_v20 = vcombine.low %v14101_v24, %v14104_v28  ;;  %v8470_v22 = vcombine.high %v14107_v11, %v14110_v0  ;;  %v8472_v27 = vcombine.high %v14101_v24, %v14104_v28  ;;  %v8469_v57 = vcombine.low %v14107_v11, %v14110_v0 }
 0x736   : > { %v6751_v16 = vpop.f32.mrb[88].mxu1 }
 0x737   : > { %v7945_v15 = vcombine.low %v6659_v40, %v6751_v16  ;;  %v7946_v43 = vcombine.high %v6659_v40, %v6751_v16  ;;  %v10850_v1 = vpop.f32.mrb[89].mxu1 }
 0x738   : > { %v6754_v30 = vpop.f32.mrb[90].mxu1 }
 0x739   : > { %v7953_v34 = vrot.slane %v7945_v15, %v12326_v59  ;;  %v7960_v37 = vrot.slane %v7946_v43, %v12326_v59  ;;  %v10851_v60 = vpop.f32.mrb[91].mxu1  ;;  %v6797_v18 = vpop.f32.mrb[76].mxu0 }
 0x73a   : > { %v10856_v10 = vpop.f32.mrb[77].mxu0 }
 0x73b   : > { %v7961_v33 = vcombine.low %v7937_v29, %v7953_v34  ;;  %v7962_v13 = vcombine.high %v7937_v29, %v7953_v34  ;;  %v7977_v39 = vcombine.low %v7944_v56, %v7960_v37  ;;  %v7978_v38 = vcombine.high %v7944_v56, %v7960_v37  ;;  %v6800_v63 = vpop.f32.mrb[78].mxu0 }
 0x73c   : > { %v10857_v4 = vpop.f32.mrb[79].mxu0 }
 0x73d   : > { %v7969_v48 = vrot.slane %v7961_v33, %v12345_v9  ;;  %v7976_v8 = vrot.slane %v7962_v13, %v12345_v9  ;;  %v7985_v21 = vrot.slane %v7977_v39, %v12345_v9  ;;  %v7992_v61 = vrot.slane %v7978_v38, %v12345_v9 }
 0x73e   : > { %v6843_v3 = vpop.f32.mrb[92].mxu1 }
 0x73f   : > { %v8473_v23 = vcombine.low %v7969_v48, %v7976_v8  ;;  %v10382_v36 = vcombine.high %v7969_v48, %v7976_v8  ;;  %v8489_v41 = vcombine.low %v7985_v21, %v7992_v61  ;;  %v10383_v26 = vcombine.high %v7985_v21, %v7992_v61  ;;  %v10862_v44 = vpop.f32.mrb[93].mxu1 }
 0x740   : > { %v6846_v31 = vpop.f32.mrb[94].mxu1 }
 0x741   : > { %v8480_v25 = vrot.slane %v8473_v23, %v12326_v59  ;;  %v8488_v5 = vrot.slane %v10382_v36, %v12326_v59  ;;  %v8496_v51 = vrot.slane %v8489_v41, %v12326_v59  ;;  %v8504_v40 = vrot.slane %v10383_v26, %v12326_v59  ;;  %v10863_v12 = vpop.f32.mrb[95].mxu1  ;;  %v6889_v2 = vpop.f32.mrb[80].mxu0 }
 0x742   : > { %v7997_v62 = vcombine.low %v6797_v18, %v6889_v2  ;;  %v7998_v46 = vcombine.high %v6797_v18, %v6889_v2  ;;  %v10868_v50 = vpop.f32.mrb[81].mxu0 }
 0x743   : > { %v8506_v32 = vcombine.high %v8480_v25, %v8488_v5  ;;  %v8522_v55 = vcombine.high %v8496_v51, %v8504_v40  ;;  %v8505_v45 = vcombine.low %v8480_v25, %v8488_v5  ;;  %v8521_v7 = vcombine.low %v8496_v51, %v8504_v40  ;;  %v6892_v54 = vpop.f32.mrb[82].mxu0 }
 0x744   : > { %v10869_v53 = vpop.f32.mrb[83].mxu0  ;;  %v8005_v28 = vrot.slane %v7997_v62, %v12326_v59  ;;  %v8012_v6 = vrot.slane %v7998_v46, %v12326_v59 }
 0x745   : > { %v8520_v52 = vrot.slane %v8506_v32, %v12345_v9  ;;  %v8536_v47 = vrot.slane %v8522_v55, %v12345_v9  ;;  %v14135_v17 = vrot.slane %v8505_v45, %v12345_v9  ;;  %v14138_v49 = vrot.slane %v8521_v7, %v12345_v9 }
 0x746   : > { %v6935_v42 = vpop.f32.mrb[96].mxu1 }
 0x747   : > { %v8013_v19 = vcombine.low %v6843_v3, %v6935_v42  ;;  %v8014_v58 = vcombine.high %v6843_v3, %v6935_v42  ;;  %v10874_v35 = vpop.f32.mrb[97].mxu1  ;;  %v8539_v14 = vcombine.low %v8520_v52, %v8536_v47  ;;  %v8538_v24 = vcombine.high %v14135_v17, %v14138_v49 }
 0x748   : > { %v6938_v16 = vpop.f32.mrb[98].mxu1  ;;  %v8540_v15 = vcombine.high %v8520_v52, %v8536_v47  ;;  %v8537_v43 = vcombine.low %v14135_v17, %v14138_v49 }
 0x749   : > { %v8021_v1 = vrot.slane %v8013_v19, %v12326_v59  ;;  %v8028_v30 = vrot.slane %v8014_v58, %v12326_v59  ;;  %v10875_v29 = vpop.f32.mrb[99].mxu1  ;;  %v11191_v56 = vpack.i.bf16 %v8539_v14, %v8471_v20  ;;  %v11186_v34 = vpack.i.bf16 %v8538_v24, %v8470_v22  ;;  %v6981_v60 = vpop.f32.mrb[84].mxu0 }
 0x74a   : > { %v11196_v37 = vpack.i.bf16 %v8540_v15, %v8472_v27  ;;  %v10880_v38 = vpop.f32.mrb[85].mxu0 }
 0x74b   : > { %v8029_v18 = vcombine.low %v8005_v28, %v8021_v1  ;;  %v8030_v33 = vcombine.high %v8005_v28, %v8021_v1  ;;  %v8045_v13 = vcombine.low %v8012_v6, %v8028_v30  ;;  %v8046_v39 = vcombine.high %v8012_v6, %v8028_v30  ;;  %11192 = vrot.lane.b32.xlu1 %v11191_v56, %s11716_s20  ;;  %v6984_v10 = vpop.f32.mrb[86].mxu0 }
 0x74c   : > { %11187 = vrot.lane.b32.xlu0 %v11186_v34, %s11717_s26  ;;  %v10881_v27 = vpop.f32.mrb[87].mxu0 }
 0x74d   : > { %v8037_v63 = vrot.slane %v8029_v18, %v12345_v9  ;;  %v8044_v48 = vrot.slane %v8030_v33, %v12345_v9  ;;  %v8053_v20 = vrot.slane %v8045_v13, %v12345_v9  ;;  %v8060_v22 = vrot.slane %v8046_v39, %v12345_v9 }
 0x74e   : > { %v7027_v8 = vpop.f32.mrb[100].mxu1 }
 0x74f   : > { %v8541_v21 = vcombine.low %v8037_v63, %v8044_v48  ;;  %v10384_v61 = vcombine.high %v8037_v63, %v8044_v48  ;;  %v8557_v4 = vcombine.low %v8053_v20, %v8060_v22  ;;  %v10385_v3 = vcombine.high %v8053_v20, %v8060_v22  ;;  %v10886_v23 = vpop.f32.mrb[101].mxu1 }
 0x750   : > { %11197 = vrot.lane.b32.xlu0 %v11196_v37, %s11718_s21  ;;  %v7030_v36 = vpop.f32.mrb[102].mxu1 }
 0x751   : > { %v8548_v41 = vrot.slane %v8541_v21, %v12326_v59  ;;  %v8556_v26 = vrot.slane %v10384_v61, %v12326_v59  ;;  %v8564_v44 = vrot.slane %v8557_v4, %v12326_v59  ;;  %v8572_v31 = vrot.slane %v10385_v3, %v12326_v59  ;;  %v10887_v25 = vpop.f32.mrb[103].mxu1  ;;  %v7073_v5 = vpop.f32.mrb[88].mxu0 }
 0x752   : > { %v8065_v32 = vcombine.low %v6981_v60, %v7073_v5  ;;  %v8066_v55 = vcombine.high %v6981_v60, %v7073_v5  ;;  %v10892_v45 = vpop.f32.mrb[89].mxu0 }
 0x753   : > { %v8573_v51 = vcombine.low %v8548_v41, %v8556_v26  ;;  %v8589_v40 = vcombine.low %v8564_v44, %v8572_v31  ;;  %v8574_v12 = vcombine.high %v8548_v41, %v8556_v26  ;;  %v8590_v2 = vcombine.high %v8564_v44, %v8572_v31  ;;  %v7076_v7 = vpop.f32.mrb[90].mxu0  ;;  %v11248_v26 = vld [vmem:[%s12129_s5] sm:$0xff]  }
 0x754   : > { %v10893_v52 = vpop.f32.mrb[91].mxu0  ;;  %v8073_v6 = vrot.slane %v8065_v32, %v12326_v59  ;;  %v8080_v16 = vrot.slane %v8066_v55, %v12326_v59  ;;  %10996 = vmatprep.subr.bf16.mxu0 %v11248_v26 }
 0x755   : > { %v14160_v62 = vrot.slane %v8573_v51, %v12345_v9  ;;  %v14163_v46 = vrot.slane %v8589_v40, %v12345_v9  ;;  %v8588_v50 = vrot.slane %v8574_v12, %v12345_v9  ;;  %v8604_v54 = vrot.slane %v8590_v2, %v12345_v9  ;;  %10997 = vmatpush3.bf16.msra.mxu0 %v11248_v26 }
 0x756   : > { %v7119_v47 = vpop.f32.mrb[104].mxu1 }
 0x757   : > { %v8081_v53 = vcombine.low %v7027_v8, %v7119_v47  ;;  %v8082_v42 = vcombine.high %v7027_v8, %v7119_v47  ;;  %v10898_v19 = vpop.f32.mrb[105].mxu1  ;;  %v8606_v58 = vcombine.high %v14160_v62, %v14163_v46  ;;  %v8607_v35 = vcombine.low %v8588_v50, %v8604_v54  ;;  %v11249_v47 = vld [vmem:[%s12129_s5 + $0x8] sm:$0xff]   ;;  %s14845_s5 = scalar_lea.vmem [#allocation8], %s12071_s24 }
 0x758   : > { %v7122_v14 = vpop.f32.mrb[106].mxu1  ;;  %v8608_v24 = vcombine.high %v8588_v50, %v8604_v54  ;;  %v8605_v28 = vcombine.low %v14160_v62, %v14163_v46  ;;  %10998 = vmatprep.subr.bf16.mxu0 %v11249_v47 }
 0x759   : > { %v8089_v15 = vrot.slane %v8081_v53, %v12326_v59  ;;  %v8096_v1 = vrot.slane %v8082_v42, %v12326_v59  ;;  %v10899_v30 = vpop.f32.mrb[107].mxu1  ;;  %10999 = vmatpush3.bf16.msra.mxu0 %v11249_v47 }
 0x75b   : > { %v8097_v29 = vcombine.low %v8073_v6, %v8089_v15  ;;  %v8098_v56 = vcombine.high %v8073_v6, %v8089_v15  ;;  %v8113_v34 = vcombine.low %v8080_v16, %v8096_v1  ;;  %v8114_v37 = vcombine.high %v8080_v16, %v8096_v1 }
 0x75d   : > { %v8105_v60 = vrot.slane %v8097_v29, %v12345_v9  ;;  %v8112_v18 = vrot.slane %v8098_v56, %v12345_v9  ;;  %v8121_v33 = vrot.slane %v8113_v34, %v12345_v9  ;;  %v8128_v13 = vrot.slane %v8114_v37, %v12345_v9 }
 0x75f   : > { %v8609_v39 = vcombine.low %v8105_v60, %v8112_v18  ;;  %v10386_v38 = vcombine.high %v8105_v60, %v8112_v18  ;;  %v8625_v10 = vcombine.low %v8121_v33, %v8128_v13  ;;  %v10387_v63 = vcombine.high %v8121_v33, %v8128_v13 }
 0x761   : > { %v8616_v48 = vrot.slane %v8609_v39, %v12326_v59  ;;  %v8624_v20 = vrot.slane %v10386_v38, %v12326_v59  ;;  %v8632_v22 = vrot.slane %v8625_v10, %v12326_v59  ;;  %v8640_v27 = vrot.slane %v10387_v63, %v12326_v59 }
 0x763   : > { %v8641_v8 = vcombine.low %v8616_v48, %v8624_v20  ;;  %v8657_v21 = vcombine.low %v8632_v22, %v8640_v27  ;;  %v8642_v61 = vcombine.high %v8616_v48, %v8624_v20  ;;  %v8658_v4 = vcombine.high %v8632_v22, %v8640_v27 }
 0x765   : > { %v14184_v3 = vrot.slane %v8641_v8, %v12345_v9  ;;  %v14187_v23 = vrot.slane %v8657_v21, %v12345_v9  ;;  %v8656_v36 = vrot.slane %v8642_v61, %v12345_v9  ;;  %v8672_v41 = vrot.slane %v8658_v4, %v12345_v9 }
 0x767   : > { %v8674_v44 = vcombine.high %v14184_v3, %v14187_v23  ;;  %v8675_v31 = vcombine.low %v8656_v36, %v8672_v41  ;;  %v8676_v25 = vcombine.high %v8656_v36, %v8672_v41  ;;  %v8673_v5 = vcombine.low %v14184_v3, %v14187_v23 }
 0x769   : > { %v11201_v51 = vpack.i.bf16 %v8674_v44, %v8606_v58  ;;  %v11206_v40 = vpack.i.bf16 %v8675_v31, %v8607_v35  ;;  %v11211_v12 = vpack.i.bf16 %v8676_v25, %v8608_v24  ;;  %v7165_v2 = vpop.f32.mrb[92].mxu0 }
 0x76a   : > { %v10904_v32 = vpop.f32.mrb[93].mxu0 }
 0x76b   : > { %11202 = vrot.lane.b32.xlu1 %v11201_v51, %s11717_s26  ;;  %v7168_v55 = vpop.f32.mrb[94].mxu0 }
 0x76c   : > { %v10905_v45 = vpop.f32.mrb[95].mxu0 }
 0x76f   : > { %11207 = vrot.lane.b32.xlu1 %v11206_v40, %s11716_s20  ;;  %v7211_v7 = vpop.f32.mrb[108].mxu1 }
 0x770   : > { %v10910_v50 = vpop.f32.mrb[109].mxu1 }
 0x771   : > { %v7214_v54 = vpop.f32.mrb[110].mxu1 }
 0x772   : > { %v10911_v52 = vpop.f32.mrb[111].mxu1 }
 0x773   : > { %11212 = vrot.lane.b32.xlu1 %v11211_v12, %s11718_s21 }
 0x775   : > { %v7257_v53 = vpop.f32.mrb[96].mxu0 }
 0x776   : > { %v8133_v42 = vcombine.low %v7165_v2, %v7257_v53  ;;  %v8134_v19 = vcombine.high %v7165_v2, %v7257_v53  ;;  %v10916_v58 = vpop.f32.mrb[97].mxu0 }
 0x777   : > { %v7260_v35 = vpop.f32.mrb[98].mxu0 }
 0x778   : > { %v7303_v14 = vpop.f32.mrb[112].mxu1  ;;  %v10917_v16 = vpop.f32.mrb[99].mxu0  ;;  %v8141_v30 = vrot.slane %v8133_v42, %v12326_v59  ;;  %v8148_v29 = vrot.slane %v8134_v19, %v12326_v59 }
 0x779   : > { %v8149_v24 = vcombine.low %v7211_v7, %v7303_v14  ;;  %v8150_v6 = vcombine.high %v7211_v7, %v7303_v14  ;;  %v10922_v15 = vpop.f32.mrb[113].mxu1 }
 0x77a   : > { %v7306_v1 = vpop.f32.mrb[114].mxu1 }
 0x77b   : > { %v8157_v56 = vrot.slane %v8149_v24, %v12326_v59  ;;  %v8164_v34 = vrot.slane %v8150_v6, %v12326_v59  ;;  %v10923_v37 = vpop.f32.mrb[115].mxu1 }
 0x77d   : > { %v8165_v60 = vcombine.low %v8141_v30, %v8157_v56  ;;  %v8166_v18 = vcombine.high %v8141_v30, %v8157_v56  ;;  %v8181_v33 = vcombine.low %v8148_v29, %v8164_v34  ;;  %v8182_v13 = vcombine.high %v8148_v29, %v8164_v34 }
 0x77f   : > { %v8173_v39 = vrot.slane %v8165_v60, %v12345_v9  ;;  %v8180_v38 = vrot.slane %v8166_v18, %v12345_v9  ;;  %v8189_v10 = vrot.slane %v8181_v33, %v12345_v9  ;;  %v8196_v63 = vrot.slane %v8182_v13, %v12345_v9 }
 0x781   : > { %v8677_v48 = vcombine.low %v8173_v39, %v8180_v38  ;;  %v10388_v20 = vcombine.high %v8173_v39, %v8180_v38  ;;  %v8693_v22 = vcombine.low %v8189_v10, %v8196_v63  ;;  %v10389_v27 = vcombine.high %v8189_v10, %v8196_v63 }
 0x783   : > { %v8684_v8 = vrot.slane %v8677_v48, %v12326_v59  ;;  %v8692_v21 = vrot.slane %v10388_v20, %v12326_v59  ;;  %v8700_v61 = vrot.slane %v8693_v22, %v12326_v59  ;;  %v8708_v4 = vrot.slane %v10389_v27, %v12326_v59 }
 0x785   : > { %v7349_v36 = vpop.f32.mrb[100].mxu0  ;;  %v8709_v44 = vcombine.low %v8684_v8, %v8692_v21  ;;  %v8725_v31 = vcombine.low %v8700_v61, %v8708_v4  ;;  %v8710_v25 = vcombine.high %v8684_v8, %v8692_v21  ;;  %v8726_v51 = vcombine.high %v8700_v61, %v8708_v4 }
 0x786   : > { %v10928_v41 = vpop.f32.mrb[101].mxu0 }
 0x787   : > { %v7352_v26 = vpop.f32.mrb[102].mxu0  ;;  %v14213_v12 = vrot.slane %v8709_v44, %v12345_v9  ;;  %v14216_v2 = vrot.slane %v8725_v31, %v12345_v9  ;;  %v14219_v32 = vrot.slane %v8710_v25, %v12345_v9  ;;  %v14222_v55 = vrot.slane %v8726_v51, %v12345_v9 }
 0x788   : > { %v10929_v40 = vpop.f32.mrb[103].mxu0 }
 0x789   : > { %v8742_v45 = vcombine.high %v14213_v12, %v14216_v2  ;;  %v8743_v7 = vcombine.low %v14219_v32, %v14222_v55  ;;  %v8744_v50 = vcombine.high %v14219_v32, %v14222_v55  ;;  %v8741_v54 = vcombine.low %v14213_v12, %v14216_v2 }
 0x78d   : > { %v7441_v52 = vpop.f32.mrb[104].mxu0 }
 0x78e   : > { %v8201_v47 = vcombine.low %v7349_v36, %v7441_v52  ;;  %v8202_v53 = vcombine.high %v7349_v36, %v7441_v52  ;;  %v10940_v42 = vpop.f32.mrb[105].mxu0 }
 0x78f   : > { %v7444_v19 = vpop.f32.mrb[106].mxu0 }
 0x790   : > { %v10941_v58 = vpop.f32.mrb[107].mxu0  ;;  %v8209_v56 = vrot.slane %v8201_v47, %v12326_v59  ;;  %v8216_v34 = vrot.slane %v8202_v53, %v12326_v59 }
 0x791   : > { %v7395_v35 = vpop.f32.mrb[116].mxu1 }
 0x792   : > { %v10934_v14 = vpop.f32.mrb[117].mxu1 }
 0x793   : > { %v7398_v24 = vpop.f32.mrb[118].mxu1 }
 0x794   : > { %v10935_v6 = vpop.f32.mrb[119].mxu1 }
 0x7b3   : > { %v7487_v16 = vpop.f32.mrb[120].mxu1 }
 0x7b4   : > { %v8217_v15 = vcombine.low %v7395_v35, %v7487_v16  ;;  %v8218_v1 = vcombine.high %v7395_v35, %v7487_v16  ;;  %v10946_v30 = vpop.f32.mrb[121].mxu1 }
 0x7b5   : > { %v7490_v29 = vpop.f32.mrb[122].mxu1 }
 0x7b6   : > { %v8225_v37 = vrot.slane %v8217_v15, %v12326_v59  ;;  %v8232_v60 = vrot.slane %v8218_v1, %v12326_v59  ;;  %v10947_v18 = vpop.f32.mrb[123].mxu1 }
 0x7b8   : > { %v8233_v33 = vcombine.low %v8209_v56, %v8225_v37  ;;  %v8234_v13 = vcombine.high %v8209_v56, %v8225_v37  ;;  %v8249_v39 = vcombine.low %v8216_v34, %v8232_v60  ;;  %v8250_v38 = vcombine.high %v8216_v34, %v8232_v60 }
 0x7ba   : > { %v8241_v48 = vrot.slane %v8233_v33, %v12345_v9  ;;  %v8248_v20 = vrot.slane %v8234_v13, %v12345_v9  ;;  %v8257_v22 = vrot.slane %v8249_v39, %v12345_v9  ;;  %v8264_v27 = vrot.slane %v8250_v38, %v12345_v9 }
 0x7bc   : > { %v8745_v36 = vcombine.low %v8241_v48, %v8248_v20  ;;  %v10390_v41 = vcombine.high %v8241_v48, %v8248_v20  ;;  %v8761_v26 = vcombine.low %v8257_v22, %v8264_v27  ;;  %v10391_v44 = vcombine.high %v8257_v22, %v8264_v27 }
 0x7bd   : > { %v11193_v10 = vpop.permute.xlu1 %11192 }
 0x7be   : > { %v11188_v63 = vpop.permute.xlu0 %11187  ;;  %v11195_v8 = vunpack.i.h.bf16 %v11193_v10  ;;  %v11194_v21 = vunpack.i.l.bf16 %v11193_v10  ;;  %v8752_v40 = vrot.slane %v8745_v36, %v12326_v59  ;;  %v8760_v52 = vrot.slane %v10390_v41, %v12326_v59 }
 0x7bf   : > { %v11190_v61 = vunpack.i.h.bf16 %v11188_v63  ;;  %v11189_v4 = vunpack.i.l.bf16 %v11188_v63  ;;  %v8768_v47 = vrot.slane %v8761_v26, %v12326_v59  ;;  %v8776_v53 = vrot.slane %v10391_v44, %v12326_v59 }
 0x7c0   : > { %v8778_v0 = vcombine.high %v8752_v40, %v8760_v52 }
 0x7c1   : > { %v9046_v31 = vsel %vm4531_vm3, %v8537_v43, %v11190_v61  ;;  %v9045_v25 = vsel %vm4531_vm3, %v8469_v57, %v11189_v4  ;;  %v8777_v43 = vcombine.low %v8752_v40, %v8760_v52  ;;  %v8793_v11 = vcombine.low %v8768_v47, %v8776_v53 }
 0x7c2   : > { %v11198_v51 = vpop.permute.xlu0 %11197  ;;  %v9054_v17 = vsel %vm9053_vm6, %v9045_v25, %v11194_v21  ;;  %v9055_v49 = vsel %vm9053_vm6, %v9046_v31, %v11195_v8  ;;  %v8794_v57 = vcombine.high %v8768_v47, %v8776_v53  ;;  %v8792_v16 = vrot.slane %v8778_v0, %v12345_v9 }
 0x7c3   : > { %v11200_v42 = vunpack.i.h.bf16 %v11198_v51  ;;  %v11199_v19 = vunpack.i.l.bf16 %v11198_v51  ;;  %v14257_v14 = vrot.slane %v8777_v43, %v12345_v9  ;;  %v14260_v24 = vrot.slane %v8793_v11, %v12345_v9 }
 0x7c4   : > { %v8808_v15 = vrot.slane %v8794_v57, %v12345_v9 }
 0x7c5   : > { %v9063_v58 = vsel %vm9062_vm7, %v9054_v17, %v11199_v19  ;;  %v9064_v35 = vsel %vm9062_vm7, %v9055_v49, %v11200_v42  ;;  %v8810_v1 = vcombine.high %v14257_v14, %v14260_v24  ;;  %v8809_v30 = vcombine.low %v14257_v14, %v14260_v24 }
 0x7c6   : > { %v9071_v6 = vpack.c.bf16 %v9064_v35, %v9063_v58  ;;  %v8811_v56 = vcombine.low %v8792_v16, %v8808_v15  ;;  %v8812_v34 = vcombine.high %v8792_v16, %v8808_v15 }
 0x7c7   : > { %v11216_v60 = vpack.i.bf16 %v8810_v1, %v8742_v45 }
 0x7c8   : > { %11000 = vmatprep.mubr.msk.bf16.mxu0 %vm881_vm1, %v9071_v6  ;;  %v7533_v29 = vpop.f32.mrb[108].mxu0  ;;  %v11221_v13 = vpack.i.bf16 %v8811_v56, %v8743_v7  ;;  %v11226_v39 = vpack.i.bf16 %v8812_v34, %v8744_v50 }
 0x7c9   : > { %v10952_v37 = vpop.f32.mrb[109].mxu0  ;;  %11217 = vrot.lane.b32.xlu0 %v11216_v60, %s11717_s26 }
 0x7ca   : > { %v7536_v18 = vpop.f32.mrb[110].mxu0  ;;  %v7579_v33 = vpop.f32.mrb[124].mxu1 }
 0x7cb   : > { %v10953_v38 = vpop.f32.mrb[111].mxu0  ;;  %v10958_v10 = vpop.f32.mrb[125].mxu1 }
 0x7cc   : > { %v7582_v63 = vpop.f32.mrb[126].mxu1 }
 0x7cd   : > { %v10959_v48 = vpop.f32.mrb[127].mxu1  ;;  %11222 = vrot.lane.b32.xlu0 %v11221_v13, %s11716_s20 }
 0x7d1   : > { %11227 = vrot.lane.b32.xlu0 %v11226_v39, %s11718_s21 }
 0x7d5   : > { %v7625_v20 = vpop.f32.mrb[112].mxu0 }
 0x7d6   : > { %v8269_v45 = vcombine.low %v7533_v29, %v7625_v20  ;;  %v8270_v22 = vcombine.high %v7533_v29, %v7625_v20  ;;  %v10964_v27 = vpop.f32.mrb[113].mxu0 }
 0x7d7   : > { %v7628_v8 = vpop.f32.mrb[114].mxu0 }
 0x7d8   : > { %v10965_v21 = vpop.f32.mrb[115].mxu0  ;;  %v8277_v23 = vrot.slane %v8269_v45, %v12326_v59 }
 0x7dd   : > { %v14281_v7 = vpop.f32.mrb[116].mxu0  ;;  %v11203_v61 = vpop.permute.xlu1 %11202 }
 0x7de   : > { %v10976_v32 = vpop.f32.mrb[117].mxu0  ;;  %v11205_v41 = vunpack.i.h.bf16 %v11203_v61  ;;  %v11204_v26 = vunpack.i.l.bf16 %v11203_v61 }
 0x7df   : > { %v7720_v55 = vpop.f32.mrb[118].mxu0 }
 0x7e0   : > { %v10977_v50 = vpop.f32.mrb[119].mxu0  ;;  %v9047_v42 = vsel %vm4531_vm3, %v8605_v28, %v11204_v26  ;;  %v9048_v19 = vsel %vm4531_vm3, %v8673_v5, %v11205_v41  ;;  %v8284_v5 = vrot.slane %v8270_v22, %v12326_v59 }
 0x7e1   : > { %v11208_v4 = vpop.permute.xlu1 %11207 }
 0x7e2   : > { %v11210_v51 = vunpack.i.h.bf16 %v11208_v4  ;;  %v11209_v40 = vunpack.i.l.bf16 %v11208_v4 }
 0x7e4   : > { %v9056_v43 = vsel %vm9053_vm6, %v9047_v42, %v11209_v40  ;;  %v9057_v11 = vsel %vm9053_vm6, %v9048_v19, %v11210_v51 }
 0x7e5   : > { %v14283_v36 = vpop.f32.mrb[120].mxu0  ;;  %v11213_v53 = vpop.permute.xlu1 %11212 }
 0x7e6   : > { %v8337_v44 = vcombine.low %v14281_v7, %v14283_v36  ;;  %v8338_v31 = vcombine.high %v14281_v7, %v14283_v36  ;;  %v10988_v25 = vpop.f32.mrb[121].mxu0  ;;  %v11215_v17 = vunpack.i.h.bf16 %v11213_v53  ;;  %v11214_v49 = vunpack.i.l.bf16 %v11213_v53 }
 0x7e7   : > { %v7812_v52 = vpop.f32.mrb[122].mxu0 }
 0x7e8   : > { %v10989_v47 = vpop.f32.mrb[123].mxu0  ;;  %v9065_v0 = vsel %vm9062_vm7, %v9056_v43, %v11214_v49  ;;  %v9066_v57 = vsel %vm9062_vm7, %v9057_v11, %v11215_v17  ;;  %v8345_v43 = vrot.slane %v8337_v44, %v12326_v59  ;;  %v8352_v11 = vrot.slane %v8338_v31, %v12326_v59 }
 0x7e9   : > { %v9072_v58 = vpack.c.bf16 %v9066_v57, %v9065_v0 }
 0x7eb   : > { %11001 = vmatmul.mubr.msk.bf16.vlgmr.msra.gmra.mrb[124].mxu0 %vm881_vm1, %v9072_v58 }
 0x7ef   : > { %v7671_v62 = vpop.f32.mrb[128].mxu1 }
 0x7f0   : > { %v8285_v46 = vcombine.low %v7579_v33, %v7671_v62  ;;  %v8286_v28 = vcombine.high %v7579_v33, %v7671_v62  ;;  %v10970_v35 = vpop.f32.mrb[129].mxu1 }
 0x7f1   : > { %v7674_v3 = vpop.f32.mrb[130].mxu1 }
 0x7f2   : > { %v8293_v6 = vrot.slane %v8285_v46, %v12326_v59  ;;  %v8300_v16 = vrot.slane %v8286_v28, %v12326_v59  ;;  %v10971_v15 = vpop.f32.mrb[131].mxu1 }
 0x7f4   : > { %v8301_v1 = vcombine.low %v8277_v23, %v8293_v6  ;;  %v8302_v29 = vcombine.high %v8277_v23, %v8293_v6  ;;  %v8317_v56 = vcombine.low %v8284_v5, %v8300_v16  ;;  %v8318_v34 = vcombine.high %v8284_v5, %v8300_v16 }
 0x7f6   : > { %v8309_v37 = vrot.slane %v8301_v1, %v12345_v9  ;;  %v8316_v60 = vrot.slane %v8302_v29, %v12345_v9  ;;  %v8325_v18 = vrot.slane %v8317_v56, %v12345_v9  ;;  %v8332_v33 = vrot.slane %v8318_v34, %v12345_v9 }
 0x7f7   : > { %v7763_v13 = vpop.f32.mrb[132].mxu1 }
 0x7f8   : > { %v8813_v39 = vcombine.low %v8309_v37, %v8316_v60  ;;  %v10392_v38 = vcombine.high %v8309_v37, %v8316_v60  ;;  %v8829_v10 = vcombine.low %v8325_v18, %v8332_v33  ;;  %v10393_v63 = vcombine.high %v8325_v18, %v8332_v33  ;;  %v10982_v48 = vpop.f32.mrb[133].mxu1 }
 0x7f9   : > { %v7766_v20 = vpop.f32.mrb[134].mxu1 }
 0x7fa   : > { %v8820_v45 = vrot.slane %v8813_v39, %v12326_v59  ;;  %v8828_v22 = vrot.slane %v10392_v38, %v12326_v59  ;;  %v8836_v27 = vrot.slane %v8829_v10, %v12326_v59  ;;  %v8844_v8 = vrot.slane %v10393_v63, %v12326_v59  ;;  %v10983_v21 = vpop.f32.mrb[135].mxu1 }
 0x7fc   : > { %v8845_v32 = vcombine.low %v8820_v45, %v8828_v22  ;;  %v8861_v55 = vcombine.low %v8836_v27, %v8844_v8  ;;  %v8846_v50 = vcombine.high %v8820_v45, %v8828_v22  ;;  %v8862_v61 = vcombine.high %v8836_v27, %v8844_v8 }
 0x7fe   : > { %v14315_v4 = vrot.slane %v8845_v32, %v12345_v9  ;;  %v14318_v41 = vrot.slane %v8861_v55, %v12345_v9  ;;  %v8860_v26 = vrot.slane %v8846_v50, %v12345_v9  ;;  %v8876_v25 = vrot.slane %v8862_v61, %v12345_v9 }
 0x7ff   : > { %v7855_v51 = vpop.f32.mrb[136].mxu1 }
 0x800   : > { %v8353_v40 = vcombine.low %v7763_v13, %v7855_v51  ;;  %v8354_v52 = vcombine.high %v7763_v13, %v7855_v51  ;;  %v10994_v47 = vpop.f32.mrb[137].mxu1  ;;  %v8878_v53 = vcombine.high %v14315_v4, %v14318_v41  ;;  %v8879_v42 = vcombine.low %v8860_v26, %v8876_v25 }
 0x801   : > { %v7858_v19 = vpop.f32.mrb[138].mxu1  ;;  %v8880_v17 = vcombine.high %v8860_v26, %v8876_v25  ;;  %v8877_v49 = vcombine.low %v14315_v4, %v14318_v41 }
 0x802   : > { %v8361_v0 = vrot.slane %v8353_v40, %v12326_v59  ;;  %v8368_v57 = vrot.slane %v8354_v52, %v12326_v59  ;;  %v10995_v58 = vpop.f32.mrb[139].mxu1 }
 0x804   : > { %v8369_v62 = vcombine.low %v8345_v43, %v8361_v0  ;;  %v8370_v46 = vcombine.high %v8345_v43, %v8361_v0  ;;  %v8385_v28 = vcombine.low %v8352_v11, %v8368_v57  ;;  %v8386_v35 = vcombine.high %v8352_v11, %v8368_v57 }
 0x806   : > { %v8377_v3 = vrot.slane %v8369_v62, %v12345_v9  ;;  %v8384_v23 = vrot.slane %v8370_v46, %v12345_v9  ;;  %v8393_v44 = vrot.slane %v8385_v28, %v12345_v9  ;;  %v8400_v5 = vrot.slane %v8386_v35, %v12345_v9  ;;  %v10396_v28 = vld [vmem:[%s14845_s5] ss:$0 sm:$0xff] }
 0x808   : > { %v8881_v6 = vcombine.low %v8377_v3, %v8384_v23  ;;  %v10394_v7 = vcombine.high %v8377_v3, %v8384_v23  ;;  %v8897_v36 = vcombine.low %v8393_v44, %v8400_v5  ;;  %v10395_v31 = vcombine.high %v8393_v44, %v8400_v5  ;;  %v11436_v44 = vld [vmem:[#allocation2] sm:$0xff] }
 0x80a   : > { %v8888_v16 = vrot.slane %v8881_v6, %v12326_v59  ;;  %v8896_v15 = vrot.slane %v10394_v7, %v12326_v59  ;;  %v8904_v1 = vrot.slane %v8897_v36, %v12326_v59  ;;  %v8912_v29 = vrot.slane %v10395_v31, %v12326_v59  ;;  %v11437_v7 = vld [vmem:[#allocation2 + $0x10] sm:$0xff] }
 0x80c   : > { %v8913_v56 = vcombine.low %v8888_v16, %v8896_v15  ;;  %v8929_v34 = vcombine.low %v8904_v1, %v8912_v29  ;;  %v8914_v37 = vcombine.high %v8888_v16, %v8896_v15  ;;  %v8930_v60 = vcombine.high %v8904_v1, %v8912_v29  ;;  %v11438_v16 = vld [vmem:[#allocation2 + $0x8] sm:$0xff] }
 0x80e   : > { %v8921_v18 = vrot.slane %v8913_v56, %v12345_v9  ;;  %v8937_v33 = vrot.slane %v8929_v34, %v12345_v9  ;;  %v8928_v13 = vrot.slane %v8914_v37, %v12345_v9  ;;  %v8944_v39 = vrot.slane %v8930_v60, %v12345_v9  ;;  %v11439_v56 = vld [vmem:[#allocation2 + $0x18] sm:$0xff] }
 0x810   : > { %v8946_v38 = vcombine.high %v8921_v18, %v8937_v33  ;;  %v8947_v10 = vcombine.low %v8928_v13, %v8944_v39  ;;  %v8948_v63 = vcombine.high %v8928_v13, %v8944_v39  ;;  %v8945_v48 = vcombine.low %v8921_v18, %v8937_v33 }
 0x812   : > { %v11231_v20 = vpack.i.bf16 %v8946_v38, %v8878_v53  ;;  %v11236_v45 = vpack.i.bf16 %v8947_v10, %v8879_v42  ;;  %v11241_v22 = vpack.i.bf16 %v8948_v63, %v8880_v17 }
 0x814   : > { %11232 = vrot.lane.b32.xlu1 %v11231_v20, %s11717_s26 }
 0x818   : > { %11237 = vrot.lane.b32.xlu1 %v11236_v45, %s11716_s20 }
 0x81c   : > { %11242 = vrot.lane.b32.xlu1 %v11241_v22, %s11718_s21 }
 0x83b   : > { %v11218_v59 = vpop.permute.xlu0 %11217 }
 0x83c   : > { %v11220_v8 = vunpack.i.h.bf16 %v11218_v59  ;;  %v11219_v21 = vunpack.i.l.bf16 %v11218_v59  ;;  %v11440_v59 = vld [vmem:[#allocation2 + $0x20] sm:$0xff] }
 0x83e   : > { %v9050_v50 = vsel %vm4531_vm3, %v8809_v30, %v11220_v8  ;;  %v9049_v61 = vsel %vm4531_vm3, %v8741_v54, %v11219_v21 }
 0x83f   : > { %v11223_v27 = vpop.permute.xlu0 %11222 }
 0x840   : > { %v11225_v32 = vunpack.i.h.bf16 %v11223_v27  ;;  %v11224_v55 = vunpack.i.l.bf16 %v11223_v27 }
 0x842   : > { %v9058_v51 = vsel %vm9053_vm6, %v9049_v61, %v11224_v55  ;;  %v9059_v40 = vsel %vm9053_vm6, %v9050_v50, %v11225_v32  ;;  %v11441_v50 = vld [vmem:[#allocation2 + $0x30] sm:$0xff] }
 0x843   : > { %v11228_v9 = vpop.permute.xlu0 %11227 }
 0x844   : > { %v11230_v26 = vunpack.i.h.bf16 %v11228_v9  ;;  %v11229_v25 = vunpack.i.l.bf16 %v11228_v9 }
 0x846   : > { %v9067_v52 = vsel %vm9062_vm7, %v9058_v51, %v11229_v25  ;;  %v9068_v47 = vsel %vm9062_vm7, %v9059_v40, %v11230_v26  ;;  %v11442_v26 = vld [vmem:[#allocation2 + $0x28] sm:$0xff] }
 0x847   : > { %v9073_v53 = vpack.c.bf16 %v9068_v47, %v9067_v52  ;;  %v11443_v47 = vld [vmem:[#allocation2 + $0x38] sm:$0xff] }
 0x849   : > { %11004 = vmatprep.mubr.msk.bf16.mxu0 %vm881_vm1, %v9073_v53 }
 0x886   : > { %v11233_v14 = vpop.permute.xlu1 %11232 }
 0x887   : > { %v11235_v30 = vunpack.i.h.bf16 %v11233_v14  ;;  %v11234_v12 = vunpack.i.l.bf16 %v11233_v14 }
 0x889   : > { %v9051_v19 = vsel %vm4531_vm3, %v8877_v49, %v11234_v12  ;;  %v9052_v17 = vsel %vm4531_vm3, %v8945_v48, %v11235_v30 }
 0x88a   : > { %v11238_v24 = vpop.permute.xlu1 %11237 }
 0x88b   : > { %v11240_v2 = vunpack.i.h.bf16 %v11238_v24  ;;  %v11239_v54 = vunpack.i.l.bf16 %v11238_v24 }
 0x88d   : > { %v9060_v0 = vsel %vm9053_vm6, %v9051_v19, %v11239_v54  ;;  %v9061_v57 = vsel %vm9053_vm6, %v9052_v17, %v11240_v2 }
 0x88e   : > { %v11243_v42 = vpop.permute.xlu1 %11242 }
 0x88f   : > { %v11245_v43 = vunpack.i.h.bf16 %v11243_v42  ;;  %v11244_v11 = vunpack.i.l.bf16 %v11243_v42 }
 0x891   : > { %v9069_v58 = vsel %vm9062_vm7, %v9060_v0, %v11244_v11  ;;  %v9070_v62 = vsel %vm9062_vm7, %v9061_v57, %v11245_v43 }
 0x892   : > { %v9074_v46 = vpack.c.bf16 %v9070_v62, %v9069_v58  ;;  %v11250_v58 = vld [vmem:[%s12088_s11] sm:$0xff]   ;;  %v11251_v62 = vld [vmem:[%s12088_s11 + $0x8] sm:$0xff]  }
 0x893   : > { %11008 = vmatprep.subr.bf16.mxu1 %v11250_v58 }
 0x894   : > { %11005 = vmatmul.mubr.msk.bf16.gmra.mrb[128].mxu0 %vm881_vm1, %v9074_v46  ;;  %11009 = vmatpush3.bf16.msra.mxu1 %v11250_v58 }
 0x895   : > { %11010 = vmatprep.subr.bf16.mxu1 %v11251_v62 }
 0x898   : > { %11011 = vmatpush3.bf16.msra.mxu1 %v11251_v62 }
 0x8be   : > { %v11002_v4 = vpop.f32.mrb[124].mxu0 }
 0x8bf   : > { %v9144_v41 = vpop.f32.mrb[125].mxu0  ;;  %v9153_v49 = vadd.f32 %v11002_v4, %v10396_v28 }
 0x8c0   : > { %v9145_v35 = vadd.f32 %v10396_v28, %v9144_v41  ;;  %v11003_v3 = vpop.f32.mrb[126].mxu0 }
 0x8c1   : > { %v9147_v23 = vpop.f32.mrb[127].mxu0  ;;  %v14378_v36 = vadd.f32 %v11437_v7, %v9153_v49  ;;  %v9156_v31 = vadd.f32 %v11003_v3, %v10396_v28 }
 0x8c2   : > { %v14376_v5 = vadd.f32 %v11436_v44, %v9145_v35  ;;  %v9148_v6 = vadd.f32 %v10396_v28, %v9147_v23 }
 0x8c3   : > { %v14386_v34 = vadd.f32 %v11439_v56, %v9156_v31  ;;  %v9191_v37 = vsel %vm881_vm1, %v14378_v36, 0.0 }
 0x8c4   : > { %v14380_v15 = vadd.f32 %v11438_v16, %v9148_v6  ;;  %v9185_v1 = vsel %vm881_vm1, %v14376_v5, 0.0 }
 0x8c5   : > { %9186 = vadd.xlane.f32.xlu0 %v9185_v1  ;;  %v9194_v60 = vsel %vm881_vm1, %v14386_v34, 0.0 }
 0x8c6   : > { %v9188_v29 = vsel %vm881_vm1, %v14380_v15, 0.0 }
 0x8c7   : > { %9189 = vadd.xlane.f32.xlu1 %v9188_v29 }
 0x8c9   : > { %9192 = vadd.xlane.f32.xlu0 %v9191_v37 }
 0x8cd   : > { %9195 = vadd.xlane.f32.xlu0 %v9194_v60 }
 0x952   : > { %v9187_v18 = vpop.xlane.xlu0 %9186 }
 0x953   : > { %v9209_v39 = vmul.f32 0.03125, %v9187_v18 }
 0x954   : > { %v9190_v38 = vpop.xlane.xlu1 %9189 }
 0x955   : > { %v9210_v22 = vmul.f32 0.03125, %v9190_v38  ;;  %v14395_v32 = vsub.f32 %v14376_v5, %v9209_v39 }
 0x956   : > { %v9193_v33 = vpop.xlane.xlu0 %9192 }
 0x957   : > { %v9211_v9 = vmul.f32 0.03125, %v9193_v33  ;;  %v14404_v40 = vsub.f32 %v14380_v15, %v9210_v22  ;;  %v9225_v12 = vmul.f32 %v14395_v32, %v14395_v32 }
 0x959   : > { %v14411_v24 = vsub.f32 %v14378_v36, %v9211_v9  ;;  %v9226_v42 = vmul.f32 %v14404_v40, %v14404_v40  ;;  %v9233_v19 = vsel %vm881_vm1, %v9225_v12, 0.0  ;;  %v14463_v9 = vld [vmem:[%s832_s16] ss:$0 sm:$0xff] }
 0x95a   : > { %v9196_v55 = vpop.xlane.xlu0 %9195 }
 0x95b   : > { %v9212_v52 = vmul.f32 0.03125, %v9196_v55  ;;  %v9227_v17 = vmul.f32 %v14411_v24, %v14411_v24  ;;  %v9236_v43 = vsel %vm881_vm1, %v9226_v42, 0.0 }
 0x95d   : > { %v14418_v2 = vsub.f32 %v14386_v34, %v9212_v52  ;;  %v9239_v0 = vsel %vm881_vm1, %v9227_v17, 0.0 }
 0x95f   : > { %v9228_v11 = vmul.f32 %v14418_v2, %v14418_v2 }
 0x961   : > { %v9242_v57 = vsel %vm881_vm1, %v9228_v11, 0.0 }
 0x967   : > { %v11006_v13 = vpop.f32.mrb[128].mxu0 }
 0x968   : > { %v9160_v10 = vpop.f32.mrb[129].mxu0  ;;  %v9169_v63 = vadd.f32 %v11006_v13, %v10396_v28 }
 0x969   : > { %v9161_v48 = vadd.f32 %v10396_v28, %v9160_v10  ;;  %v11007_v20 = vpop.f32.mrb[130].mxu0 }
 0x96a   : > { %v9163_v45 = vpop.f32.mrb[131].mxu0  ;;  %v9172_v8 = vadd.f32 %v11007_v20, %v10396_v28  ;;  %v14397_v61 = vadd.f32 %v11441_v50, %v9169_v63 }
 0x96b   : > { %v14392_v27 = vadd.f32 %v11440_v59, %v9161_v48  ;;  %v9164_v21 = vadd.f32 %v10396_v28, %v9163_v45 }
 0x96c   : > { %v14406_v53 = vadd.f32 %v11443_v47, %v9172_v8  ;;  %v9203_v30 = vsel %vm881_vm1, %v14397_v61, 0.0 }
 0x96d   : > { %v14399_v25 = vadd.f32 %v11442_v26, %v9164_v21  ;;  %v9197_v51 = vsel %vm881_vm1, %v14392_v27, 0.0 }
 0x96e   : > { %9198 = vadd.xlane.f32.xlu0 %v9197_v51  ;;  %v9206_v54 = vsel %vm881_vm1, %v14406_v53, 0.0 }
 0x96f   : > { %v9200_v14 = vsel %vm881_vm1, %v14399_v25, 0.0 }
 0x970   : > { %9201 = vadd.xlane.f32.xlu1 %v9200_v14  ;;  %v10404_v14 = vld [vmem:[%s835_s7] ss:$0 sm:$0xff] }
 0x972   : > { %9204 = vadd.xlane.f32.xlu0 %v9203_v30 }
 0x974   : > { %9207 = vadd.xlane.f32.xlu1 %v9206_v54 }
 0x976   : > { %9234 = vadd.xlane.f32.xlu0 %v9233_v19 }
 0x978   : > { %9237 = vadd.xlane.f32.xlu1 %v9236_v43 }
 0x97a   : > { %9240 = vadd.xlane.f32.xlu0 %v9239_v0 }
 0x97c   : > { %9243 = vadd.xlane.f32.xlu1 %v9242_v57 }
 0x9fb   : > { %v9199_v46 = vpop.xlane.xlu0 %9198 }
 0x9fc   : > { %v9213_v28 = vmul.f32 0.03125, %v9199_v46 }
 0x9fd   : > { %v9202_v4 = vpop.xlane.xlu1 %9201 }
 0x9fe   : > { %v14435_v41 = vsub.f32 %v14392_v27, %v9213_v28  ;;  %v9214_v49 = vmul.f32 0.03125, %v9202_v4 }
 0x9ff   : > { %v9205_v35 = vpop.xlane.xlu0 %9204 }
 0xa00   : > { %v14438_v3 = vsub.f32 %v14399_v25, %v9214_v49  ;;  %v9215_v23 = vmul.f32 0.03125, %v9205_v35  ;;  %v9229_v44 = vmul.f32 %v14435_v41, %v14435_v41 }
 0xa01   : > { %v9208_v6 = vpop.xlane.xlu1 %9207 }
 0xa02   : > { %v14443_v7 = vsub.f32 %v14397_v61, %v9215_v23  ;;  %v9216_v31 = vmul.f32 0.03125, %v9208_v6  ;;  %v9245_v16 = vsel %vm881_vm1, %v9229_v44, 0.0  ;;  %v9230_v1 = vmul.f32 %v14438_v3, %v14438_v3 }
 0xa03   : > { %9246 = vadd.xlane.f32.xlu0 %v9245_v16  ;;  %v9235_v29 = vpop.xlane.xlu0 %9234  ;;  %v11253_v16 = vld [vmem:[%s12147_s30 + $0x8] sm:$0xff]  }
 0xa04   : > { %v14449_v56 = vsub.f32 %v14406_v53, %v9216_v31  ;;  %v9257_v37 = vmul.f32 0.03125, %v9235_v29  ;;  %v9248_v60 = vsel %vm881_vm1, %v9230_v1, 0.0  ;;  %v9231_v18 = vmul.f32 %v14443_v7, %v14443_v7  ;;  %v11252_v31 = vld [vmem:[%s12147_s30] sm:$0xff]   ;;  %v11254_v29 = vld [vmem:[%s12147_s30 + $0x10] sm:$0xff]  }
 0xa05   : > { %v9238_v33 = vpop.xlane.xlu1 %9237  ;;  %9249 = vadd.xlane.f32.xlu1 %v9248_v60  ;;  %11020 = vmatprep.subr.bf16.mxu0 %v11252_v31 }
 0xa06   : > { %v9265_v13 = vadd.f32 1e-05, %v9257_v37  ;;  %v9258_v39 = vmul.f32 0.03125, %v9238_v33  ;;  %v9251_v38 = vsel %vm881_vm1, %v9231_v18, 0.0  ;;  %v9232_v10 = vmul.f32 %v14449_v56, %v14449_v56  ;;  %11021 = vmatpush3.bf16.msra.mxu0 %v11252_v31 }
 0xa07   : > { %9252 = vadd.xlane.f32.xlu0 %v9251_v38  ;;  %v9241_v63 = vpop.xlane.xlu0 %9240  ;;  %11022 = vmatprep.subr.bf16.mxu0 %v11253_v16 }
 0xa08   : > { %11404 = vrsqrt.f32 %v9265_v13  ;;  %v9266_v48 = vadd.f32 1e-05, %v9258_v39  ;;  %v9259_v20 = vmul.f32 0.03125, %v9241_v63  ;;  %v9254_v45 = vsel %vm881_vm1, %v9232_v10, 0.0  ;;  %v11255_v39 = vld [vmem:[%s12147_s30 + $0x18] sm:$0xff]  }
 0xa09   : > { %9255 = vadd.xlane.f32.xlu1 %v9254_v45  ;;  %v9244_v22 = vpop.xlane.xlu1 %9243 }
 0xa0a   : > { %11406 = vrsqrt.f32 %v9266_v48  ;;  %v9267_v59 = vadd.f32 1e-05, %v9259_v20  ;;  %v9260_v8 = vmul.f32 0.03125, %v9244_v22  ;;  %11023 = vmatpush3.bf16.msra.mxu0 %v11253_v16 }
 0xa0b   : > { %11024 = vmatprep.subr.bf16.mxu0 %v11254_v29 }
 0xa0c   : > { %11408 = vrsqrt.f32 %v9267_v59  ;;  %v9268_v21 = vadd.f32 1e-05, %v9260_v8 }
 0xa0e   : > { %11410 = vrsqrt.f32 %v9268_v21  ;;  %11025 = vmatpush3.bf16.msra.mxu0 %v11254_v29 }
 0xa0f   : > { %11026 = vmatprep.subr.bf16.mxu0 %v11255_v39 }
 0xa12   : > { %v11405_v55 = vpop.eup %11404  ;;  %11027 = vmatpush3.bf16.msra.mxu0 %v11255_v39 }
 0xa13   : > { %v9281_v50 = vmul.f32 %v11405_v55, %v14395_v32  ;;  %v11258_v55 = vld [vmem:[%s12147_s30 + $0x30] sm:$0xff]  }
 0xa14   : > { %v11407_v26 = vpop.eup %11406 }
 0xa15   : > { %v9282_v51 = vmul.f32 %v11407_v26, %v14404_v40  ;;  %v9295_v52 = vmul.f32 %v14463_v9, %v9281_v50  ;;  %v11259_v50 = vld [vmem:[%s12147_s30 + $0x38] sm:$0xff]   ;;  %v10405_v26 = vld [vmem:[%s838_s28] ss:$0 sm:$0xff] }
 0xa16   : > { %v11409_v47 = vpop.eup %11408 }
 0xa17   : > { %v9283_v30 = vmul.f32 %v11409_v47, %v14411_v24  ;;  %v9296_v12 = vmul.f32 %v14463_v9, %v9282_v51  ;;  %v9309_v19 = vadd.f32 %v10404_v14, %v9295_v52 }
 0xa18   : > { %v11411_v54 = vpop.eup %11410 }
 0xa19   : > { %v9297_v42 = vmul.f32 %v14463_v9, %v9283_v30  ;;  %v9284_v32 = vmul.f32 %v11411_v54, %v14418_v2  ;;  %v9310_v17 = vadd.f32 %v10404_v14, %v9296_v12 }
 0xa1b   : > { %v9298_v40 = vmul.f32 %v14463_v9, %v9284_v32  ;;  %v9317_v43 = vpack.c.bf16 %v9310_v17, %v9309_v19  ;;  %v9311_v11 = vadd.f32 %v10404_v14, %v9297_v42 }
 0xa1d   : > { %11012 = vmatprep.mubr.msk.bf16.mxu1 %vm881_vm1, %v9317_v43  ;;  %v9312_v0 = vadd.f32 %v10404_v14, %v9298_v40 }
 0xa1f   : > { %v9318_v57 = vpack.c.bf16 %v9312_v0, %v9311_v11 }
 0xa21   : > { %11013 = vmatmul.mubr.msk.bf16.vlgmr.msra.gmra.mrb[140].mxu1 %vm881_vm1, %v9318_v57 }
 0xa90   : > { %v9247_v24 = vpop.xlane.xlu0 %9246 }
 0xa91   : > { %v9261_v58 = vmul.f32 0.03125, %v9247_v24 }
 0xa92   : > { %v9250_v62 = vpop.xlane.xlu1 %9249 }
 0xa93   : > { %v9269_v46 = vadd.f32 1e-05, %v9261_v58  ;;  %v9262_v28 = vmul.f32 0.03125, %v9250_v62 }
 0xa94   : > { %v9253_v2 = vpop.xlane.xlu0 %9252 }
 0xa95   : > { %11412 = vrsqrt.f32 %v9269_v46  ;;  %v9270_v4 = vadd.f32 1e-05, %v9262_v28  ;;  %v9263_v49 = vmul.f32 0.03125, %v9253_v2 }
 0xa96   : > { %v9256_v35 = vpop.xlane.xlu1 %9255 }
 0xa97   : > { %11414 = vrsqrt.f32 %v9270_v4  ;;  %v9271_v23 = vadd.f32 1e-05, %v9263_v49  ;;  %v9264_v44 = vmul.f32 0.03125, %v9256_v35 }
 0xa99   : > { %11416 = vrsqrt.f32 %v9271_v23  ;;  %v9272_v6 = vadd.f32 1e-05, %v9264_v44 }
 0xa9b   : > { %11418 = vrsqrt.f32 %v9272_v6 }
 0xa9f   : > { %v11413_v1 = vpop.eup %11412 }
 0xaa0   : > { %v9285_v37 = vmul.f32 %v11413_v1, %v14435_v41 }
 0xaa1   : > { %v11415_v60 = vpop.eup %11414 }
 0xaa2   : > { %v9286_v18 = vmul.f32 %v11415_v60, %v14438_v3  ;;  %v9299_v33 = vmul.f32 %v14463_v9, %v9285_v37  ;;  %v11256_v3 = vld [vmem:[%s12147_s30 + $0x20] sm:$0xff]  }
 0xaa3   : > { %v11417_v13 = vpop.eup %11416  ;;  %11028 = vmatprep.subr.bf16.mxu0 %v11256_v3 }
 0xaa4   : > { %v9287_v38 = vmul.f32 %v11417_v13, %v14443_v7  ;;  %v9300_v10 = vmul.f32 %v14463_v9, %v9286_v18  ;;  %v9313_v20 = vadd.f32 %v10404_v14, %v9299_v33  ;;  %11029 = vmatpush3.bf16.msra.mxu0 %v11256_v3 }
 0xaa5   : > { %v11419_v63 = vpop.eup %11418 }
 0xaa6   : > { %v9288_v48 = vmul.f32 %v11419_v63, %v14449_v56  ;;  %v9314_v41 = vadd.f32 %v10404_v14, %v9300_v10  ;;  %v9301_v45 = vmul.f32 %v14463_v9, %v9287_v38  ;;  %v11257_v56 = vld [vmem:[%s12147_s30 + $0x28] sm:$0xff]  }
 0xaa7   : > { %11030 = vmatprep.subr.bf16.mxu0 %v11257_v56 }
 0xaa8   : > { %v9319_v22 = vpack.c.bf16 %v9314_v41, %v9313_v20  ;;  %v9302_v59 = vmul.f32 %v14463_v9, %v9288_v48  ;;  %v9315_v7 = vadd.f32 %v10404_v14, %v9301_v45  ;;  %11031 = vmatpush3.bf16.msra.mxu0 %v11257_v56 }
 0xaa9   : > { %11032 = vmatprep.subr.bf16.mxu0 %v11258_v55 }
 0xaaa   : > { %11016 = vmatprep.mubr.msk.bf16.mxu1 %vm881_vm1, %v9319_v22  ;;  %v9316_v8 = vadd.f32 %v10404_v14, %v9302_v59  ;;  %v10416_v59 = vld [vmem:[%s846_s13] ss:$0 sm:$0xff] }
 0xaac   : > { %v9320_v21 = vpack.c.bf16 %v9316_v8, %v9315_v7  ;;  %11033 = vmatpush3.bf16.msra.mxu0 %v11258_v55 }
 0xaad   : > { %11034 = vmatprep.subr.bf16.mxu0 %v11259_v50 }
 0xaae   : > { %11017 = vmatmul.mubr.msk.bf16.gmra.mrb[144].mxu1 %vm881_vm1, %v9320_v21 }
 0xab0   : > { %11035 = vmatpush3.bf16.msra.mxu0 %v11259_v50 }
 0xaf4   : > { %v11014_v9 = vpop.f32.mrb[140].mxu1 }
 0xaf5   : > { %v9390_v51 = vpop.f32.mrb[141].mxu1  ;;  %v9399_v47 = vadd.f32 %v11014_v9, %v10405_v26 }
 0xaf6   : > { %v11015_v52 = vpop.f32.mrb[142].mxu1  ;;  %v9391_v12 = vadd.f32 %v10405_v26, %v9390_v51 }
 0xaf7   : > { %v9402_v14 = vadd.f32 %v11015_v52, %v10405_v26  ;;  %v9393_v30 = vpop.f32.mrb[143].mxu1 }
 0xaf8   : > { %v9394_v54 = vadd.f32 %v10405_v26, %v9393_v30 }
 0xaf9   : > { %v9422_v42 = vpack.c.bf16 %v9402_v14, %v9399_v47 }
 0xafa   : > { %v9421_v32 = vpack.c.bf16 %v9394_v54, %v9391_v12 }
 0xafb   : > { %v10413_v19 = vmul.bf16 3218784218, %v9422_v42 }
 0xafc   : > { %v10412_v17 = vmul.bf16 3218784218, %v9421_v32 }
 0xafd   : > { %v9437_v40 = vmul.bf16 1069105081, %v10413_v19 }
 0xafe   : > { %v9434_v43 = vmul.bf16 1069105081, %v10412_v17 }
 0xaff   : > { %11420 = vpow.bf16 %v9437_v40 }
 0xb00   : > { %11422 = vpow.bf16 %v9434_v43 }
 0xb0a   : > { %v11421_v11 = vpop.eup %11420 }
 0xb0b   : > { %v11423_v0 = vpop.eup %11422  ;;  %v9446_v57 = vadd.bf16 1065369472, %v11421_v11 }
 0xb0c   : > { %v9445_v24 = vadd.bf16 1065369472, %v11423_v0 }
 0xb0d   : > { %11424 = vrcp.bf16 %v9446_v57 }
 0xb0e   : > { %11426 = vrcp.bf16 %v9445_v24 }
 0xb18   : > { %v11425_v58 = vpop.eup %11424 }
 0xb19   : > { %v11427_v62 = vpop.eup %11426  ;;  %v9452_v46 = vmul.bf16 1065369472, %v11425_v58 }
 0xb1a   : > { %v9450_v28 = vmul.bf16 1065369472, %v11427_v62 }
 0xb1b   : > { %v9458_v4 = vmul.bf16 %v9452_v46, %v9422_v42 }
 0xb1c   : > { %v9457_v2 = vmul.bf16 %v9450_v28, %v9421_v32 }
 0xb1e   : > { %11036 = vmatprep.mubr.bf16.mxu0 %v9457_v2 }
 0xb1f   : > { %11037 = vmatmul.mubr.bf16.vlgmr.msra.gmra.mrb[132].mxu0 %v9458_v4 }
 0xb81   : > { %v11018_v49 = vpop.f32.mrb[144].mxu1 }
 0xb82   : > { %v9406_v35 = vpop.f32.mrb[145].mxu1  ;;  %v9415_v44 = vadd.f32 %v11018_v49, %v10405_v26 }
 0xb83   : > { %v11019_v23 = vpop.f32.mrb[146].mxu1  ;;  %v9407_v16 = vadd.f32 %v10405_v26, %v9406_v35 }
 0xb84   : > { %v9418_v6 = vadd.f32 %v11019_v23, %v10405_v26  ;;  %v9409_v31 = vpop.f32.mrb[147].mxu1 }
 0xb85   : > { %v9410_v1 = vadd.f32 %v10405_v26, %v9409_v31 }
 0xb86   : > { %v9424_v29 = vpack.c.bf16 %v9418_v6, %v9415_v44 }
 0xb87   : > { %v9423_v37 = vpack.c.bf16 %v9410_v1, %v9407_v16 }
 0xb88   : > { %v10415_v60 = vmul.bf16 3218784218, %v9424_v29 }
 0xb89   : > { %v10414_v18 = vmul.bf16 3218784218, %v9423_v37 }
 0xb8a   : > { %v9443_v33 = vmul.bf16 1069105081, %v10415_v60 }
 0xb8b   : > { %v9440_v13 = vmul.bf16 1069105081, %v10414_v18 }
 0xb8c   : > { %11428 = vpow.bf16 %v9443_v33 }
 0xb8d   : > { %11430 = vpow.bf16 %v9440_v13 }
 0xb97   : > { %v11429_v39 = vpop.eup %11428 }
 0xb98   : > { %v11431_v38 = vpop.eup %11430  ;;  %v9448_v10 = vadd.bf16 1065369472, %v11429_v39 }
 0xb99   : > { %v9447_v63 = vadd.bf16 1065369472, %v11431_v38 }
 0xb9a   : > { %11432 = vrcp.bf16 %v9448_v10 }
 0xb9b   : > { %11434 = vrcp.bf16 %v9447_v63 }
 0xba5   : > { %v11433_v48 = vpop.eup %11432 }
 0xba6   : > { %v11435_v20 = vpop.eup %11434  ;;  %v9456_v41 = vmul.bf16 1065369472, %v11433_v48 }
 0xba7   : > { %v9454_v45 = vmul.bf16 1065369472, %v11435_v20 }
 0xba8   : > { %v9460_v22 = vmul.bf16 %v9456_v41, %v9424_v29 }
 0xba9   : > { %v9459_v3 = vmul.bf16 %v9454_v45, %v9423_v37 }
 0xbab   : > { %11040 = vmatprep.mubr.bf16.mxu0 %v9459_v3 }
 0xbac   : > { %11041 = vmatmul.mubr.bf16.gmra.mrb[136].mxu0 %v9460_v22 }
 0xbf2   : > { %v11038_v7 = vpop.f32.mrb[132].mxu0 }
 0xbf3   : > { %v9575_v8 = vadd.f32 %v11038_v7, %v10416_v59  ;;  %v9566_v56 = vpop.f32.mrb[133].mxu0 }
 0xbf4   : > { %v9567_v21 = vadd.f32 %v10416_v59, %v9566_v56  ;;  %v11039_v55 = vpop.f32.mrb[134].mxu0 }
 0xbf5   : > { %v9599_v50 = vadd.f32 %v9575_v8, %v14378_v36  ;;  %v9578_v9 = vadd.f32 %v11039_v55, %v10416_v59  ;;  %v9569_v26 = vpop.f32.mrb[135].mxu0 }
 0xbf6   : > { %v9597_v51 = vadd.f32 %v9567_v21, %v14376_v5  ;;  %v9570_v52 = vadd.f32 %v10416_v59, %v9569_v26 }
 0xbf7   : > { %9607 = vst.msk [vmem:[#allocation2 + $0x10] sm:$0xff] %vm881_vm1, %v9599_v50  ;;  %v9600_v47 = vadd.f32 %v9578_v9, %v14386_v34 }
 0xbf8   : > { %9605 = vst.msk [vmem:[#allocation2] sm:$0xff] %vm881_vm1, %v9597_v51  ;;  %v9598_v14 = vadd.f32 %v9570_v52, %v14380_v15 }
 0xbf9   : > { %9608 = vst.msk [vmem:[#allocation2 + $0x18] sm:$0xff] %vm881_vm1, %v9600_v47 }
 0xbfa   : > { %9606 = vst.msk [vmem:[#allocation2 + $0x8] sm:$0xff] %vm881_vm1, %v9598_v14 }
 0xc7f   : > { %v11042_v30 = vpop.f32.mrb[136].mxu0 }
 0xc80   : > { %v9591_v12 = vadd.f32 %v11042_v30, %v10416_v59  ;;  %v9582_v36 = vpop.f32.mrb[137].mxu0 }
 0xc81   : > { %v9583_v54 = vadd.f32 %v10416_v59, %v9582_v36  ;;  %v11043_v42 = vpop.f32.mrb[138].mxu0  ;;  %9616 = sbr.rel (%p10425_p1) target bundleno = 3907 (0xf43), region = 112 }
 0xc82   : > { %v14517_v5 = vadd.f32 %v9591_v12, %v14397_v61  ;;  %v9594_v32 = vadd.f32 %v11043_v42, %v10416_v59  ;;  %v9585_v19 = vpop.f32.mrb[139].mxu0  ;;  %v14850_v61 = vld [vmem:[#allocation31_spill] sm:$0xff] (!%p10425_p1) }
 0xc83   : > { %v9601_v34 = vadd.f32 %v9583_v54, %v14392_v27  ;;  %v9586_v17 = vadd.f32 %v10416_v59, %v9585_v19  ;;  %v9617_v27 = vld [vmem:[%s12111_s12] sm:$0xff] (!%p10425_p1)  ;;  %v9634_v43 = vsub.s32 (!%p10425_p1), 2, %v14850_v61  ;;  %v9620_v11 = vsub.s32 (!%p10425_p1), 0, %v14850_v61 }
 0xc84   : > { %9611 = vst.msk [vmem:[#allocation2 + $0x30] sm:$0xff] %vm881_vm1, %v14517_v5  ;;  %v14523_v15 = vadd.f32 %v9594_v32, %v14406_v53  ;;  %v9641_v53 = vsub.s32 (!%p10425_p1), 3, %v14850_v61  ;;  %v9627_v0 = vsub.s32 (!%p10425_p1), 1, %v14850_v61  ;;  %v9655_v62 = vsub.s32 (!%p10425_p1), 5, %v14850_v61 }
 0xc85   : > { %9609 = vst.msk [vmem:[#allocation2 + $0x20] sm:$0xff] %vm881_vm1, %v9601_v34  ;;  %v9602_v40 = vadd.f32 %v9586_v17, %v14399_v25  ;;  %v9635_v57 = vrot.slane (!%p10425_p1), %v9617_v27, %v9634_v43  ;;  %v9621_v25 = vrot.slane (!%p10425_p1), %v9617_v27, %v9620_v11  ;;  %v9648_v46 = vsub.s32 (!%p10425_p1), 4, %v14850_v61 }
 0xc86   : > { %9612 = vst.msk [vmem:[#allocation2 + $0x38] sm:$0xff] %vm881_vm1, %v14523_v15  ;;  %v9642_v24 = vrot.slane (!%p10425_p1), %v9617_v27, %v9641_v53  ;;  %v9628_v58 = vrot.slane (!%p10425_p1), %v9617_v27, %v9627_v0  ;;  %v9656_v28 = vrot.slane (!%p10425_p1), %v9617_v27, %v9655_v62  ;;  %v9669_v4 = vsub.s32 (!%p10425_p1), 7, %v14850_v61 }
 0xc87   : > { %9610 = vst.msk [vmem:[#allocation2 + $0x28] sm:$0xff] %vm881_vm1, %v9602_v40  ;;  %9637 = vbcast.lane.b32.xlu1 (!%p10425_p1), %v9635_v57, 256  ;;  %9623 = vbcast.lane.b32.xlu0 (!%p10425_p1), %v9621_v25, 256  ;;  %v9649_v2 = vrot.slane (!%p10425_p1), %v9617_v27, %v9648_v46  ;;  %v9662_v49 = vsub.s32 (!%p10425_p1), 6, %v14850_v61 }
 0xc88   : > { %v9670_v35 = vrot.slane %v9617_v27, %v9669_v4 }
 0xc89   : > { %v9663_v23 = vrot.slane %v9617_v27, %v9662_v49 }
 0xc8b   : > { %9644 = vbcast.lane.b32.xlu1 %v9642_v24, 256  ;;  %9630 = vbcast.lane.b32.xlu0 %v9628_v58, 256 }
 0xc8f   : > { %9658 = vbcast.lane.b32.xlu1 %v9656_v28, 256  ;;  %9651 = vbcast.lane.b32.xlu0 %v9649_v2, 256 }
 0xc93   : > { %9672 = vbcast.lane.b32.xlu1 %v9670_v35, 256  ;;  %9665 = vbcast.lane.b32.xlu0 %v9663_v23, 256 }
 0xcf9   : > { %v9638_v44 = vpop.permute.xlu1 %9637  ;;  %v9624_v6 = vpop.permute.xlu0 %9623 }
 0xcfa   : > { %v9676_v31 = vmul.f32 %v9638_v44, %v9599_v50  ;;  %v9674_v16 = vmul.f32 %v9624_v6, %v9597_v51 }
 0xcfc   : > { %v9696_v1 = vsel %vm881_vm1, %v9676_v31, 0.0  ;;  %v9682_v29 = vsel %vm881_vm1, %v9674_v16, 0.0 }
 0xcfd   : > { %v9697_v37 = vrot.slane %v9696_v1, 4  ;;  %v9683_v60 = vrot.slane %v9682_v29, 4  ;;  %v9645_v18 = vpop.permute.xlu1 %9644  ;;  %v9631_v33 = vpop.permute.xlu0 %9630 }
 0xcfe   : > { %v9677_v13 = vmul.f32 %v9645_v18, %v9600_v47  ;;  %v9675_v39 = vmul.f32 %v9631_v33, %v9598_v14 }
 0xcff   : > { %v9698_v38 = vadd.f32 %v9697_v37, %v9696_v1  ;;  %v9684_v10 = vadd.f32 %v9683_v60, %v9682_v29 }
 0xd00   : > { %v9703_v63 = vsel %vm881_vm1, %v9677_v13, 0.0  ;;  %v9689_v48 = vsel %vm881_vm1, %v9675_v39, 0.0 }
 0xd01   : > { %v9699_v20 = vrot.slane %v9698_v38, 2  ;;  %v9685_v41 = vrot.slane %v9684_v10, 2  ;;  %v9704_v45 = vrot.slane %v9703_v63, 4  ;;  %v9690_v3 = vrot.slane %v9689_v48, 4  ;;  %v9659_v22 = vpop.permute.xlu1 %9658  ;;  %v9652_v59 = vpop.permute.xlu0 %9651 }
 0xd02   : > { %v9679_v7 = vmul.f32 %v9659_v22, %v9602_v40  ;;  %v9678_v8 = vmul.f32 %v9652_v59, %v9601_v34 }
 0xd03   : > { %v9700_v56 = vadd.f32 %v9699_v20, %v9698_v38  ;;  %v9686_v21 = vadd.f32 %v9685_v41, %v9684_v10  ;;  %v9705_v55 = vadd.f32 %v9704_v45, %v9703_v63  ;;  %v9691_v50 = vadd.f32 %v9690_v3, %v9689_v48 }
 0xd04   : > { %v9717_v9 = vsel %vm881_vm1, %v9679_v7, 0.0  ;;  %v9710_v26 = vsel %vm881_vm1, %v9678_v8, 0.0 }
 0xd05   : > { %v9706_v51 = vrot.slane %v9705_v55, 2  ;;  %v9692_v52 = vrot.slane %v9691_v50, 2  ;;  %v9673_v47 = vpop.permute.xlu1 %9672  ;;  %v9666_v14 = vpop.permute.xlu0 %9665  ;;  %v9718_v30 = vrot.slane %v9717_v9, 4  ;;  %v9711_v12 = vrot.slane %v9710_v26, 4 }
 0xd06   : > { %v9681_v36 = vmul.f32 %v9673_v47, %v14523_v15  ;;  %v9680_v54 = vmul.f32 %v9666_v14, %v14517_v5  ;;  %v9701_v42 = vrot.slane %v9700_v56, 1  ;;  %v9687_v32 = vrot.slane %v9686_v21, 1 }
 0xd07   : > { %v9707_v19 = vadd.f32 %v9706_v51, %v9705_v55  ;;  %v9693_v34 = vadd.f32 %v9692_v52, %v9691_v50  ;;  %v9719_v17 = vadd.f32 %v9718_v30, %v9717_v9  ;;  %v9712_v40 = vadd.f32 %v9711_v12, %v9710_v26 }
 0xd08   : > { %v9731_v27 = vsel %vm881_vm1, %v9681_v36, 0.0  ;;  %v9724_v61 = vsel %vm881_vm1, %v9680_v54, 0.0  ;;  %v9688_v15 = vadd.f32 %v9687_v32, %v9686_v21  ;;  %v9702_v62 = vadd.f32 %v9701_v42, %v9700_v56 }
 0xd09   : > { %v9708_v43 = vrot.slane %v9707_v19, 1  ;;  %v9694_v11 = vrot.slane %v9693_v34, 1  ;;  %v9732_v53 = vrot.slane %v9731_v27, 4  ;;  %v9725_v0 = vrot.slane %v9724_v61, 4 }
 0xd0a   : > { %v9720_v57 = vrot.slane %v9719_v17, 2  ;;  %v9713_v25 = vrot.slane %v9712_v40, 2 }
 0xd0b   : > { %v9695_v5 = vadd.f32 %v9694_v11, %v9693_v34  ;;  %v9733_v24 = vadd.f32 %v9732_v53, %v9731_v27  ;;  %v9726_v58 = vadd.f32 %v9725_v0, %v9724_v61  ;;  %v9709_v2 = vadd.f32 %v9708_v43, %v9707_v19 }
 0xd0c   : > { %v9721_v46 = vadd.f32 %v9720_v57, %v9719_v17  ;;  %v9714_v28 = vadd.f32 %v9713_v25, %v9712_v40 }
 0xd0d   : > { %v9749_v4 = vsel %vm9748_vm8, %v9695_v5, %v9688_v15  ;;  %v9734_v49 = vrot.slane %v9733_v24, 2  ;;  %v9727_v35 = vrot.slane %v9726_v58, 2 }
 0xd0e   : > { %v9722_v23 = vrot.slane %v9721_v46, 1  ;;  %v9715_v44 = vrot.slane %v9714_v28, 1  ;;  %v9751_v6 = vsel %vm9750_vm9, %v9702_v62, %v9749_v4 }
 0xd0f   : > { %v9735_v31 = vadd.f32 %v9734_v49, %v9733_v24  ;;  %v9728_v16 = vadd.f32 %v9727_v35, %v9726_v58  ;;  %v9753_v1 = vsel %vm9752_vm10, %v9709_v2, %v9751_v6 }
 0xd10   : > { %v9723_v29 = vadd.f32 %v9722_v23, %v9721_v46  ;;  %v9716_v37 = vadd.f32 %v9715_v44, %v9714_v28  ;;  %v11719_v46 = vmov 0.0   ;;  %v11445_v28 = vld [vmem:[%s14851_s15 + $0x8] sm:$0xff]   ;;  %v10426_v23 = vld [vmem:[%s14852_s14] ss:$0 sm:$0xff] }
 0xd11   : > { %v9736_v60 = vrot.slane %v9735_v31, 1  ;;  %v9729_v18 = vrot.slane %v9728_v16, 1  ;;  %11044 = vmatprep.subr.bf16.mxu0 %v11719_v46  ;;  %11048 = vmatprep.mubr.msk.bf16.mxu0 %vm11720_vm15, %v11719_v46 }
 0xd12   : > { %v9755_v33 = vsel %vm9754_vm11, %v9716_v37, %v9753_v1 }
 0xd13   : > { %v9730_v13 = vadd.f32 %v9729_v18, %v9728_v16  ;;  %v9737_v39 = vadd.f32 %v9736_v60, %v9735_v31  ;;  %v9757_v38 = vsel %vm9756_vm12, %v9723_v29, %v9755_v33  ;;  %v10427_v18 = vld [vmem:[%s14853_s9] ss:$0 sm:$0xff] }
 0xd15   : > { %v9759_v10 = vsel %vm9758_vm13, %v9730_v13, %v9757_v38 }
 0xd16   : > { %v9761_v63 = vsel %vm9760_vm14, %v9737_v39, %v9759_v10 }
 0xd17   : > { %v9763_v48 = vsel %vm881_vm1, %v9761_v63, 0.0 }
 0xd18   : > { %9764 = vadd.xlane.f32.xlu0 %v9763_v48 }
 0xda5   : > { %v9765_v20 = vpop.xlane.xlu0 %9764 }
 0xda6   : > { %v9766_v41 = vmul.f32 0.03125, %v9765_v20 }
 0xda8   : > { %v9768_v45 = vrot.slane %v9766_v41, 1  ;;  %v9769_v3 = vrot.slane %v9766_v41, 2  ;;  %v9770_v22 = vrot.slane %v9766_v41, 3  ;;  %v9771_v59 = vrot.slane %v9766_v41, 4 }
 0xda9   : > { %v9772_v7 = vrot.slane %v9766_v41, 5  ;;  %v9773_v8 = vrot.slane %v9766_v41, 6  ;;  %v9774_v56 = vrot.slane %v9766_v41, 7  ;;  %v9783_v21 = vsub.f32 %v9688_v15, %v9766_v41 }
 0xdaa   : > { %v9784_v55 = vsub.f32 %v9695_v5, %v9768_v45  ;;  %v9785_v50 = vsub.f32 %v9702_v62, %v9769_v3  ;;  %v9786_v9 = vsub.f32 %v9709_v2, %v9770_v22  ;;  %v9787_v26 = vsub.f32 %v9716_v37, %v9771_v59  ;;  %v11444_v62 = vld [vmem:[%s14851_s15] sm:$0xff]  }
 0xdab   : > { %v9788_v51 = vsub.f32 %v9723_v29, %v9772_v7  ;;  %v9789_v52 = vsub.f32 %v9730_v13, %v9773_v8  ;;  %v9790_v47 = vsub.f32 %v9737_v39, %v9774_v56  ;;  %v9791_v54 = vmul.f32 %v9783_v21, %v9783_v21  ;;  %11045 = vmatpush3.bf16.msra.mxu0 %v11444_v62 }
 0xdac   : > { %v9792_v14 = vmul.f32 %v9784_v55, %v9784_v55  ;;  %v9793_v30 = vmul.f32 %v9785_v50, %v9785_v50  ;;  %v9794_v12 = vmul.f32 %v9786_v9, %v9786_v9  ;;  %v9795_v36 = vmul.f32 %v9787_v26, %v9787_v26  ;;  %11046 = vmatprep.subr.bf16.mxu0 %v11719_v46 }
 0xdad   : > { %v9796_v42 = vmul.f32 %v9788_v51, %v9788_v51  ;;  %v9797_v34 = vmul.f32 %v9789_v52, %v9789_v52  ;;  %v9798_v17 = vmul.f32 %v9790_v47, %v9790_v47 }
 0xdae   : > { %v9807_v32 = vrot.slane %v9792_v14, 7  ;;  %v9809_v19 = vrot.slane %v9793_v30, 6  ;;  %v9811_v27 = vrot.slane %v9794_v12, 5  ;;  %v9813_v43 = vrot.slane %v9795_v36, 4 }
 0xdaf   : > { %v9815_v53 = vrot.slane %v9796_v42, 3  ;;  %v9817_v57 = vrot.slane %v9797_v34, 2  ;;  %v9819_v15 = vrot.slane %v9798_v17, 1  ;;  %11047 = vmatpush3.bf16.msra.mxu0 %v11445_v28 }
 0xdb0   : > { %v9808_v40 = vsel %vm9748_vm8, %v9807_v32, %v9791_v54 }
 0xdb1   : > { %v9810_v61 = vsel %vm9750_vm9, %v9809_v19, %v9808_v40 }
 0xdb2   : > { %v9812_v11 = vsel %vm9752_vm10, %v9811_v27, %v9810_v61 }
 0xdb3   : > { %v9814_v0 = vsel %vm9754_vm11, %v9813_v43, %v9812_v11 }
 0xdb4   : > { %v9816_v25 = vsel %vm9756_vm12, %v9815_v53, %v9814_v0 }
 0xdb5   : > { %v9818_v5 = vsel %vm9758_vm13, %v9817_v57, %v9816_v25 }
 0xdb6   : > { %v9820_v24 = vsel %vm9760_vm14, %v9819_v15, %v9818_v5 }
 0xdb7   : > { %v9822_v58 = vsel %vm881_vm1, %v9820_v24, 0.0 }
 0xdb8   : > { %9823 = vadd.xlane.f32.xlu1 %v9822_v58 }
 0xe45   : > { %v9824_v2 = vpop.xlane.xlu1 %9823 }
 0xe46   : > { %v9825_v4 = vmul.f32 0.03125, %v9824_v2 }
 0xe48   : > { %v9826_v49 = vadd.f32 1e-05, %v9825_v4 }
 0xe4a   : > { %11446 = vrsqrt.f32 %v9826_v49 }
 0xe54   : > { %v11447_v35 = vpop.eup %11446 }
 0xe55   : > { %v9829_v44 = vrot.slane %v11447_v35, 1  ;;  %v9830_v6 = vrot.slane %v11447_v35, 2  ;;  %v9831_v31 = vrot.slane %v11447_v35, 3  ;;  %v9832_v16 = vrot.slane %v11447_v35, 4 }
 0xe56   : > { %v9833_v1 = vrot.slane %v11447_v35, 5  ;;  %v9834_v29 = vrot.slane %v11447_v35, 6  ;;  %v9835_v37 = vrot.slane %v11447_v35, 7  ;;  %v9844_v60 = vmul.f32 %v11447_v35, %v9783_v21 }
 0xe57   : > { %v9845_v33 = vmul.f32 %v9829_v44, %v9784_v55  ;;  %v9846_v13 = vmul.f32 %v9830_v6, %v9785_v50  ;;  %v9847_v39 = vmul.f32 %v9831_v31, %v9786_v9  ;;  %v9848_v38 = vmul.f32 %v9832_v16, %v9787_v26 }
 0xe58   : > { %v9849_v10 = vmul.f32 %v9833_v1, %v9788_v51  ;;  %v9850_v63 = vmul.f32 %v9834_v29, %v9789_v52  ;;  %v9851_v48 = vmul.f32 %v9835_v37, %v9790_v47  ;;  %v9858_v20 = vmul.f32 %v10426_v23, %v9844_v60 }
 0xe59   : > { %v9859_v41 = vmul.f32 %v10426_v23, %v9845_v33  ;;  %v9860_v45 = vmul.f32 %v10426_v23, %v9846_v13  ;;  %v9861_v3 = vmul.f32 %v10426_v23, %v9847_v39  ;;  %v9862_v22 = vmul.f32 %v10426_v23, %v9848_v38 }
 0xe5a   : > { %v9863_v59 = vmul.f32 %v10426_v23, %v9849_v10  ;;  %v9864_v7 = vmul.f32 %v10426_v23, %v9850_v63  ;;  %v9865_v8 = vmul.f32 %v10426_v23, %v9851_v48  ;;  %v9872_v56 = vadd.f32 %v10427_v18, %v9858_v20 }
 0xe5b   : > { %v9873_v21 = vadd.f32 %v10427_v18, %v9859_v41  ;;  %v9874_v14 = vadd.f32 %v10427_v18, %v9860_v45  ;;  %v9875_v30 = vadd.f32 %v10427_v18, %v9861_v3  ;;  %v9876_v12 = vadd.f32 %v10427_v18, %v9862_v22 }
 0xe5c   : > { %v9877_v55 = vadd.f32 %v10427_v18, %v9863_v59  ;;  %v9878_v50 = vadd.f32 %v10427_v18, %v9864_v7  ;;  %v9879_v9 = vadd.f32 %v10427_v18, %v9865_v8  ;;  %v9880_v26 = vpack.c.bf16 %v9872_v56, %v9872_v56 }
 0xe5d   : > { %v9881_v51 = vpack.c.bf16 %v9873_v21, %v9873_v21  ;;  %v9882_v52 = vpack.c.bf16 %v9874_v14, %v9874_v14  ;;  %v9883_v47 = vpack.c.bf16 %v9875_v30, %v9875_v30  ;;  %v9884_v36 = vpack.c.bf16 %v9876_v12, %v9876_v12 }
 0xe5e   : > { %v9885_v54 = vpack.c.bf16 %v9877_v55, %v9877_v55  ;;  %v9886_v42 = vpack.c.bf16 %v9878_v50, %v9878_v50  ;;  %v9887_v32 = vpack.c.bf16 %v9879_v9, %v9879_v9  ;;  %v9900_v27 = vunpack.c.l.b16 %v9880_v26 }
 0xe5f   : > { %v9901_v19 = vunpack.c.l.b16 %v9881_v51  ;;  %v9902_v34 = vunpack.c.l.b16 %v9882_v52  ;;  %v9903_v17 = vunpack.c.l.b16 %v9883_v47  ;;  %v9904_v40 = vunpack.c.l.b16 %v9884_v36 }
 0xe60   : > { %v9905_v61 = vunpack.c.l.b16 %v9885_v54  ;;  %v9906_v53 = vunpack.c.l.b16 %v9886_v42  ;;  %v9907_v0 = vunpack.c.l.b16 %v9887_v32 }
 0xe61   : > { %v9908_v43 = vrot.slane %v9901_v19, 7  ;;  %v9910_v11 = vrot.slane %v9902_v34, 6  ;;  %v9912_v25 = vrot.slane %v9903_v17, 5  ;;  %v9914_v5 = vrot.slane %v9904_v40, 4 }
 0xe62   : > { %v9916_v58 = vrot.slane %v9905_v61, 3  ;;  %v9918_v46 = vrot.slane %v9906_v53, 2  ;;  %v9920_v2 = vrot.slane %v9907_v0, 1 }
 0xe63   : > { %v9909_v57 = vsel %vm9748_vm8, %v9908_v43, %v9900_v27 }
 0xe64   : > { %v9911_v15 = vsel %vm9750_vm9, %v9910_v11, %v9909_v57 }
 0xe65   : > { %v9913_v24 = vsel %vm9752_vm10, %v9912_v25, %v9911_v15 }
 0xe66   : > { %v9915_v62 = vsel %vm9754_vm11, %v9914_v5, %v9913_v24 }
 0xe67   : > { %v9917_v28 = vsel %vm9756_vm12, %v9916_v58, %v9915_v62 }
 0xe68   : > { %v9919_v4 = vsel %vm9758_vm13, %v9918_v46, %v9917_v28 }
 0xe69   : > { %v9921_v49 = vsel %vm9760_vm14, %v9920_v2, %v9919_v4 }
 0xe6a   : > { %v9922_v35 = vpack.c.b16 %v9921_v49, %v9921_v49 }
 0xe6c   : > { %11049 = vmatmul.mubr.msk.bf16.vlgmr.msra.gmra.mrb[0].mxu0 %vm881_vm1, %v9922_v35 }
 0xf3f   : > { %v9972_v23 = vpop.f32.mrb[0].mxu0 }
 0xf40   : > { %9978 = vst.msk [vmem:[%s806_s17] sm:$0xff] %vm9053_vm6, %v9972_v23  ;;  %v11050_v44 = vpop.f32.mrb[1].mxu0 }
 0xf41   : > { %v9975_v6 = vpop.f32.mrb[2].mxu0 }
 0xf42   : > { %v11051_v31 = vpop.f32.mrb[3].mxu0 }
 0xf43 PF: > { %s14854_s6 = sld [smem:[#allocation21_spill]]  ;;  %s14855_s20 = sld [smem:[#allocation17_spill]] }
 0xf44   : > { %s14856_s26 = sld [smem:[#allocation29_spill]]  ;;  %s14857_s11 = sld [smem:[#allocation71_spill]] }
 0xf45   : > { %s9993_s1 = sshll.u32 %s806_s17, 4  ;;  %s11721_s16 = smov [#allocation11]   ;;  %s9994_s1 = int_to_ptr.vmem [resolvable:$true] %s9993_s1 }
 0xf46   : > { %s11568_s7 = scalar_lea.vmem %s9994_s1, 128  ;;  %s11572_s3 = sshll.u32 %s11721_s16, 4  ;;  %s11573_s3 = int_to_ptr.vmem [resolvable:$false] %s11572_s3 }
 0xf47   : > { %p11569_p10 = scmp.ne.s32.totalorder %s9994_s1, %s11568_s7  ;;  %s11574_s28 = scalar_lea.vmem %s11573_s3, 256 }
 0xf48   : > { %p11575_p6 = scmp.lt.s32.totalorder %s9994_s1, %s11573_s3  ;;  %p11576_p5 = scmp.lt.s32.totalorder %s11574_s28, %s11568_s7 }
 0xf49   : > { %s10432_s21 = sshll.u32 %s14854_s6, 7  ;;  %s14858_s8 = sand.u32 1, %s14855_s20  }
 0xf4a   : > { %s14593_s22 = scalar_lea.hbm %s14857_s11, %s10432_s21  ;;  %s9980_s27 = scalar_lea.sflag [#allocation5], %s14858_s8 }
 0xf4b   : > { %p14859_p2 = scmp.ne.s32.totalorder %s14856_s26, 0  ;;  %p11577_p3 = por %p11576_p5, %p11575_p6 }
 0xf4d   : > { %p11570_p9 = pnand %p11569_p10, %p14859_p2 }
 0xf4f   : > { %p11571_p4 = pneg %p11570_p9 }
 0xf51   : > { %p11578_p7 = pnand %p11577_p3, %p11571_p4 }
 0xf53   : > { %11581 = shalt.err (!%p11578_p7)
}
 0xf54   : > { %s11582_s19 = scalar_lea.hbm %s14593_s22, 128  ;;  %s11586_s4 = scalar_lea.hbm %s14857_s11, 256 }
 0xf55   : > { %p11583_p13 = scmp.ne.s32.totalorder %s14593_s22, %s11582_s19  ;;  %p11587_p12 = scmp.lt.u32.totalorder %s14593_s22, %s14857_s11 }
 0xf56   : > { %p11588_p0 = scmp.lt.u32.totalorder %s11586_s4, %s11582_s19  ;;  %p11590_p10 = scmp.lt.u32.totalorder %s11582_s19, %s14593_s22 }
 0xf57   : > { %p11584_p11 = pnand %p11583_p13, %p14859_p2 }
 0xf58   : > { %p11589_p1 = por %p11588_p0, %p11587_p12 }
 0xf59   : > { %p11585_p8 = pneg %p11584_p11 }
 0xf5a   : > { %p11591_p9 = por %p11590_p10, %p11589_p1 }
 0xf5c   : > { %p11592_p4 = pnand %p11591_p9, %p11585_p8 }
 0xf5e   : > { %11595 = shalt.err (!%p11592_p4)
}
 0xf5f   : > { %11060 = dma.vmem_to_hbm [thread:$0]  (%p14859_p2), %s9994_s1, 128, %s14593_s22, %s9980_s27  }
 0xf60 PF: > { %s14860_s13 = sld [smem:[#allocation24_spill]]  ;;  %s14861_s10 = sld [smem:[#allocation16_spill]] }
 0xf61   : > { %s14862_s25 = sld [smem:[#allocation30_spill]] }
 0xf66   : > { %p11080_p6 = scmp.ge.s32.totalorder %s14860_s13, 2  ;;  %s10005_s18 = sand.u32 1, %s14861_s10  }
 0xf67   : > { %p14863_p5 = scmp.ne.s32.totalorder %s14862_s25, 0  ;;  %s10006_s14 = scalar_lea.sflag [#allocation5], %s10005_s18 }
 0xf69   : > { %p11076_p3 = pnand %p11080_p6, %p14863_p5 }
 0xf6b   : > { %11653 = dma.done.wait (!%p11076_p3), %s10006_s14, 128  }
 0xf6c   : > { %11655 = vsyncadd (!%p11076_p3), %s10006_s14, 4294967168  ;;  %s39_s1 = sadd.s32 1, %s14860_s13   ;;  %s14864_s24 = sld [smem:[#allocation17_spill]] }
 0xf6d   : > { %p36_p7 = scmp.ge.s32.totalorder %s39_s1, 6   ;;  %s14865_s25 = sld [smem:[#allocation18_spill]] }
 0xf6e   : > { %s14866_s26 = sld [smem:[#allocation28_spill]]  ;;  %s14867_s27 = sld [smem:[#allocation19_spill]] }
 0xf6f   : > { %s14868_s28 = sld [smem:[#allocation20_spill]]  ;;  %s14869_s29 = sld [smem:[#allocation27_spill]] }
 0xf70   : > { %s14870_s0 = sld [smem:[#allocation22_spill]]  ;;  %s14871_s30 = sld [smem:[#allocation23_spill]] }
 0xf71   : > { %s14872_s18 = sld [smem:[#allocation25_spill]]  ;;  %s14873_s19 = sld [smem:[#allocation26_spill]] }
 0xf72   :  { %38 = sbr.rel (!%p36_p7) target bundleno = 31 (0x1f), region = 208 }
 0xf79   :  { %10011 = vsyncpa [#allocation4], 1 }
 0xf7a   :  { %10013 = vsyncpa [#allocation4 + $0x1], 1 }
 0xf7b   :  { %10014 = vsyncpa [#allocation7], 1 }
 0xf7c   :  { %10016 = vsyncpa [#allocation7 + $0x1], 1 }
 0xf7d   :  { %10017 = vsyncpa [#allocation10], 1 }
 0xf7e   :  { %10019 = vsyncpa [#allocation10 + $0x1], 1 }
 0xf7f   :  { %10020 = vsyncpa [#allocation5], 1 }
 0xf80   :  { %10022 = vsyncpa [#allocation5 + $0x1], 1 }

</bundles_post_ra>
